<compile_context>
chip_gen: v7x
topology: tpu7x:2x2x1
jax: 0.10.0
libtpu: 0.0.40
codegen_flags: <defaults>
</compile_context>

<pallas_src>
import jax
import jax.numpy as jnp
from jax.experimental import pallas as pl
from jax.experimental.pallas import tpu as pltpu

# ---------------- model configuration (consistent with the module) -----------
D_MODEL = 32
NHEAD = 4
HEAD_DIM = D_MODEL // NHEAD
AREA_WIDTH = 5          # kept for config completeness; unused (see TODO above)
LN_EPS = 1e-5           # torch.nn.LayerNorm default


# ---------------------------- Pallas kernel ----------------------------------
def fused_epipolar_kernel(f0_ref, f1_ref, bias1_ref, bias0_ref,
                          wqkv_ref, wm_ref, w1_ref, w2_ref,
                          g1_ref, b1_ref, g2_ref, b2_ref,
                          out0_ref, out1_ref):
    """One batch-block per grid step; both CrossAttention layers fused."""
    B, L, C = f0_ref.shape
    S = f1_ref.shape[1]

    f0 = f0_ref[...].astype(jnp.float32).reshape(B * L, C)
    f1 = f1_ref[...].astype(jnp.float32).reshape(B * S, C)
    bias1 = bias1_ref[...].astype(jnp.float32)    # [B, 1, S] source bias, layer 1
    bias0 = bias0_ref[...].astype(jnp.float32)    # [B, 1, L] source bias, layer 2

    # weights (pre-transposed, [in, out]); q-scale is already folded into Wq.
    wqkv = wqkv_ref[...]                          # [C, 3C]
    wq_t = wqkv[:, :C]                            # [C, C]
    wkv_t = wqkv[:, C:]                            # [C, 2C]
    wm_t = wm_ref[...]                            # [C, C]
    w1 = w1_ref[...]                              # [2C, 2C]
    w1x_t = w1[:C, :]                             # acts on x
    w1m_t = w1[C:, :]                             # acts on message
    w2_t = w2_ref[...]                            # [2C, C]
    g1 = g1_ref[...]; b1 = b1_ref[...]
    g2 = g2_ref[...]; b2 = b2_ref[...]

    def layer_norm(t, g, b):
        mu = jnp.mean(t, axis=-1, keepdims=True)
        tc = t - mu
        var = jnp.mean(tc * tc, axis=-1, keepdims=True)
        return tc * jax.lax.rsqrt(var + LN_EPS) * g + b

    def cross_layer(x_f, src_f, n_x, n_src, src_bias):
        # x_f: [B*n_x, C], src_f: [B*n_src, C], src_bias: [B, 1, n_src]
        q = jnp.dot(x_f, wq_t, preferred_element_type=jnp.float32)      # scaled q
        kv = jnp.dot(src_f, wkv_t, preferred_element_type=jnp.float32)  # [B*n_src, 2C]
        qb = q.reshape(B, n_x, C)
        kb = kv[:, :C].reshape(B, n_src, C)
        vb = kv[:, C:].reshape(B, n_src, C)

        merged = jnp.zeros((B * n_x, C), jnp.float32)
        for h in range(NHEAD):                    # static unroll, 4 heads
            lo, hi = h * HEAD_DIM, (h + 1) * HEAD_DIM
            s = jnp.einsum('bld,bsd->bls', qb[..., lo:hi], kb[..., lo:hi],
                           preferred_element_type=jnp.float32)           # [B, nx, ns]
            s = s + src_bias
            s = s - jnp.max(s, axis=-1, keepdims=True)
            p = jnp.exp(s)
            # exact softmax normalization: one divide per row, broadcast multiply
            p = p * (1.0 / jnp.sum(p, axis=-1, keepdims=True))
            mh = jnp.einsum('bls,bsd->bld', p, vb[..., lo:hi],
                            preferred_element_type=jnp.float32)          # [B, nx, d]
            # merge projection absorbed per head -> no lane-dim concat needed
            merged = merged + jnp.dot(mh.reshape(B * n_x, HEAD_DIM), wm_t[lo:hi, :],
                                      preferred_element_type=jnp.float32)

        msg = layer_norm(merged, g1, b1)
        # MLP(concat([x, msg])) with the concat absorbed into split W1 halves
        hid = (jnp.dot(x_f, w1x_t, preferred_element_type=jnp.float32)
               + jnp.dot(msg, w1m_t, preferred_element_type=jnp.float32))
        hid = jnp.maximum(hid, 0.0)
        m2 = layer_norm(jnp.dot(hid, w2_t, preferred_element_type=jnp.float32), g2, b2)
        return x_f + m2

    f0_new = cross_layer(f0, f1, L, S, bias1)      # feat0 <- layer(feat0, feat1)
    f1_new = cross_layer(f1, f0_new, S, L, bias0)  # feat1 <- layer(feat1, feat0_new)

    out0_ref[...] = f0_new.reshape(B, L, C).astype(out0_ref.dtype)
    out1_ref[...] = f1_new.reshape(B, S, C).astype(out1_ref.dtype)


# ------------------------------ wrapper ---------------------------------------
def epipolar_attention(feat0, feat1, params, epipolar_info=None,
                       mask0=None, mask1=None, batch_block=None):
    """Mirrors EpipolarAttention.forward (shared-weight CrossAttention twice).

    feat0: [N, L, C], feat1: [N, S, C]; masks: optional [N, L] / [N, S].
    epipolar_info is accepted but unused (see TODO at top).
    """
    del epipolar_info
    N, L, C = feat0.shape
    S = feat1.shape[1]
    assert C == D_MODEL and feat1.shape[2] == D_MODEL

    # <=2 grid points: one per v7x TensorCore; near-fully-folded on v5e/v6e.
    if batch_block is None:
        batch_block = (N + 1) // 2
    if N % batch_block != 0:
        batch_block = 1
    bb = batch_block
    grid = (N // bb,)

    scale = 1.0 / (HEAD_DIM ** 0.5)
    # fused q/k/v weight, pre-transposed to [in, out]; softmax scale folded into Wq.
    wqkv_t = jnp.concatenate(
        [params["wq"].T * scale, params["wk"].T, params["wv"].T], axis=1)  # [C, 3C]
    wm_t = params["wm"].T                        # [C, C]
    w1_t = params["w1"].T                        # [2C, 2C]
    w2_t = params["w2"].T                        # [2C, C]
    g1 = params["ln1_g"].reshape(1, C)
    b1 = params["ln1_b"].reshape(1, C)
    g2 = params["ln2_g"].reshape(1, C)
    b2 = params["ln2_b"].reshape(1, C)

    def mask_bias(mask, n_tok):
        if mask is None:
            return jnp.zeros((N, 1, n_tok), jnp.float32)
        return jnp.where(mask.astype(bool), 0.0, -1e9).astype(jnp.float32) \
                  .reshape(N, 1, n_tok)

    bias_l1 = mask_bias(mask1, S)   # source of layer 1 is feat1
    bias_l2 = mask_bias(mask0, L)   # source of layer 2 is (updated) feat0

    full2d = lambda shp: pl.BlockSpec(shp, lambda b: (0, 0))

    grid_spec = pltpu.PrefetchScalarGridSpec(
        num_scalar_prefetch=0,
        grid=grid,
        in_specs=[
            pl.BlockSpec((bb, L, C), lambda b: (b, 0, 0)),   # feat0
            pl.BlockSpec((bb, S, C), lambda b: (b, 0, 0)),   # feat1
            pl.BlockSpec((bb, 1, S), lambda b: (b, 0, 0)),   # bias layer-1 (mask1)
            pl.BlockSpec((bb, 1, L), lambda b: (b, 0, 0)),   # bias layer-2 (mask0)
            full2d((C, 3 * C)),        # wqkv_t (q pre-scaled)
            full2d((C, C)),            # wm_t
            full2d((2 * C, 2 * C)),    # w1_t
            full2d((2 * C, C)),        # w2_t
            full2d((1, C)),            # ln1 gamma
            full2d((1, C)),            # ln1 beta
            full2d((1, C)),            # ln2 gamma
            full2d((1, C)),            # ln2 beta
        ],
        out_specs=[
            pl.BlockSpec((bb, L, C), lambda b: (b, 0, 0)),
            pl.BlockSpec((bb, S, C), lambda b: (b, 0, 0)),
        ],
    )

    out0, out1 = pl.pallas_call(
        fused_epipolar_kernel,
        out_shape=(jax.ShapeDtypeStruct((N, L, C), feat0.dtype),
                   jax.ShapeDtypeStruct((N, S, C), feat1.dtype)),
        grid_spec=grid_spec,
        compiler_params=pltpu.CompilerParams(dimension_semantics=("parallel",)),
    )(feat0, feat1, bias_l1, bias_l2, wqkv_t, wm_t, w1_t, w2_t, g1, b1, g2, b2)
    return out0, out1


# --------------------------- pure-JAX reference --------------------------------
_PREC = jax.lax.Precision.HIGHEST   # full-f32 reference matmuls (match Mosaic f32)


def _layer_ref(x, src, p, src_mask=None):
    N, L, C = x.shape
    S = src.shape[1]
    q = jnp.matmul(x, p["wq"].T, precision=_PREC).reshape(N, L, NHEAD, HEAD_DIM)
    k = jnp.matmul(src, p["wk"].T, precision=_PREC).reshape(N, S, NHEAD, HEAD_DIM)
    v = jnp.matmul(src, p["wv"].T, precision=_PREC).reshape(N, S, NHEAD, HEAD_DIM)
    s = jnp.einsum("nlhd,nshd->nhls", q, k, precision=_PREC) / (HEAD_DIM ** 0.5)
    if src_mask is not None:
        s = jnp.where(src_mask[:, None, None, :].astype(bool), s, -1e9)
    a = jax.nn.softmax(s, axis=-1)
    msg = jnp.einsum("nhls,nshd->nlhd", a, v, precision=_PREC).reshape(N, L, C)
    msg = jnp.matmul(msg, p["wm"].T, precision=_PREC)

    def ln(t, g, b):
        mu = t.mean(-1, keepdims=True)
        var = ((t - mu) ** 2).mean(-1, keepdims=True)
        return (t - mu) * jax.lax.rsqrt(var + LN_EPS) * g + b

    msg = ln(msg, p["ln1_g"], p["ln1_b"])
    cat = jnp.concatenate([x, msg], axis=-1)
    hid = jnp.maximum(jnp.matmul(cat, p["w1"].T, precision=_PREC), 0.0)
    m2 = ln(jnp.matmul(hid, p["w2"].T, precision=_PREC), p["ln2_g"], p["ln2_b"])
    return x + m2


def _ref(feat0, feat1, p, mask0=None, mask1=None):
    f0 = _layer_ref(feat0, feat1, p, mask1)
    f1 = _layer_ref(feat1, f0, p, mask0)
    return f0, f1


# --------------------------- parameter init ------------------------------------
def _xavier_uniform(key, shape):
    fan_out, fan_in = shape
    bound = (6.0 / (fan_in + fan_out)) ** 0.5
    return jax.random.uniform(key, shape, jnp.float32, -bound, bound)


def init_params(key):
    ks = jax.random.split(key, 6)
    C = D_MODEL
    return {
        "wq": _xavier_uniform(ks[0], (C, C)),
        "wk": _xavier_uniform(ks[1], (C, C)),
        "wv": _xavier_uniform(ks[2], (C, C)),
        "wm": _xavier_uniform(ks[3], (C, C)),
        "w1": _xavier_uniform(ks[4], (2 * C, 2 * C)),
        "w2": _xavier_uniform(ks[5], (C, 2 * C)),
        "ln1_g": jnp.ones((C,), jnp.float32),
        "ln1_b": jnp.zeros((C,), jnp.float32),
        "ln2_g": jnp.ones((C,), jnp.float32),
        "ln2_b": jnp.zeros((C,), jnp.float32),
    }


# ------------------------------------ main -------------------------------------
if __name__ == "__main__":
    key = jax.random.PRNGKey(0)
    k0, k1, kp = jax.random.split(key, 3)

    N, L, S, C = 2, 64, 64, D_MODEL
    feat0 = jax.random.normal(k0, (N, L, C), jnp.float32)
    feat1 = jax.random.normal(k1, (N, S, C), jnp.float32)
    params = init_params(kp)

    epipolar_info = {}  # unused by the simplified (dense) attention core

    out0, out1 = epipolar_attention(feat0, feat1, params, epipolar_info)
    out0 = jax.block_until_ready(out0)
    out1 = jax.block_until_ready(out1)

    ref0, ref1 = _ref(feat0, feat1, params)
    d0 = float(jnp.max(jnp.abs(out0 - ref0)))
    d1 = float(jnp.max(jnp.abs(out1 - ref1)))
    # tolerance accounts for MXU multi-pass f32 / EUP transcendental rounding on HW
    assert jnp.allclose(out0, ref0, atol=1e-2, rtol=1e-2), f"feat0 mismatch (max|diff|={d0})"
    assert jnp.allclose(out1, ref1, atol=1e-2, rtol=1e-2), f"feat1 mismatch (max|diff|={d1})"

    print("KERNEL_OK")
</pallas_src>

<mosaic_0001>
module attributes {stable_mosaic.version = 11 : i64} {
  func.func @fused_epipolar_kernel(%arg0: i32, %arg1: memref<1x64x32xf32, #tpu.memory_space<vmem>>, %arg2: memref<1x64x32xf32, #tpu.memory_space<vmem>>, %arg3: memref<1x1x64xf32, #tpu.memory_space<vmem>>, %arg4: memref<1x1x64xf32, #tpu.memory_space<vmem>>, %arg5: memref<32x96xf32, #tpu.memory_space<vmem>>, %arg6: memref<32x32xf32, #tpu.memory_space<vmem>>, %arg7: memref<64x64xf32, #tpu.memory_space<vmem>>, %arg8: memref<64x32xf32, #tpu.memory_space<vmem>>, %arg9: memref<1x32xf32, #tpu.memory_space<vmem>>, %arg10: memref<1x32xf32, #tpu.memory_space<vmem>>, %arg11: memref<1x32xf32, #tpu.memory_space<vmem>>, %arg12: memref<1x32xf32, #tpu.memory_space<vmem>>, %arg13: memref<1x64x32xf32, #tpu.memory_space<vmem>>, %arg14: memref<1x64x32xf32, #tpu.memory_space<vmem>>) attributes {dimension_semantics = [#tpu.dimension_semantics<parallel>], iteration_bounds = array<i64: 2>, scalar_prefetch = 0 : i64, scratch_operands = 0 : i64, tpu.core_type = #tpu.core_type<tc>, window_params = [{transform_indices = @transform_0, window_bounds = array<i64: 1, 64, 32>}, {transform_indices = @transform_1, window_bounds = array<i64: 1, 64, 32>}, {transform_indices = @transform_2, window_bounds = array<i64: 1, 1, 64>}, {transform_indices = @transform_3, window_bounds = array<i64: 1, 1, 64>}, {pipeline_mode = #tpu.pipeline_mode<synchronous>, transform_indices = @transform_4, window_bounds = array<i64: 32, 96>}, {pipeline_mode = #tpu.pipeline_mode<synchronous>, transform_indices = @transform_5, window_bounds = array<i64: 32, 32>}, {pipeline_mode = #tpu.pipeline_mode<synchronous>, transform_indices = @transform_6, window_bounds = array<i64: 64, 64>}, {pipeline_mode = #tpu.pipeline_mode<synchronous>, transform_indices = @transform_7, window_bounds = array<i64: 64, 32>}, {pipeline_mode = #tpu.pipeline_mode<synchronous>, transform_indices = @transform_8, window_bounds = array<i64: 1, 32>}, {pipeline_mode = #tpu.pipeline_mode<synchronous>, transform_indices = @transform_9, window_bounds = array<i64: 1, 32>}, {pipeline_mode = #tpu.pipeline_mode<synchronous>, transform_indices = @transform_10, window_bounds = array<i64: 1, 32>}, {pipeline_mode = #tpu.pipeline_mode<synchronous>, transform_indices = @transform_11, window_bounds = array<i64: 1, 32>}, {transform_indices = @transform_12, window_bounds = array<i64: 1, 64, 32>}, {transform_indices = @transform_13, window_bounds = array<i64: 1, 64, 32>}]} {
    %c0 = arith.constant 0 : index
    %c0_0 = arith.constant 0 : index
    %c0_1 = arith.constant 0 : index
    %0 = vector.load %arg1[%c0, %c0_0, %c0_1] : memref<1x64x32xf32, #tpu.memory_space<vmem>>, vector<1x64x32xf32>
    %1 = vector.shape_cast %0 : vector<1x64x32xf32> to vector<64x32xf32>
    %c0_2 = arith.constant 0 : index
    %c0_3 = arith.constant 0 : index
    %c0_4 = arith.constant 0 : index
    %2 = vector.load %arg2[%c0_2, %c0_3, %c0_4] : memref<1x64x32xf32, #tpu.memory_space<vmem>>, vector<1x64x32xf32>
    %3 = vector.shape_cast %2 : vector<1x64x32xf32> to vector<64x32xf32>
    %c0_5 = arith.constant 0 : index
    %c0_6 = arith.constant 0 : index
    %c0_7 = arith.constant 0 : index
    %4 = vector.load %arg3[%c0_5, %c0_6, %c0_7] : memref<1x1x64xf32, #tpu.memory_space<vmem>>, vector<1x1x64xf32>
    %c0_8 = arith.constant 0 : index
    %c0_9 = arith.constant 0 : index
    %c0_10 = arith.constant 0 : index
    %5 = vector.load %arg4[%c0_8, %c0_9, %c0_10] : memref<1x1x64xf32, #tpu.memory_space<vmem>>, vector<1x1x64xf32>
    %c0_11 = arith.constant 0 : index
    %c0_12 = arith.constant 0 : index
    %6 = vector.load %arg5[%c0_11, %c0_12] : memref<32x96xf32, #tpu.memory_space<vmem>>, vector<32x96xf32>
    %7 = vector.extract_strided_slice %6 {offsets = [0, 0], sizes = [32, 32], strides = [1, 1]} : vector<32x96xf32> to vector<32x32xf32>
    %8 = vector.extract_strided_slice %6 {offsets = [0, 32], sizes = [32, 64], strides = [1, 1]} : vector<32x96xf32> to vector<32x64xf32>
    %c0_13 = arith.constant 0 : index
    %c0_14 = arith.constant 0 : index
    %9 = vector.load %arg6[%c0_13, %c0_14] : memref<32x32xf32, #tpu.memory_space<vmem>>, vector<32x32xf32>
    %c0_15 = arith.constant 0 : index
    %c0_16 = arith.constant 0 : index
    %10 = vector.load %arg7[%c0_15, %c0_16] : memref<64x64xf32, #tpu.memory_space<vmem>>, vector<64x64xf32>
    %11 = vector.extract_strided_slice %10 {offsets = [0, 0], sizes = [32, 64], strides = [1, 1]} : vector<64x64xf32> to vector<32x64xf32>
    %12 = vector.extract_strided_slice %10 {offsets = [32, 0], sizes = [32, 64], strides = [1, 1]} : vector<64x64xf32> to vector<32x64xf32>
    %c0_17 = arith.constant 0 : index
    %c0_18 = arith.constant 0 : index
    %13 = vector.load %arg8[%c0_17, %c0_18] : memref<64x32xf32, #tpu.memory_space<vmem>>, vector<64x32xf32>
    %c0_19 = arith.constant 0 : index
    %c0_20 = arith.constant 0 : index
    %14 = vector.load %arg9[%c0_19, %c0_20] : memref<1x32xf32, #tpu.memory_space<vmem>>, vector<1x32xf32>
    %c0_21 = arith.constant 0 : index
    %c0_22 = arith.constant 0 : index
    %15 = vector.load %arg10[%c0_21, %c0_22] : memref<1x32xf32, #tpu.memory_space<vmem>>, vector<1x32xf32>
    %c0_23 = arith.constant 0 : index
    %c0_24 = arith.constant 0 : index
    %16 = vector.load %arg11[%c0_23, %c0_24] : memref<1x32xf32, #tpu.memory_space<vmem>>, vector<1x32xf32>
    %c0_25 = arith.constant 0 : index
    %c0_26 = arith.constant 0 : index
    %17 = vector.load %arg12[%c0_25, %c0_26] : memref<1x32xf32, #tpu.memory_space<vmem>>, vector<1x32xf32>
    %cst = arith.constant dense<0.000000e+00> : vector<64x32xf32>
    %18 = tpu.matmul %1, %7, %cst {dimension_numbers = #tpu.dot_dimension_numbers<[1], [0], [0], [1], [0, 0, 1, 1], [], []>} : vector<64x32xf32>, vector<32x32xf32>, vector<64x32xf32> -> vector<64x32xf32>
    %cst_27 = arith.constant dense<0.000000e+00> : vector<64x64xf32>
    %19 = tpu.matmul %3, %8, %cst_27 {dimension_numbers = #tpu.dot_dimension_numbers<[1], [0], [0], [1], [0, 0, 1, 1], [], []>} : vector<64x32xf32>, vector<32x64xf32>, vector<64x64xf32> -> vector<64x64xf32>
    %20 = vector.shape_cast %18 : vector<64x32xf32> to vector<1x64x32xf32>
    %21 = vector.extract_strided_slice %19 {offsets = [0, 0], sizes = [64, 32], strides = [1, 1]} : vector<64x64xf32> to vector<64x32xf32>
    %22 = vector.shape_cast %21 : vector<64x32xf32> to vector<1x64x32xf32>
    %23 = vector.extract_strided_slice %19 {offsets = [0, 32], sizes = [64, 32], strides = [1, 1]} : vector<64x64xf32> to vector<64x32xf32>
    %24 = vector.shape_cast %23 : vector<64x32xf32> to vector<1x64x32xf32>
    %cst_28 = arith.constant 0.000000e+00 : f32
    %25 = vector.broadcast %cst_28 : f32 to vector<64x32xf32>
    %26 = vector.extract_strided_slice %20 {offsets = [0, 0, 0], sizes = [1, 64, 8], strides = [1, 1, 1]} : vector<1x64x32xf32> to vector<1x64x8xf32>
    %27 = vector.extract_strided_slice %22 {offsets = [0, 0, 0], sizes = [1, 64, 8], strides = [1, 1, 1]} : vector<1x64x32xf32> to vector<1x64x8xf32>
    "tpu.trace_start"() <{level = 10 : i32, message = "bld,bsd->bls"}> : () -> ()
    %cst_29 = arith.constant dense<0.000000e+00> : vector<1x64x64xf32>
    %28 = tpu.matmul %26, %27, %cst_29 {dimension_numbers = #tpu.dot_dimension_numbers<[2], [2], [1], [1], [0, 0, 0, 1, 1, 1], [0], [0]>} : vector<1x64x8xf32>, vector<1x64x8xf32>, vector<1x64x64xf32> -> vector<1x64x64xf32>
    "tpu.trace_stop"() : () -> ()
    %29 = vector.broadcast %4 : vector<1x1x64xf32> to vector<1x64x64xf32>
    %30 = arith.addf %28, %29 : vector<1x64x64xf32>
    %cst_30 = arith.constant dense<0xFF800000> : vector<1x64xf32>
    %31 = vector.multi_reduction <maximumf>, %30, %cst_30 [2] : vector<1x64x64xf32> to vector<1x64xf32>
    %32 = vector.shape_cast %31 : vector<1x64xf32> to vector<1x64x1xf32>
    %33 = vector.broadcast %32 : vector<1x64x1xf32> to vector<1x64x64xf32>
    %34 = arith.subf %30, %33 : vector<1x64x64xf32>
    %35 = math.exp %34 : vector<1x64x64xf32>
    %cst_31 = arith.constant dense<0.000000e+00> : vector<1x64xf32>
    %36 = vector.multi_reduction <add>, %35, %cst_31 [2] : vector<1x64x64xf32> to vector<1x64xf32>
    %37 = vector.shape_cast %36 : vector<1x64xf32> to vector<1x64x1xf32>
    %cst_32 = arith.constant 1.000000e+00 : f32
    %38 = vector.broadcast %cst_32 : f32 to vector<1x64x1xf32>
    %39 = arith.divf %38, %37 : vector<1x64x1xf32>
    %40 = vector.broadcast %39 : vector<1x64x1xf32> to vector<1x64x64xf32>
    %41 = arith.mulf %35, %40 : vector<1x64x64xf32>
    %42 = vector.extract_strided_slice %24 {offsets = [0, 0, 0], sizes = [1, 64, 8], strides = [1, 1, 1]} : vector<1x64x32xf32> to vector<1x64x8xf32>
    "tpu.trace_start"() <{level = 10 : i32, message = "bls,bsd->bld"}> : () -> ()
    %cst_33 = arith.constant dense<0.000000e+00> : vector<1x64x8xf32>
    %43 = tpu.matmul %41, %42, %cst_33 {dimension_numbers = #tpu.dot_dimension_numbers<[2], [1], [1], [2], [0, 0, 0, 1, 1, 2], [0], [0]>} : vector<1x64x64xf32>, vector<1x64x8xf32>, vector<1x64x8xf32> -> vector<1x64x8xf32>
    "tpu.trace_stop"() : () -> ()
    %44 = vector.shape_cast %43 : vector<1x64x8xf32> to vector<64x8xf32>
    %45 = vector.extract_strided_slice %9 {offsets = [0, 0], sizes = [8, 32], strides = [1, 1]} : vector<32x32xf32> to vector<8x32xf32>
    %cst_34 = arith.constant dense<0.000000e+00> : vector<64x32xf32>
    %46 = tpu.matmul %44, %45, %cst_34 {dimension_numbers = #tpu.dot_dimension_numbers<[1], [0], [0], [1], [0, 0, 1, 1], [], []>} : vector<64x8xf32>, vector<8x32xf32>, vector<64x32xf32> -> vector<64x32xf32>
    %47 = arith.addf %25, %46 : vector<64x32xf32>
    %48 = vector.extract_strided_slice %20 {offsets = [0, 0, 8], sizes = [1, 64, 8], strides = [1, 1, 1]} : vector<1x64x32xf32> to vector<1x64x8xf32>
    %49 = vector.extract_strided_slice %22 {offsets = [0, 0, 8], sizes = [1, 64, 8], strides = [1, 1, 1]} : vector<1x64x32xf32> to vector<1x64x8xf32>
    "tpu.trace_start"() <{level = 10 : i32, message = "bld,bsd->bls"}> : () -> ()
    %cst_35 = arith.constant dense<0.000000e+00> : vector<1x64x64xf32>
    %50 = tpu.matmul %48, %49, %cst_35 {dimension_numbers = #tpu.dot_dimension_numbers<[2], [2], [1], [1], [0, 0, 0, 1, 1, 1], [0], [0]>} : vector<1x64x8xf32>, vector<1x64x8xf32>, vector<1x64x64xf32> -> vector<1x64x64xf32>
    "tpu.trace_stop"() : () -> ()
    %51 = vector.broadcast %4 : vector<1x1x64xf32> to vector<1x64x64xf32>
    %52 = arith.addf %50, %51 : vector<1x64x64xf32>
    %cst_36 = arith.constant dense<0xFF800000> : vector<1x64xf32>
    %53 = vector.multi_reduction <maximumf>, %52, %cst_36 [2] : vector<1x64x64xf32> to vector<1x64xf32>
    %54 = vector.shape_cast %53 : vector<1x64xf32> to vector<1x64x1xf32>
    %55 = vector.broadcast %54 : vector<1x64x1xf32> to vector<1x64x64xf32>
    %56 = arith.subf %52, %55 : vector<1x64x64xf32>
    %57 = math.exp %56 : vector<1x64x64xf32>
    %cst_37 = arith.constant dense<0.000000e+00> : vector<1x64xf32>
    %58 = vector.multi_reduction <add>, %57, %cst_37 [2] : vector<1x64x64xf32> to vector<1x64xf32>
    %59 = vector.shape_cast %58 : vector<1x64xf32> to vector<1x64x1xf32>
    %cst_38 = arith.constant 1.000000e+00 : f32
    %60 = vector.broadcast %cst_38 : f32 to vector<1x64x1xf32>
    %61 = arith.divf %60, %59 : vector<1x64x1xf32>
    %62 = vector.broadcast %61 : vector<1x64x1xf32> to vector<1x64x64xf32>
    %63 = arith.mulf %57, %62 : vector<1x64x64xf32>
    %64 = vector.extract_strided_slice %24 {offsets = [0, 0, 8], sizes = [1, 64, 8], strides = [1, 1, 1]} : vector<1x64x32xf32> to vector<1x64x8xf32>
    "tpu.trace_start"() <{level = 10 : i32, message = "bls,bsd->bld"}> : () -> ()
    %cst_39 = arith.constant dense<0.000000e+00> : vector<1x64x8xf32>
    %65 = tpu.matmul %63, %64, %cst_39 {dimension_numbers = #tpu.dot_dimension_numbers<[2], [1], [1], [2], [0, 0, 0, 1, 1, 2], [0], [0]>} : vector<1x64x64xf32>, vector<1x64x8xf32>, vector<1x64x8xf32> -> vector<1x64x8xf32>
    "tpu.trace_stop"() : () -> ()
    %66 = vector.shape_cast %65 : vector<1x64x8xf32> to vector<64x8xf32>
    %67 = vector.extract_strided_slice %9 {offsets = [8, 0], sizes = [8, 32], strides = [1, 1]} : vector<32x32xf32> to vector<8x32xf32>
    %cst_40 = arith.constant dense<0.000000e+00> : vector<64x32xf32>
    %68 = tpu.matmul %66, %67, %cst_40 {dimension_numbers = #tpu.dot_dimension_numbers<[1], [0], [0], [1], [0, 0, 1, 1], [], []>} : vector<64x8xf32>, vector<8x32xf32>, vector<64x32xf32> -> vector<64x32xf32>
    %69 = arith.addf %47, %68 : vector<64x32xf32>
    %70 = vector.extract_strided_slice %20 {offsets = [0, 0, 16], sizes = [1, 64, 8], strides = [1, 1, 1]} : vector<1x64x32xf32> to vector<1x64x8xf32>
    %71 = vector.extract_strided_slice %22 {offsets = [0, 0, 16], sizes = [1, 64, 8], strides = [1, 1, 1]} : vector<1x64x32xf32> to vector<1x64x8xf32>
    "tpu.trace_start"() <{level = 10 : i32, message = "bld,bsd->bls"}> : () -> ()
    %cst_41 = arith.constant dense<0.000000e+00> : vector<1x64x64xf32>
    %72 = tpu.matmul %70, %71, %cst_41 {dimension_numbers = #tpu.dot_dimension_numbers<[2], [2], [1], [1], [0, 0, 0, 1, 1, 1], [0], [0]>} : vector<1x64x8xf32>, vector<1x64x8xf32>, vector<1x64x64xf32> -> vector<1x64x64xf32>
    "tpu.trace_stop"() : () -> ()
    %73 = vector.broadcast %4 : vector<1x1x64xf32> to vector<1x64x64xf32>
    %74 = arith.addf %72, %73 : vector<1x64x64xf32>
    %cst_42 = arith.constant dense<0xFF800000> : vector<1x64xf32>
    %75 = vector.multi_reduction <maximumf>, %74, %cst_42 [2] : vector<1x64x64xf32> to vector<1x64xf32>
    %76 = vector.shape_cast %75 : vector<1x64xf32> to vector<1x64x1xf32>
    %77 = vector.broadcast %76 : vector<1x64x1xf32> to vector<1x64x64xf32>
    %78 = arith.subf %74, %77 : vector<1x64x64xf32>
    %79 = math.exp %78 : vector<1x64x64xf32>
    %cst_43 = arith.constant dense<0.000000e+00> : vector<1x64xf32>
    %80 = vector.multi_reduction <add>, %79, %cst_43 [2] : vector<1x64x64xf32> to vector<1x64xf32>
    %81 = vector.shape_cast %80 : vector<1x64xf32> to vector<1x64x1xf32>
    %cst_44 = arith.constant 1.000000e+00 : f32
    %82 = vector.broadcast %cst_44 : f32 to vector<1x64x1xf32>
    %83 = arith.divf %82, %81 : vector<1x64x1xf32>
    %84 = vector.broadcast %83 : vector<1x64x1xf32> to vector<1x64x64xf32>
    %85 = arith.mulf %79, %84 : vector<1x64x64xf32>
    %86 = vector.extract_strided_slice %24 {offsets = [0, 0, 16], sizes = [1, 64, 8], strides = [1, 1, 1]} : vector<1x64x32xf32> to vector<1x64x8xf32>
    "tpu.trace_start"() <{level = 10 : i32, message = "bls,bsd->bld"}> : () -> ()
    %cst_45 = arith.constant dense<0.000000e+00> : vector<1x64x8xf32>
    %87 = tpu.matmul %85, %86, %cst_45 {dimension_numbers = #tpu.dot_dimension_numbers<[2], [1], [1], [2], [0, 0, 0, 1, 1, 2], [0], [0]>} : vector<1x64x64xf32>, vector<1x64x8xf32>, vector<1x64x8xf32> -> vector<1x64x8xf32>
    "tpu.trace_stop"() : () -> ()
    %88 = vector.shape_cast %87 : vector<1x64x8xf32> to vector<64x8xf32>
    %89 = vector.extract_strided_slice %9 {offsets = [16, 0], sizes = [8, 32], strides = [1, 1]} : vector<32x32xf32> to vector<8x32xf32>
    %cst_46 = arith.constant dense<0.000000e+00> : vector<64x32xf32>
    %90 = tpu.matmul %88, %89, %cst_46 {dimension_numbers = #tpu.dot_dimension_numbers<[1], [0], [0], [1], [0, 0, 1, 1], [], []>} : vector<64x8xf32>, vector<8x32xf32>, vector<64x32xf32> -> vector<64x32xf32>
    %91 = arith.addf %69, %90 : vector<64x32xf32>
    %92 = vector.extract_strided_slice %20 {offsets = [0, 0, 24], sizes = [1, 64, 8], strides = [1, 1, 1]} : vector<1x64x32xf32> to vector<1x64x8xf32>
    %93 = vector.extract_strided_slice %22 {offsets = [0, 0, 24], sizes = [1, 64, 8], strides = [1, 1, 1]} : vector<1x64x32xf32> to vector<1x64x8xf32>
    "tpu.trace_start"() <{level = 10 : i32, message = "bld,bsd->bls"}> : () -> ()
    %cst_47 = arith.constant dense<0.000000e+00> : vector<1x64x64xf32>
    %94 = tpu.matmul %92, %93, %cst_47 {dimension_numbers = #tpu.dot_dimension_numbers<[2], [2], [1], [1], [0, 0, 0, 1, 1, 1], [0], [0]>} : vector<1x64x8xf32>, vector<1x64x8xf32>, vector<1x64x64xf32> -> vector<1x64x64xf32>
    "tpu.trace_stop"() : () -> ()
    %95 = vector.broadcast %4 : vector<1x1x64xf32> to vector<1x64x64xf32>
    %96 = arith.addf %94, %95 : vector<1x64x64xf32>
    %cst_48 = arith.constant dense<0xFF800000> : vector<1x64xf32>
    %97 = vector.multi_reduction <maximumf>, %96, %cst_48 [2] : vector<1x64x64xf32> to vector<1x64xf32>
    %98 = vector.shape_cast %97 : vector<1x64xf32> to vector<1x64x1xf32>
    %99 = vector.broadcast %98 : vector<1x64x1xf32> to vector<1x64x64xf32>
    %100 = arith.subf %96, %99 : vector<1x64x64xf32>
    %101 = math.exp %100 : vector<1x64x64xf32>
    %cst_49 = arith.constant dense<0.000000e+00> : vector<1x64xf32>
    %102 = vector.multi_reduction <add>, %101, %cst_49 [2] : vector<1x64x64xf32> to vector<1x64xf32>
    %103 = vector.shape_cast %102 : vector<1x64xf32> to vector<1x64x1xf32>
    %cst_50 = arith.constant 1.000000e+00 : f32
    %104 = vector.broadcast %cst_50 : f32 to vector<1x64x1xf32>
    %105 = arith.divf %104, %103 : vector<1x64x1xf32>
    %106 = vector.broadcast %105 : vector<1x64x1xf32> to vector<1x64x64xf32>
    %107 = arith.mulf %101, %106 : vector<1x64x64xf32>
    %108 = vector.extract_strided_slice %24 {offsets = [0, 0, 24], sizes = [1, 64, 8], strides = [1, 1, 1]} : vector<1x64x32xf32> to vector<1x64x8xf32>
    "tpu.trace_start"() <{level = 10 : i32, message = "bls,bsd->bld"}> : () -> ()
    %cst_51 = arith.constant dense<0.000000e+00> : vector<1x64x8xf32>
    %109 = tpu.matmul %107, %108, %cst_51 {dimension_numbers = #tpu.dot_dimension_numbers<[2], [1], [1], [2], [0, 0, 0, 1, 1, 2], [0], [0]>} : vector<1x64x64xf32>, vector<1x64x8xf32>, vector<1x64x8xf32> -> vector<1x64x8xf32>
    "tpu.trace_stop"() : () -> ()
    %110 = vector.shape_cast %109 : vector<1x64x8xf32> to vector<64x8xf32>
    %111 = vector.extract_strided_slice %9 {offsets = [24, 0], sizes = [8, 32], strides = [1, 1]} : vector<32x32xf32> to vector<8x32xf32>
    %cst_52 = arith.constant dense<0.000000e+00> : vector<64x32xf32>
    %112 = tpu.matmul %110, %111, %cst_52 {dimension_numbers = #tpu.dot_dimension_numbers<[1], [0], [0], [1], [0, 0, 1, 1], [], []>} : vector<64x8xf32>, vector<8x32xf32>, vector<64x32xf32> -> vector<64x32xf32>
    %113 = arith.addf %91, %112 : vector<64x32xf32>
    %cst_53 = arith.constant dense<0.000000e+00> : vector<64xf32>
    %114 = vector.multi_reduction <add>, %113, %cst_53 [1] : vector<64x32xf32> to vector<64xf32>
    %115 = vector.shape_cast %114 : vector<64xf32> to vector<64x1xf32>
    %cst_54 = arith.constant 3.200000e+01 : f32
    %116 = vector.broadcast %cst_54 : f32 to vector<64x1xf32>
    %117 = arith.divf %115, %116 : vector<64x1xf32>
    %118 = vector.broadcast %117 : vector<64x1xf32> to vector<64x32xf32>
    %119 = arith.subf %113, %118 : vector<64x32xf32>
    %120 = arith.mulf %119, %119 : vector<64x32xf32>
    %cst_55 = arith.constant dense<0.000000e+00> : vector<64xf32>
    %121 = vector.multi_reduction <add>, %120, %cst_55 [1] : vector<64x32xf32> to vector<64xf32>
    %122 = vector.shape_cast %121 : vector<64xf32> to vector<64x1xf32>
    %cst_56 = arith.constant 3.200000e+01 : f32
    %123 = vector.broadcast %cst_56 : f32 to vector<64x1xf32>
    %124 = arith.divf %122, %123 : vector<64x1xf32>
    %cst_57 = arith.constant 9.99999974E-6 : f32
    %125 = vector.broadcast %cst_57 : f32 to vector<64x1xf32>
    %126 = arith.addf %124, %125 : vector<64x1xf32>
    %127 = math.rsqrt %126 : vector<64x1xf32>
    %128 = vector.broadcast %127 : vector<64x1xf32> to vector<64x32xf32>
    %129 = arith.mulf %119, %128 : vector<64x32xf32>
    %130 = vector.broadcast %14 : vector<1x32xf32> to vector<64x32xf32>
    %131 = arith.mulf %129, %130 : vector<64x32xf32>
    %132 = vector.broadcast %15 : vector<1x32xf32> to vector<64x32xf32>
    %133 = arith.addf %131, %132 : vector<64x32xf32>
    %cst_58 = arith.constant dense<0.000000e+00> : vector<64x64xf32>
    %134 = tpu.matmul %1, %11, %cst_58 {dimension_numbers = #tpu.dot_dimension_numbers<[1], [0], [0], [1], [0, 0, 1, 1], [], []>} : vector<64x32xf32>, vector<32x64xf32>, vector<64x64xf32> -> vector<64x64xf32>
    %cst_59 = arith.constant dense<0.000000e+00> : vector<64x64xf32>
    %135 = tpu.matmul %133, %12, %cst_59 {dimension_numbers = #tpu.dot_dimension_numbers<[1], [0], [0], [1], [0, 0, 1, 1], [], []>} : vector<64x32xf32>, vector<32x64xf32>, vector<64x64xf32> -> vector<64x64xf32>
    %136 = arith.addf %134, %135 : vector<64x64xf32>
    %cst_60 = arith.constant 0.000000e+00 : f32
    %137 = vector.broadcast %cst_60 : f32 to vector<64x64xf32>
    %138 = arith.maximumf %136, %137 : vector<64x64xf32>
    %cst_61 = arith.constant dense<0.000000e+00> : vector<64x32xf32>
    %139 = tpu.matmul %138, %13, %cst_61 {dimension_numbers = #tpu.dot_dimension_numbers<[1], [0], [0], [1], [0, 0, 1, 1], [], []>} : vector<64x64xf32>, vector<64x32xf32>, vector<64x32xf32> -> vector<64x32xf32>
    %cst_62 = arith.constant dense<0.000000e+00> : vector<64xf32>
    %140 = vector.multi_reduction <add>, %139, %cst_62 [1] : vector<64x32xf32> to vector<64xf32>
    %141 = vector.shape_cast %140 : vector<64xf32> to vector<64x1xf32>
    %cst_63 = arith.constant 3.200000e+01 : f32
    %142 = vector.broadcast %cst_63 : f32 to vector<64x1xf32>
    %143 = arith.divf %141, %142 : vector<64x1xf32>
    %144 = vector.broadcast %143 : vector<64x1xf32> to vector<64x32xf32>
    %145 = arith.subf %139, %144 : vector<64x32xf32>
    %146 = arith.mulf %145, %145 : vector<64x32xf32>
    %cst_64 = arith.constant dense<0.000000e+00> : vector<64xf32>
    %147 = vector.multi_reduction <add>, %146, %cst_64 [1] : vector<64x32xf32> to vector<64xf32>
    %148 = vector.shape_cast %147 : vector<64xf32> to vector<64x1xf32>
    %cst_65 = arith.constant 3.200000e+01 : f32
    %149 = vector.broadcast %cst_65 : f32 to vector<64x1xf32>
    %150 = arith.divf %148, %149 : vector<64x1xf32>
    %cst_66 = arith.constant 9.99999974E-6 : f32
    %151 = vector.broadcast %cst_66 : f32 to vector<64x1xf32>
    %152 = arith.addf %150, %151 : vector<64x1xf32>
    %153 = math.rsqrt %152 : vector<64x1xf32>
    %154 = vector.broadcast %153 : vector<64x1xf32> to vector<64x32xf32>
    %155 = arith.mulf %145, %154 : vector<64x32xf32>
    %156 = vector.broadcast %16 : vector<1x32xf32> to vector<64x32xf32>
    %157 = arith.mulf %155, %156 : vector<64x32xf32>
    %158 = vector.broadcast %17 : vector<1x32xf32> to vector<64x32xf32>
    %159 = arith.addf %157, %158 : vector<64x32xf32>
    %160 = arith.addf %1, %159 : vector<64x32xf32>
    %cst_67 = arith.constant dense<0.000000e+00> : vector<64x32xf32>
    %161 = tpu.matmul %3, %7, %cst_67 {dimension_numbers = #tpu.dot_dimension_numbers<[1], [0], [0], [1], [0, 0, 1, 1], [], []>} : vector<64x32xf32>, vector<32x32xf32>, vector<64x32xf32> -> vector<64x32xf32>
    %cst_68 = arith.constant dense<0.000000e+00> : vector<64x64xf32>
    %162 = tpu.matmul %160, %8, %cst_68 {dimension_numbers = #tpu.dot_dimension_numbers<[1], [0], [0], [1], [0, 0, 1, 1], [], []>} : vector<64x32xf32>, vector<32x64xf32>, vector<64x64xf32> -> vector<64x64xf32>
    %163 = vector.shape_cast %161 : vector<64x32xf32> to vector<1x64x32xf32>
    %164 = vector.extract_strided_slice %162 {offsets = [0, 0], sizes = [64, 32], strides = [1, 1]} : vector<64x64xf32> to vector<64x32xf32>
    %165 = vector.shape_cast %164 : vector<64x32xf32> to vector<1x64x32xf32>
    %166 = vector.extract_strided_slice %162 {offsets = [0, 32], sizes = [64, 32], strides = [1, 1]} : vector<64x64xf32> to vector<64x32xf32>
    %167 = vector.shape_cast %166 : vector<64x32xf32> to vector<1x64x32xf32>
    %cst_69 = arith.constant 0.000000e+00 : f32
    %168 = vector.broadcast %cst_69 : f32 to vector<64x32xf32>
    %169 = vector.extract_strided_slice %163 {offsets = [0, 0, 0], sizes = [1, 64, 8], strides = [1, 1, 1]} : vector<1x64x32xf32> to vector<1x64x8xf32>
    %170 = vector.extract_strided_slice %165 {offsets = [0, 0, 0], sizes = [1, 64, 8], strides = [1, 1, 1]} : vector<1x64x32xf32> to vector<1x64x8xf32>
    "tpu.trace_start"() <{level = 10 : i32, message = "bld,bsd->bls"}> : () -> ()
    %cst_70 = arith.constant dense<0.000000e+00> : vector<1x64x64xf32>
    %171 = tpu.matmul %169, %170, %cst_70 {dimension_numbers = #tpu.dot_dimension_numbers<[2], [2], [1], [1], [0, 0, 0, 1, 1, 1], [0], [0]>} : vector<1x64x8xf32>, vector<1x64x8xf32>, vector<1x64x64xf32> -> vector<1x64x64xf32>
    "tpu.trace_stop"() : () -> ()
    %172 = vector.broadcast %5 : vector<1x1x64xf32> to vector<1x64x64xf32>
    %173 = arith.addf %171, %172 : vector<1x64x64xf32>
    %cst_71 = arith.constant dense<0xFF800000> : vector<1x64xf32>
    %174 = vector.multi_reduction <maximumf>, %173, %cst_71 [2] : vector<1x64x64xf32> to vector<1x64xf32>
    %175 = vector.shape_cast %174 : vector<1x64xf32> to vector<1x64x1xf32>
    %176 = vector.broadcast %175 : vector<1x64x1xf32> to vector<1x64x64xf32>
    %177 = arith.subf %173, %176 : vector<1x64x64xf32>
    %178 = math.exp %177 : vector<1x64x64xf32>
    %cst_72 = arith.constant dense<0.000000e+00> : vector<1x64xf32>
    %179 = vector.multi_reduction <add>, %178, %cst_72 [2] : vector<1x64x64xf32> to vector<1x64xf32>
    %180 = vector.shape_cast %179 : vector<1x64xf32> to vector<1x64x1xf32>
    %cst_73 = arith.constant 1.000000e+00 : f32
    %181 = vector.broadcast %cst_73 : f32 to vector<1x64x1xf32>
    %182 = arith.divf %181, %180 : vector<1x64x1xf32>
    %183 = vector.broadcast %182 : vector<1x64x1xf32> to vector<1x64x64xf32>
    %184 = arith.mulf %178, %183 : vector<1x64x64xf32>
    %185 = vector.extract_strided_slice %167 {offsets = [0, 0, 0], sizes = [1, 64, 8], strides = [1, 1, 1]} : vector<1x64x32xf32> to vector<1x64x8xf32>
    "tpu.trace_start"() <{level = 10 : i32, message = "bls,bsd->bld"}> : () -> ()
    %cst_74 = arith.constant dense<0.000000e+00> : vector<1x64x8xf32>
    %186 = tpu.matmul %184, %185, %cst_74 {dimension_numbers = #tpu.dot_dimension_numbers<[2], [1], [1], [2], [0, 0, 0, 1, 1, 2], [0], [0]>} : vector<1x64x64xf32>, vector<1x64x8xf32>, vector<1x64x8xf32> -> vector<1x64x8xf32>
    "tpu.trace_stop"() : () -> ()
    %187 = vector.shape_cast %186 : vector<1x64x8xf32> to vector<64x8xf32>
    %188 = vector.extract_strided_slice %9 {offsets = [0, 0], sizes = [8, 32], strides = [1, 1]} : vector<32x32xf32> to vector<8x32xf32>
    %cst_75 = arith.constant dense<0.000000e+00> : vector<64x32xf32>
    %189 = tpu.matmul %187, %188, %cst_75 {dimension_numbers = #tpu.dot_dimension_numbers<[1], [0], [0], [1], [0, 0, 1, 1], [], []>} : vector<64x8xf32>, vector<8x32xf32>, vector<64x32xf32> -> vector<64x32xf32>
    %190 = arith.addf %168, %189 : vector<64x32xf32>
    %191 = vector.extract_strided_slice %163 {offsets = [0, 0, 8], sizes = [1, 64, 8], strides = [1, 1, 1]} : vector<1x64x32xf32> to vector<1x64x8xf32>
    %192 = vector.extract_strided_slice %165 {offsets = [0, 0, 8], sizes = [1, 64, 8], strides = [1, 1, 1]} : vector<1x64x32xf32> to vector<1x64x8xf32>
    "tpu.trace_start"() <{level = 10 : i32, message = "bld,bsd->bls"}> : () -> ()
    %cst_76 = arith.constant dense<0.000000e+00> : vector<1x64x64xf32>
    %193 = tpu.matmul %191, %192, %cst_76 {dimension_numbers = #tpu.dot_dimension_numbers<[2], [2], [1], [1], [0, 0, 0, 1, 1, 1], [0], [0]>} : vector<1x64x8xf32>, vector<1x64x8xf32>, vector<1x64x64xf32> -> vector<1x64x64xf32>
    "tpu.trace_stop"() : () -> ()
    %194 = vector.broadcast %5 : vector<1x1x64xf32> to vector<1x64x64xf32>
    %195 = arith.addf %193, %194 : vector<1x64x64xf32>
    %cst_77 = arith.constant dense<0xFF800000> : vector<1x64xf32>
    %196 = vector.multi_reduction <maximumf>, %195, %cst_77 [2] : vector<1x64x64xf32> to vector<1x64xf32>
    %197 = vector.shape_cast %196 : vector<1x64xf32> to vector<1x64x1xf32>
    %198 = vector.broadcast %197 : vector<1x64x1xf32> to vector<1x64x64xf32>
    %199 = arith.subf %195, %198 : vector<1x64x64xf32>
    %200 = math.exp %199 : vector<1x64x64xf32>
    %cst_78 = arith.constant dense<0.000000e+00> : vector<1x64xf32>
    %201 = vector.multi_reduction <add>, %200, %cst_78 [2] : vector<1x64x64xf32> to vector<1x64xf32>
    %202 = vector.shape_cast %201 : vector<1x64xf32> to vector<1x64x1xf32>
    %cst_79 = arith.constant 1.000000e+00 : f32
    %203 = vector.broadcast %cst_79 : f32 to vector<1x64x1xf32>
    %204 = arith.divf %203, %202 : vector<1x64x1xf32>
    %205 = vector.broadcast %204 : vector<1x64x1xf32> to vector<1x64x64xf32>
    %206 = arith.mulf %200, %205 : vector<1x64x64xf32>
    %207 = vector.extract_strided_slice %167 {offsets = [0, 0, 8], sizes = [1, 64, 8], strides = [1, 1, 1]} : vector<1x64x32xf32> to vector<1x64x8xf32>
    "tpu.trace_start"() <{level = 10 : i32, message = "bls,bsd->bld"}> : () -> ()
    %cst_80 = arith.constant dense<0.000000e+00> : vector<1x64x8xf32>
    %208 = tpu.matmul %206, %207, %cst_80 {dimension_numbers = #tpu.dot_dimension_numbers<[2], [1], [1], [2], [0, 0, 0, 1, 1, 2], [0], [0]>} : vector<1x64x64xf32>, vector<1x64x8xf32>, vector<1x64x8xf32> -> vector<1x64x8xf32>
    "tpu.trace_stop"() : () -> ()
    %209 = vector.shape_cast %208 : vector<1x64x8xf32> to vector<64x8xf32>
    %210 = vector.extract_strided_slice %9 {offsets = [8, 0], sizes = [8, 32], strides = [1, 1]} : vector<32x32xf32> to vector<8x32xf32>
    %cst_81 = arith.constant dense<0.000000e+00> : vector<64x32xf32>
    %211 = tpu.matmul %209, %210, %cst_81 {dimension_numbers = #tpu.dot_dimension_numbers<[1], [0], [0], [1], [0, 0, 1, 1], [], []>} : vector<64x8xf32>, vector<8x32xf32>, vector<64x32xf32> -> vector<64x32xf32>
    %212 = arith.addf %190, %211 : vector<64x32xf32>
    %213 = vector.extract_strided_slice %163 {offsets = [0, 0, 16], sizes = [1, 64, 8], strides = [1, 1, 1]} : vector<1x64x32xf32> to vector<1x64x8xf32>
    %214 = vector.extract_strided_slice %165 {offsets = [0, 0, 16], sizes = [1, 64, 8], strides = [1, 1, 1]} : vector<1x64x32xf32> to vector<1x64x8xf32>
    "tpu.trace_start"() <{level = 10 : i32, message = "bld,bsd->bls"}> : () -> ()
    %cst_82 = arith.constant dense<0.000000e+00> : vector<1x64x64xf32>
    %215 = tpu.matmul %213, %214, %cst_82 {dimension_numbers = #tpu.dot_dimension_numbers<[2], [2], [1], [1], [0, 0, 0, 1, 1, 1], [0], [0]>} : vector<1x64x8xf32>, vector<1x64x8xf32>, vector<1x64x64xf32> -> vector<1x64x64xf32>
    "tpu.trace_stop"() : () -> ()
    %216 = vector.broadcast %5 : vector<1x1x64xf32> to vector<1x64x64xf32>
    %217 = arith.addf %215, %216 : vector<1x64x64xf32>
    %cst_83 = arith.constant dense<0xFF800000> : vector<1x64xf32>
    %218 = vector.multi_reduction <maximumf>, %217, %cst_83 [2] : vector<1x64x64xf32> to vector<1x64xf32>
    %219 = vector.shape_cast %218 : vector<1x64xf32> to vector<1x64x1xf32>
    %220 = vector.broadcast %219 : vector<1x64x1xf32> to vector<1x64x64xf32>
    %221 = arith.subf %217, %220 : vector<1x64x64xf32>
    %222 = math.exp %221 : vector<1x64x64xf32>
    %cst_84 = arith.constant dense<0.000000e+00> : vector<1x64xf32>
    %223 = vector.multi_reduction <add>, %222, %cst_84 [2] : vector<1x64x64xf32> to vector<1x64xf32>
    %224 = vector.shape_cast %223 : vector<1x64xf32> to vector<1x64x1xf32>
    %cst_85 = arith.constant 1.000000e+00 : f32
    %225 = vector.broadcast %cst_85 : f32 to vector<1x64x1xf32>
    %226 = arith.divf %225, %224 : vector<1x64x1xf32>
    %227 = vector.broadcast %226 : vector<1x64x1xf32> to vector<1x64x64xf32>
    %228 = arith.mulf %222, %227 : vector<1x64x64xf32>
    %229 = vector.extract_strided_slice %167 {offsets = [0, 0, 16], sizes = [1, 64, 8], strides = [1, 1, 1]} : vector<1x64x32xf32> to vector<1x64x8xf32>
    "tpu.trace_start"() <{level = 10 : i32, message = "bls,bsd->bld"}> : () -> ()
    %cst_86 = arith.constant dense<0.000000e+00> : vector<1x64x8xf32>
    %230 = tpu.matmul %228, %229, %cst_86 {dimension_numbers = #tpu.dot_dimension_numbers<[2], [1], [1], [2], [0, 0, 0, 1, 1, 2], [0], [0]>} : vector<1x64x64xf32>, vector<1x64x8xf32>, vector<1x64x8xf32> -> vector<1x64x8xf32>
    "tpu.trace_stop"() : () -> ()
    %231 = vector.shape_cast %230 : vector<1x64x8xf32> to vector<64x8xf32>
    %232 = vector.extract_strided_slice %9 {offsets = [16, 0], sizes = [8, 32], strides = [1, 1]} : vector<32x32xf32> to vector<8x32xf32>
    %cst_87 = arith.constant dense<0.000000e+00> : vector<64x32xf32>
    %233 = tpu.matmul %231, %232, %cst_87 {dimension_numbers = #tpu.dot_dimension_numbers<[1], [0], [0], [1], [0, 0, 1, 1], [], []>} : vector<64x8xf32>, vector<8x32xf32>, vector<64x32xf32> -> vector<64x32xf32>
    %234 = arith.addf %212, %233 : vector<64x32xf32>
    %235 = vector.extract_strided_slice %163 {offsets = [0, 0, 24], sizes = [1, 64, 8], strides = [1, 1, 1]} : vector<1x64x32xf32> to vector<1x64x8xf32>
    %236 = vector.extract_strided_slice %165 {offsets = [0, 0, 24], sizes = [1, 64, 8], strides = [1, 1, 1]} : vector<1x64x32xf32> to vector<1x64x8xf32>
    "tpu.trace_start"() <{level = 10 : i32, message = "bld,bsd->bls"}> : () -> ()
    %cst_88 = arith.constant dense<0.000000e+00> : vector<1x64x64xf32>
    %237 = tpu.matmul %235, %236, %cst_88 {dimension_numbers = #tpu.dot_dimension_numbers<[2], [2], [1], [1], [0, 0, 0, 1, 1, 1], [0], [0]>} : vector<1x64x8xf32>, vector<1x64x8xf32>, vector<1x64x64xf32> -> vector<1x64x64xf32>
    "tpu.trace_stop"() : () -> ()
    %238 = vector.broadcast %5 : vector<1x1x64xf32> to vector<1x64x64xf32>
    %239 = arith.addf %237, %238 : vector<1x64x64xf32>
    %cst_89 = arith.constant dense<0xFF800000> : vector<1x64xf32>
    %240 = vector.multi_reduction <maximumf>, %239, %cst_89 [2] : vector<1x64x64xf32> to vector<1x64xf32>
    %241 = vector.shape_cast %240 : vector<1x64xf32> to vector<1x64x1xf32>
    %242 = vector.broadcast %241 : vector<1x64x1xf32> to vector<1x64x64xf32>
    %243 = arith.subf %239, %242 : vector<1x64x64xf32>
    %244 = math.exp %243 : vector<1x64x64xf32>
    %cst_90 = arith.constant dense<0.000000e+00> : vector<1x64xf32>
    %245 = vector.multi_reduction <add>, %244, %cst_90 [2] : vector<1x64x64xf32> to vector<1x64xf32>
    %246 = vector.shape_cast %245 : vector<1x64xf32> to vector<1x64x1xf32>
    %cst_91 = arith.constant 1.000000e+00 : f32
    %247 = vector.broadcast %cst_91 : f32 to vector<1x64x1xf32>
    %248 = arith.divf %247, %246 : vector<1x64x1xf32>
    %249 = vector.broadcast %248 : vector<1x64x1xf32> to vector<1x64x64xf32>
    %250 = arith.mulf %244, %249 : vector<1x64x64xf32>
    %251 = vector.extract_strided_slice %167 {offsets = [0, 0, 24], sizes = [1, 64, 8], strides = [1, 1, 1]} : vector<1x64x32xf32> to vector<1x64x8xf32>
    "tpu.trace_start"() <{level = 10 : i32, message = "bls,bsd->bld"}> : () -> ()
    %cst_92 = arith.constant dense<0.000000e+00> : vector<1x64x8xf32>
    %252 = tpu.matmul %250, %251, %cst_92 {dimension_numbers = #tpu.dot_dimension_numbers<[2], [1], [1], [2], [0, 0, 0, 1, 1, 2], [0], [0]>} : vector<1x64x64xf32>, vector<1x64x8xf32>, vector<1x64x8xf32> -> vector<1x64x8xf32>
    "tpu.trace_stop"() : () -> ()
    %253 = vector.shape_cast %252 : vector<1x64x8xf32> to vector<64x8xf32>
    %254 = vector.extract_strided_slice %9 {offsets = [24, 0], sizes = [8, 32], strides = [1, 1]} : vector<32x32xf32> to vector<8x32xf32>
    %cst_93 = arith.constant dense<0.000000e+00> : vector<64x32xf32>
    %255 = tpu.matmul %253, %254, %cst_93 {dimension_numbers = #tpu.dot_dimension_numbers<[1], [0], [0], [1], [0, 0, 1, 1], [], []>} : vector<64x8xf32>, vector<8x32xf32>, vector<64x32xf32> -> vector<64x32xf32>
    %256 = arith.addf %234, %255 : vector<64x32xf32>
    %cst_94 = arith.constant dense<0.000000e+00> : vector<64xf32>
    %257 = vector.multi_reduction <add>, %256, %cst_94 [1] : vector<64x32xf32> to vector<64xf32>
    %258 = vector.shape_cast %257 : vector<64xf32> to vector<64x1xf32>
    %cst_95 = arith.constant 3.200000e+01 : f32
    %259 = vector.broadcast %cst_95 : f32 to vector<64x1xf32>
    %260 = arith.divf %258, %259 : vector<64x1xf32>
    %261 = vector.broadcast %260 : vector<64x1xf32> to vector<64x32xf32>
    %262 = arith.subf %256, %261 : vector<64x32xf32>
    %263 = arith.mulf %262, %262 : vector<64x32xf32>
    %cst_96 = arith.constant dense<0.000000e+00> : vector<64xf32>
    %264 = vector.multi_reduction <add>, %263, %cst_96 [1] : vector<64x32xf32> to vector<64xf32>
    %265 = vector.shape_cast %264 : vector<64xf32> to vector<64x1xf32>
    %cst_97 = arith.constant 3.200000e+01 : f32
    %266 = vector.broadcast %cst_97 : f32 to vector<64x1xf32>
    %267 = arith.divf %265, %266 : vector<64x1xf32>
    %cst_98 = arith.constant 9.99999974E-6 : f32
    %268 = vector.broadcast %cst_98 : f32 to vector<64x1xf32>
    %269 = arith.addf %267, %268 : vector<64x1xf32>
    %270 = math.rsqrt %269 : vector<64x1xf32>
    %271 = vector.broadcast %270 : vector<64x1xf32> to vector<64x32xf32>
    %272 = arith.mulf %262, %271 : vector<64x32xf32>
    %273 = vector.broadcast %14 : vector<1x32xf32> to vector<64x32xf32>
    %274 = arith.mulf %272, %273 : vector<64x32xf32>
    %275 = vector.broadcast %15 : vector<1x32xf32> to vector<64x32xf32>
    %276 = arith.addf %274, %275 : vector<64x32xf32>
    %cst_99 = arith.constant dense<0.000000e+00> : vector<64x64xf32>
    %277 = tpu.matmul %3, %11, %cst_99 {dimension_numbers = #tpu.dot_dimension_numbers<[1], [0], [0], [1], [0, 0, 1, 1], [], []>} : vector<64x32xf32>, vector<32x64xf32>, vector<64x64xf32> -> vector<64x64xf32>
    %cst_100 = arith.constant dense<0.000000e+00> : vector<64x64xf32>
    %278 = tpu.matmul %276, %12, %cst_100 {dimension_numbers = #tpu.dot_dimension_numbers<[1], [0], [0], [1], [0, 0, 1, 1], [], []>} : vector<64x32xf32>, vector<32x64xf32>, vector<64x64xf32> -> vector<64x64xf32>
    %279 = arith.addf %277, %278 : vector<64x64xf32>
    %cst_101 = arith.constant 0.000000e+00 : f32
    %280 = vector.broadcast %cst_101 : f32 to vector<64x64xf32>
    %281 = arith.maximumf %279, %280 : vector<64x64xf32>
    %cst_102 = arith.constant dense<0.000000e+00> : vector<64x32xf32>
    %282 = tpu.matmul %281, %13, %cst_102 {dimension_numbers = #tpu.dot_dimension_numbers<[1], [0], [0], [1], [0, 0, 1, 1], [], []>} : vector<64x64xf32>, vector<64x32xf32>, vector<64x32xf32> -> vector<64x32xf32>
    %cst_103 = arith.constant dense<0.000000e+00> : vector<64xf32>
    %283 = vector.multi_reduction <add>, %282, %cst_103 [1] : vector<64x32xf32> to vector<64xf32>
    %284 = vector.shape_cast %283 : vector<64xf32> to vector<64x1xf32>
    %cst_104 = arith.constant 3.200000e+01 : f32
    %285 = vector.broadcast %cst_104 : f32 to vector<64x1xf32>
    %286 = arith.divf %284, %285 : vector<64x1xf32>
    %287 = vector.broadcast %286 : vector<64x1xf32> to vector<64x32xf32>
    %288 = arith.subf %282, %287 : vector<64x32xf32>
    %289 = arith.mulf %288, %288 : vector<64x32xf32>
    %cst_105 = arith.constant dense<0.000000e+00> : vector<64xf32>
    %290 = vector.multi_reduction <add>, %289, %cst_105 [1] : vector<64x32xf32> to vector<64xf32>
    %291 = vector.shape_cast %290 : vector<64xf32> to vector<64x1xf32>
    %cst_106 = arith.constant 3.200000e+01 : f32
    %292 = vector.broadcast %cst_106 : f32 to vector<64x1xf32>
    %293 = arith.divf %291, %292 : vector<64x1xf32>
    %cst_107 = arith.constant 9.99999974E-6 : f32
    %294 = vector.broadcast %cst_107 : f32 to vector<64x1xf32>
    %295 = arith.addf %293, %294 : vector<64x1xf32>
    %296 = math.rsqrt %295 : vector<64x1xf32>
    %297 = vector.broadcast %296 : vector<64x1xf32> to vector<64x32xf32>
    %298 = arith.mulf %288, %297 : vector<64x32xf32>
    %299 = vector.broadcast %16 : vector<1x32xf32> to vector<64x32xf32>
    %300 = arith.mulf %298, %299 : vector<64x32xf32>
    %301 = vector.broadcast %17 : vector<1x32xf32> to vector<64x32xf32>
    %302 = arith.addf %300, %301 : vector<64x32xf32>
    %303 = arith.addf %3, %302 : vector<64x32xf32>
    %304 = vector.shape_cast %160 : vector<64x32xf32> to vector<1x64x32xf32>
    %c0_108 = arith.constant 0 : index
    %c0_109 = arith.constant 0 : index
    %c0_110 = arith.constant 0 : index
    %305 = vector.load %arg13[%c0_108, %c0_109, %c0_110] : memref<1x64x32xf32, #tpu.memory_space<vmem>>, vector<1x64x32xf32>
    tpu.vector_store %arg13[%c0_108, %c0_109, %c0_110], %304 {strides = array<i32>} : memref<1x64x32xf32, #tpu.memory_space<vmem>>, vector<1x64x32xf32>,
    %306 = vector.shape_cast %303 : vector<64x32xf32> to vector<1x64x32xf32>
    %c0_111 = arith.constant 0 : index
    %c0_112 = arith.constant 0 : index
    %c0_113 = arith.constant 0 : index
    %307 = vector.load %arg14[%c0_111, %c0_112, %c0_113] : memref<1x64x32xf32, #tpu.memory_space<vmem>>, vector<1x64x32xf32>
    tpu.vector_store %arg14[%c0_111, %c0_112, %c0_113], %306 {strides = array<i32>} : memref<1x64x32xf32, #tpu.memory_space<vmem>>, vector<1x64x32xf32>,
    return
  }
  func.func @transform_0(%arg0: i32) -> (i32, i32, i32) {
    %c0_i32 = arith.constant 0 : i32
    %c0_i32_0 = arith.constant 0 : i32
    %c0_i32_1 = arith.constant 0 : i32
    return %arg0, %c0_i32, %c0_i32_0 : i32, i32, i32
  }
  func.func @transform_1(%arg0: i32) -> (i32, i32, i32) {
    %c0_i32 = arith.constant 0 : i32
    %c0_i32_0 = arith.constant 0 : i32
    %c0_i32_1 = arith.constant 0 : i32
    return %arg0, %c0_i32, %c0_i32_0 : i32, i32, i32
  }
  func.func @transform_2(%arg0: i32) -> (i32, i32, i32) {
    %c0_i32 = arith.constant 0 : i32
    %c0_i32_0 = arith.constant 0 : i32
    %c0_i32_1 = arith.constant 0 : i32
    return %arg0, %c0_i32, %c0_i32_0 : i32, i32, i32
  }
  func.func @transform_3(%arg0: i32) -> (i32, i32, i32) {
    %c0_i32 = arith.constant 0 : i32
    %c0_i32_0 = arith.constant 0 : i32
    %c0_i32_1 = arith.constant 0 : i32
    return %arg0, %c0_i32, %c0_i32_0 : i32, i32, i32
  }
  func.func @transform_4(%arg0: i32) -> (i32, i32) {
    %c0_i32 = arith.constant 0 : i32
    %c0_i32_0 = arith.constant 0 : i32
    %c0_i32_1 = arith.constant 0 : i32
    return %c0_i32, %c0_i32_0 : i32, i32
  }
  func.func @transform_5(%arg0: i32) -> (i32, i32) {
    %c0_i32 = arith.constant 0 : i32
    %c0_i32_0 = arith.constant 0 : i32
    %c0_i32_1 = arith.constant 0 : i32
    return %c0_i32, %c0_i32_0 : i32, i32
  }
  func.func @transform_6(%arg0: i32) -> (i32, i32) {
    %c0_i32 = arith.constant 0 : i32
    %c0_i32_0 = arith.constant 0 : i32
    %c0_i32_1 = arith.constant 0 : i32
    return %c0_i32, %c0_i32_0 : i32, i32
  }
  func.func @transform_7(%arg0: i32) -> (i32, i32) {
    %c0_i32 = arith.constant 0 : i32
    %c0_i32_0 = arith.constant 0 : i32
    %c0_i32_1 = arith.constant 0 : i32
    return %c0_i32, %c0_i32_0 : i32, i32
  }
  func.func @transform_8(%arg0: i32) -> (i32, i32) {
    %c0_i32 = arith.constant 0 : i32
    %c0_i32_0 = arith.constant 0 : i32
    %c0_i32_1 = arith.constant 0 : i32
    return %c0_i32, %c0_i32_0 : i32, i32
  }
  func.func @transform_9(%arg0: i32) -> (i32, i32) {
    %c0_i32 = arith.constant 0 : i32
    %c0_i32_0 = arith.constant 0 : i32
    %c0_i32_1 = arith.constant 0 : i32
    return %c0_i32, %c0_i32_0 : i32, i32
  }
  func.func @transform_10(%arg0: i32) -> (i32, i32) {
    %c0_i32 = arith.constant 0 : i32
    %c0_i32_0 = arith.constant 0 : i32
    %c0_i32_1 = arith.constant 0 : i32
    return %c0_i32, %c0_i32_0 : i32, i32
  }
  func.func @transform_11(%arg0: i32) -> (i32, i32) {
    %c0_i32 = arith.constant 0 : i32
    %c0_i32_0 = arith.constant 0 : i32
    %c0_i32_1 = arith.constant 0 : i32
    return %c0_i32, %c0_i32_0 : i32, i32
  }
  func.func @transform_12(%arg0: i32) -> (i32, i32, i32) {
    %c0_i32 = arith.constant 0 : i32
    %c0_i32_0 = arith.constant 0 : i32
    %c0_i32_1 = arith.constant 0 : i32
    return %arg0, %c0_i32, %c0_i32_0 : i32, i32, i32
  }
  func.func @transform_13(%arg0: i32) -> (i32, i32, i32) {
    %c0_i32 = arith.constant 0 : i32
    %c0_i32_0 = arith.constant 0 : i32
    %c0_i32_1 = arith.constant 0 : i32
    return %arg0, %c0_i32, %c0_i32_0 : i32, i32, i32
  }
}

</mosaic_0001>

<bundles_post_ra>
// kernel: tpu_custom_call.1
= control target key start
LH: loop header
LB: loop body
LE: loop exit
PB: predicated region body
PF: predicated region fallthrough
CT: control target
= control target key end

     0   :  { %s9661_s25 = smov 0   ;;  %s11635_s0 = inlined_call_operand.vmem [shape: f32[2,64,32], index: 0, kind: input, shape index: {}]   ;;  %s11636_s1 = inlined_call_operand.vmem [shape: f32[2,64,32], index: 1, kind: input, shape index: {}]   ;;  %s11637_s2 = inlined_call_operand.vmem [shape: f32[2,1,64], index: 2, kind: input, shape index: {}]   ;;  %s11638_s3 = inlined_call_operand.vmem [shape: f32[2,1,64], index: 3, kind: input, shape index: {}]   ;;  %s11639_s4 = inlined_call_operand.vmem [shape: f32[32,96], index: 4, kind: input, shape index: {}]   ;;  %s11640_s5 = inlined_call_operand.vmem [shape: f32[32,32], index: 5, kind: input, shape index: {}]   ;;  %s11641_s6 = inlined_call_operand.vmem [shape: f32[64,64], index: 6, kind: input, shape index: {}]   ;;  %s11642_s7 = inlined_call_operand.vmem [shape: f32[64,32], index: 7, kind: input, shape index: {}]   ;;  %s11643_s8 = inlined_call_operand.vmem [shape: f32[1,32], index: 8, kind: input, shape index: {}]   ;;  %s11644_s9 = inlined_call_operand.vmem [shape: f32[1,32], index: 9, kind: input, shape index: {}]   ;;  %s11645_s10 = inlined_call_operand.vmem [shape: f32[1,32], index: 10, kind: input, shape index: {}]   ;;  %s11646_s11 = inlined_call_operand.vmem [shape: f32[1,32], index: 11, kind: input, shape index: {}]   ;;  %s11647_s12 = inlined_call_operand.vmem [shape: f32[2,64,32], index: 12, kind: output, shape index: {0}]   ;;  %s11648_s13 = inlined_call_operand.vmem [shape: f32[2,64,32], index: 13, kind: output, shape index: {1}]  }
   0x1 LB: > { %s6844_s26 = sadd.s32 4294967295, %s9582_s25   ;;  %p6848_p0 = scmp.ge.s32.totalorder %s9582_s25, 1  ;;  %s9582_s25 = sphi %s9661_s25, %s24_s25  }
   0x2   : > { %p416_p1 = scmp.lt.s32.totalorder %s9582_s25, 3 }
   0x4   : > { %p417_p2 = pnand %p6848_p0, %p416_p1 }
   0x5   : > { %v520_v0 = vld [vmem:[%s11639_s4] sm:$0xff] (!%p417_p2)  ;;  %v521_v1 = vld [vmem:[%s11639_s4 + $0x8] sm:$0xff] (!%p417_p2)  ;;  %v522_v2 = vld [vmem:[%s11639_s4 + $0x10] sm:$0xff] (!%p417_p2)  ;;  %p476_p3 = scmp.lt.s32.totalorder (!%p417_p2), %s6844_s26, 1  ;;  %s9584_s18 = smov (!%p417_p2), 96   ;;  %vm548_vm0 = vcmask (!%p417_p2), 261120  }
   0x6   : > { %420 = sbr.rel (%p417_p2) target bundleno = 7125 (0x1bd5), region = 68  ;;  %v8932_v3 = vpack.i.bf16 (!%p417_p2), %v521_v1, %v520_v0  ;;  %v9678_v4 = vpack.c.bf16 (!%p417_p2), %v521_v1, %v520_v0  ;;  %v523_v5 = vld [vmem:[%s11639_s4 + $0x18] sm:$0xff] (!%p417_p2)  ;;  %vm829_vm1 = vcmask (!%p417_p2), 64512   ;;  %vm983_vm3 = vcmask (!%p417_p2), 523264   ;;  %s9585_s14 = smov (!%p417_p2), 120  }
   0x7   : > { %v9683_v6 = vpack.c.bf16 (!%p417_p2), %v523_v5, %v522_v2  ;;  %v8937_v7 = vpack.i.bf16 (!%p417_p2), %v523_v5, %v522_v2  ;;  %vm9768_vm2 = vmpackc.low (!%p417_p2), %vm829_vm1, %vm829_vm1  ;;  %s9586_s15 = smov (!%p417_p2), 112   ;;  %s9587_s16 = smov (!%p417_p2), 88  }
   0x8   : > { %8933 = vrot.lane.b32.xlu0 (!%p417_p2), %v8932_v3, %s9584_s18  ;;  %8438 = vmatprep.subr.bf16.mxu0 (!%p417_p2), %v9678_v4  ;;  %s11653_s17 = smov (!%p417_p2), 104   ;;  %s11651_s20 = smov (!%p417_p2), 80  }
   0x9   : > { %8440 = vmatpush3.bf16.msra.mxu0 (!%p417_p2), %v9678_v4  ;;  %s11649_s29 = smov (!%p417_p2), 72   ;;  %s11659_s24 = smov (!%p417_p2), 72  }
   0xa   : > { %8442 = vmatprep.subr.bf16.mxu0 (!%p417_p2), %v9683_v6 }
   0xc   : > { %8938 = vrot.lane.b32.xlu0 (!%p417_p2), %v8937_v7, %s9584_s18 }
   0xd   : > { %s11661_s26 = smov (!%p476_p3, %s6844_s26), 1  ;;  %8444 = vmatpush3.bf16.msra.mxu0 %v9683_v6 }
   0xe   : > { %s9690_s19 = sshll.u32 %s11661_s26, 6  ;;  %s9814_s30 = scalar_lea.vmem %s11637_s2, %s11661_s26 }
   0xf   : > { %s9697_s22 = scalar_lea.vmem %s11636_s1, %s9690_s19  ;;  %s9708_s27 = scalar_lea.vmem %s11635_s0, %s9690_s19  ;;  %v9817_v57 = vld [vmem:[%s9814_s30] ss:$0 sm:$0xff] }
  0x10   : > { %v510_v8 = vld [vmem:[%s9697_s22] sm:$0xff]  ;;  %v503_v10 = vld [vmem:[%s9708_s27 + $0x8] sm:$0xff]  ;;  %v504_v11 = vld [vmem:[%s9708_s27 + $0x10] sm:$0xff] }
  0x11   : > { %7689 = vmatprep.mubr.msk.f32.mxu1 %vm548_vm0, %v510_v8  ;;  %v502_v9 = vld [vmem:[%s9708_s27] sm:$0xff]  ;;  %v505_v12 = vld [vmem:[%s9708_s27 + $0x18] sm:$0xff]  ;;  %v507_v14 = vld [vmem:[%s9708_s27 + $0x28] sm:$0xff] }
  0x12   : > { %7669 = vmatprep.mubr.msk.f32.mxu0 %vm548_vm0, %v502_v9  ;;  %v506_v13 = vld [vmem:[%s9708_s27 + $0x20] sm:$0xff]  ;;  %v508_v15 = vld [vmem:[%s9708_s27 + $0x30] sm:$0xff]  ;;  %v509_v16 = vld [vmem:[%s9708_s27 + $0x38] sm:$0xff] }
  0x13   : > { %7670 = vmatmul.mubr.msk.f32.vlgmr.msra.gmra.mrb[0].mxu0 %vm548_vm0, %v503_v10  ;;  %v511_v25 = vld [vmem:[%s9697_s22 + $0x8] sm:$0xff]  ;;  %v512_v26 = vld [vmem:[%s9697_s22 + $0x10] sm:$0xff]  ;;  %v513_v27 = vld [vmem:[%s9697_s22 + $0x18] sm:$0xff] }
  0x14   : > { %7672 = vmatprep.mubr.msk.f32.mxu0 %vm548_vm0, %v504_v11  ;;  %v514_v28 = vld [vmem:[%s9697_s22 + $0x20] sm:$0xff]  ;;  %v515_v29 = vld [vmem:[%s9697_s22 + $0x28] sm:$0xff]  ;;  %v516_v30 = vld [vmem:[%s9697_s22 + $0x30] sm:$0xff] }
  0x15   : > { %v517_v31 = vld [vmem:[%s9697_s22 + $0x38] sm:$0xff] }
  0x17   : > { %7673 = vmatmul.mubr.msk.f32.gmra.mrb[2].mxu0 %vm548_vm0, %v505_v12 }
  0x18   : > { %7675 = vmatprep.mubr.msk.f32.mxu0 %vm548_vm0, %v506_v13 }
  0x1b   : > { %7676 = vmatmul.mubr.msk.f32.gmra.mrb[4].mxu0 %vm548_vm0, %v507_v14 }
  0x1c   : > { %7678 = vmatprep.mubr.msk.f32.mxu0 %vm548_vm0, %v508_v15 }
  0x1f   : > { %7679 = vmatmul.mubr.msk.f32.gmra.mrb[6].mxu0 %vm548_vm0, %v509_v16 }
  0x7a   : > { %v8934_v17 = vpop.permute.xlu0 %8933 }
  0x7b   : > { %v8936_v18 = vunpack.i.h.bf16 %v8934_v17  ;;  %v8935_v19 = vunpack.i.l.bf16 %v8934_v17 }
  0x7d   : > { %v9726_v20 = vpack.c.bf16 %v8936_v18, %v8935_v19 }
  0x7e   : > { %v8939_v21 = vpop.permute.xlu0 %8938 }
  0x7f   : > { %v8941_v22 = vunpack.i.h.bf16 %v8939_v21  ;;  %v8940_v23 = vunpack.i.l.bf16 %v8939_v21  ;;  %8446 = vmatprep.subr.bf16.mxu1 %v9726_v20 }
  0x80   : > { %8448 = vmatpush3.bf16.msra.mxu1 %v9726_v20 }
  0x81   : > { %v9730_v24 = vpack.c.bf16 %v8941_v22, %v8940_v23 }
  0x83   : > { %8450 = vmatprep.subr.bf16.mxu1 %v9730_v24 }
  0x84   : > { %8452 = vmatpush3.bf16.msra.mxu1 %v9730_v24 }
  0x87   : > { %7690 = vmatmul.mubr.msk.f32.vlgmr.msra.gmra.mrb[0].mxu1 %vm548_vm0, %v511_v25 }
  0x88   : > { %7692 = vmatprep.mubr.msk.f32.mxu1 %vm548_vm0, %v512_v26 }
  0x8b   : > { %7693 = vmatmul.mubr.msk.f32.gmra.mrb[2].mxu1 %vm548_vm0, %v513_v27 }
  0x8c   : > { %7695 = vmatprep.mubr.msk.f32.mxu1 %vm548_vm0, %v514_v28 }
  0x8f   : > { %7696 = vmatmul.mubr.msk.f32.gmra.mrb[4].mxu1 %vm548_vm0, %v515_v29 }
  0x90   : > { %7698 = vmatprep.mubr.msk.f32.mxu1 %vm548_vm0, %v516_v30 }
  0x93   : > { %7699 = vmatmul.mubr.msk.f32.gmra.mrb[6].mxu1 %vm548_vm0, %v517_v31 }
  0xe6   : > { %v9748_v32 = vpop.f32.mrb[0].mxu0 }
  0xe7   : > { %v9750_v33 = vpop.f32.mrb[1].mxu0 }
  0xe8   : > { %7717 = vmatprep.mubr.msk.f32.mxu0 %vm829_vm1, %v9750_v33 }
  0xea   : > { %v9754_v34 = vpop.f32.mrb[2].mxu0 }
  0xeb   : > { %v9756_v35 = vpop.f32.mrb[3].mxu0 }
  0xee   : > { %v9758_v36 = vpop.f32.mrb[4].mxu0 }
  0xef   : > { %v9760_v37 = vpop.f32.mrb[5].mxu0 }
  0xf2   : > { %v9762_v38 = vpop.f32.mrb[6].mxu0 }
  0xf3   : > { %v9764_v39 = vpop.f32.mrb[7].mxu0 }
 0x15a   : > { %v7691_v40 = vpop.f32.mrb[0].mxu1 }
 0x15b   : > { %v784_v41 = vpop.f32.mrb[1].mxu1 }
 0x15c   : > { %v8453_v43 = vpack.c.bf16 %v7691_v40, %v784_v41  ;;  %v9772_v44 = vpack.i.bf16 %v7691_v40, %v784_v41 }
 0x15e   : > { %8455 = vmatprep.subr.msk.bf16.mxu0 %vm9768_vm2, %v8453_v43  ;;  %v7694_v45 = vpop.f32.mrb[2].mxu1 }
 0x15f   : > { %8458 = vmatpush3.bf16.xpose.msk.msra.mxu0 %vm9768_vm2, %v8453_v43  ;;  %v794_v46 = vpop.f32.mrb[3].mxu1 }
 0x160   : > { %v8459_v47 = vpack.c.bf16 %v7694_v45, %v794_v46  ;;  %v9778_v48 = vpack.i.bf16 %v7694_v45, %v794_v46 }
 0x162   : > { %8461 = vmatprep.subr.msk.bf16.mxu0 %vm9768_vm2, %v8459_v47  ;;  %v7697_v49 = vpop.f32.mrb[4].mxu1 }
 0x163   : > { %v804_v50 = vpop.f32.mrb[5].mxu1 }
 0x164   : > { %v8465_v51 = vpack.c.bf16 %v7697_v49, %v804_v50  ;;  %v9782_v52 = vpack.i.bf16 %v7697_v49, %v804_v50 }
 0x166   : > { %v7700_v53 = vpop.f32.mrb[6].mxu1 }
 0x167   : > { %8464 = vmatpush3.bf16.xpose.msk.msra.mxu0 %vm9768_vm2, %v8459_v47  ;;  %v814_v54 = vpop.f32.mrb[7].mxu1 }
 0x168   : > { %8467 = vmatprep.subr.msk.bf16.mxu0 %vm9768_vm2, %v8465_v51  ;;  %v8471_v55 = vpack.c.bf16 %v7700_v53, %v814_v54  ;;  %v9788_v56 = vpack.i.bf16 %v7700_v53, %v814_v54 }
 0x16f   : > { %8470 = vmatpush3.bf16.xpose.msk.msra.mxu0 %vm9768_vm2, %v8465_v51 }
 0x170   : > { %8473 = vmatprep.subr.msk.bf16.mxu0 %vm9768_vm2, %v8471_v55 }
 0x177   : > { %8476 = vmatpush3.bf16.xpose.msk.msra.mxu0 %vm9768_vm2, %v8471_v55 }
 0x17e   : > { %7718 = vmatmul.mubr.msk.f32.vlgmr.msra.gmra.mrb[8].mxu0 %vm829_vm1, %v9748_v32 }
 0x17f   : > { %7720 = vmatprep.mubr.msk.f32.mxu0 %vm829_vm1, %v9756_v35 }
 0x182   : > { %7721 = vmatmul.mubr.msk.f32.gmra.mrb[10].mxu0 %vm829_vm1, %v9754_v34 }
 0x183   : > { %7723 = vmatprep.mubr.msk.f32.mxu0 %vm829_vm1, %v9760_v37 }
 0x186   : > { %7724 = vmatmul.mubr.msk.f32.gmra.mrb[12].mxu0 %vm829_vm1, %v9758_v36 }
 0x187   : > { %7726 = vmatprep.mubr.msk.f32.mxu0 %vm829_vm1, %v9764_v39 }
 0x18a   : > { %7727 = vmatmul.mubr.msk.f32.gmra.mrb[14].mxu0 %vm829_vm1, %v9762_v38 }
 0x251   : > { %v7719_v58 = vpop.f32.mrb[8].mxu0 }
 0x252   : > { %v950_v59 = vadd.f32 %v7719_v58, %v9817_v57  ;;  %v944_v60 = vpop.f32.mrb[9].mxu0 }
 0x253   : > { %v945_v61 = vadd.f32 %v9817_v57, %v944_v60 }
 0x254   : > { %v987_v62 = vsel %vm983_vm3, %v950_v59, -inf }
 0x255   : > { %988 = vmax.xlane.f32.xlu1 %v987_v62  ;;  %v7722_v63 = vpop.f32.mrb[10].mxu0  ;;  %v984_v3 = vsel %vm983_vm3, %v945_v61, -inf }
 0x256   : > { %v954_v0 = vpop.f32.mrb[11].mxu0  ;;  %v9824_v2 = vadd.f32 %v7722_v63, %v9817_v57 }
 0x257   : > { %v955_v1 = vadd.f32 %v9817_v57, %v954_v0 }
 0x258   : > { %v993_v9 = vsel %vm983_vm3, %v9824_v2, -inf }
 0x259   : > { %985 = vmax.xlane.f32.xlu1 %v984_v3  ;;  %v990_v5 = vsel %vm983_vm3, %v955_v1, -inf  ;;  %v7725_v7 = vpop.f32.mrb[12].mxu0 }
 0x25a   : > { %991 = vmax.xlane.f32.xlu0 %v990_v5  ;;  %v964_v8 = vpop.f32.mrb[13].mxu0  ;;  %v970_v12 = vadd.f32 %v7725_v7, %v9817_v57 }
 0x25b   : > { %v9838_v13 = vadd.f32 %v9817_v57, %v964_v8 }
 0x25c   : > { %v999_v14 = vsel %vm983_vm3, %v970_v12, -inf }
 0x25d   : > { %994 = vmax.xlane.f32.xlu1 %v993_v9  ;;  %v7728_v10 = vpop.f32.mrb[14].mxu0  ;;  %v996_v16 = vsel %vm983_vm3, %v9838_v13, -inf }
 0x25e   : > { %v974_v11 = vpop.f32.mrb[15].mxu0  ;;  %v9842_v15 = vadd.f32 %v7728_v10, %v9817_v57 }
 0x25f   : > { %v9847_v17 = vadd.f32 %v9817_v57, %v974_v11 }
 0x260   : > { %v1005_v18 = vsel %vm983_vm3, %v9842_v15, -inf }
 0x261   : > { %v1002_v19 = vsel %vm983_vm3, %v9847_v17, -inf }
 0x26e   : > { %8943 = vrot.lane.b32.xlu1 %v9772_v44, %s9584_s18 }
 0x270   : > { %8948 = vrot.lane.b32.xlu0 %v9778_v48, %s9584_s18 }
 0x272   : > { %8953 = vrot.lane.b32.xlu1 %v9782_v52, %s9584_s18 }
 0x296   : > { %1000 = vmax.xlane.f32.xlu1 %v999_v14 }
 0x29a   : > { %997 = vmax.xlane.f32.xlu1 %v996_v16 }
 0x29e   : > { %1006 = vmax.xlane.f32.xlu1 %v1005_v18 }
 0x2a2   : > { %1003 = vmax.xlane.f32.xlu1 %v1002_v19 }
 0x2b3   : > { %8958 = vrot.lane.b32.xlu1 %v9788_v56, %s9584_s18 }
 0x2e2   : > { %v989_v21 = vpop.xlane.xlu1 %988 }
 0x2e3   : > { %v1009_v22 = vsub.f32 %v950_v59, %v989_v21 }
 0x2e5   : > { %v1018_v23 = vmul.f32 1.442695, %v1009_v22 }
 0x2e6   : > { %v986_v25 = vpop.xlane.xlu1 %985 }
 0x2e7   : > { %9222 = vpow2.f32 %v1018_v23  ;;  %v1008_v26 = vsub.f32 %v945_v61, %v986_v25  ;;  %v992_v27 = vpop.xlane.xlu0 %991 }
 0x2e8   : > { %v1010_v28 = vsub.f32 %v955_v1, %v992_v27 }
 0x2e9   : > { %v1016_v29 = vmul.f32 1.442695, %v1008_v26 }
 0x2ea   : > { %v1020_v30 = vmul.f32 1.442695, %v1010_v28  ;;  %v995_v31 = vpop.xlane.xlu1 %994 }
 0x2eb   : > { %9224 = vpow2.f32 %v1016_v29  ;;  %v8949_v40 = vpop.permute.xlu0 %8948  ;;  %v1011_v0 = vsub.f32 %v9824_v2, %v995_v31 }
 0x2ec   : > { %9226 = vpow2.f32 %v1020_v30  ;;  %v8951_v43 = vunpack.i.h.bf16 %v8949_v40  ;;  %v8950_v45 = vunpack.i.l.bf16 %v8949_v40 }
 0x2ed   : > { %v1022_v1 = vmul.f32 1.442695, %v1011_v0 }
 0x2ee   : > { %v8944_v41 = vpop.permute.xlu1 %8943  ;;  %v8481_v58 = vpack.c.bf16 %v8951_v43, %v8950_v45 }
 0x2ef   : > { %v8946_v46 = vunpack.i.h.bf16 %v8944_v41  ;;  %v8945_v47 = vunpack.i.l.bf16 %v8944_v41  ;;  %9228 = vpow2.f32 %v1022_v1 }
 0x2f1   : > { %v9855_v49 = vpop.eup %9222  ;;  %v8477_v50 = vpack.c.bf16 %v8946_v46, %v8945_v47 }
 0x2f2   : > { %v8954_v51 = vpop.permute.xlu1 %8953  ;;  %v1035_v53 = vsel %vm983_vm3, %v9855_v49, 0.0 }
 0x2f3   : > { %v8956_v54 = vunpack.i.h.bf16 %v8954_v51  ;;  %v8955_v55 = vunpack.i.l.bf16 %v8954_v51  ;;  %1036 = vadd.xlane.f32.xlu1 %v1035_v53  ;;  %8478 = vmatprep.subr.bf16.mxu1 %v8477_v50 }
 0x2f4   : > { %8480 = vmatpush3.bf16.msra.mxu1 %v8477_v50 }
 0x2f5   : > { %v9859_v59 = vpop.eup %9224  ;;  %8482 = vmatprep.subr.bf16.mxu1 %v8481_v58  ;;  %v8485_v63 = vpack.c.bf16 %v8956_v54, %v8955_v55 }
 0x2f6   : > { %v9861_v60 = vpop.eup %9226  ;;  %v1032_v61 = vsel %vm983_vm3, %v9859_v59, 0.0 }
 0x2f7   : > { %1033 = vadd.xlane.f32.xlu1 %v1032_v61  ;;  %v1038_v62 = vsel %vm983_vm3, %v9861_v60, 0.0 }
 0x2f8   : > { %1039 = vadd.xlane.f32.xlu0 %v1038_v62  ;;  %8484 = vmatpush3.bf16.msra.mxu1 %v8481_v58 }
 0x2f9   : > { %8486 = vmatprep.subr.bf16.mxu1 %v8485_v63  ;;  %v9870_v9 = vpop.eup %9228 }
 0x2fa   : > { %v1041_v16 = vsel %vm983_vm3, %v9870_v9, 0.0 }
 0x2fc   : > { %8488 = vmatpush3.bf16.msra.mxu1 %v8485_v63 }
 0x308   : > { %8963 = vrot.lane.b32.xlu1 %v9772_v44, %s9585_s14 }
 0x323   : > { %v1001_v3 = vpop.xlane.xlu1 %1000 }
 0x324   : > { %v1013_v5 = vsub.f32 %v970_v12, %v1001_v3 }
 0x326   : > { %v1026_v7 = vmul.f32 1.442695, %v1013_v5 }
 0x327   : > { %v998_v8 = vpop.xlane.xlu1 %997 }
 0x328   : > { %9230 = vpow2.f32 %v1026_v7  ;;  %v1012_v10 = vsub.f32 %v9838_v13, %v998_v8 }
 0x32a   : > { %v1024_v11 = vmul.f32 1.442695, %v1012_v10 }
 0x32b   : > { %v1007_v14 = vpop.xlane.xlu1 %1006 }
 0x32c   : > { %9232 = vpow2.f32 %v1024_v11  ;;  %v1015_v18 = vsub.f32 %v9842_v15, %v1007_v14  ;;  %1042 = vadd.xlane.f32.xlu1 %v1041_v16 }
 0x32e   : > { %v1030_v2 = vmul.f32 1.442695, %v1015_v18 }
 0x32f   : > { %v1004_v19 = vpop.xlane.xlu1 %1003 }
 0x330   : > { %9234 = vpow2.f32 %v1030_v2  ;;  %v1014_v12 = vsub.f32 %v9847_v17, %v1004_v19 }
 0x332   : > { %v9877_v21 = vpop.eup %9230  ;;  %v1028_v22 = vmul.f32 1.442695, %v1014_v12 }
 0x333   : > { %v8959_v23 = vpop.permute.xlu1 %8958  ;;  %v1047_v13 = vsel %vm983_vm3, %v9877_v21, 0.0 }
 0x334   : > { %9236 = vpow2.f32 %v1028_v22  ;;  %v8961_v25 = vunpack.i.h.bf16 %v8959_v23  ;;  %v8960_v26 = vunpack.i.l.bf16 %v8959_v23  ;;  %1048 = vadd.xlane.f32.xlu0 %v1047_v13 }
 0x336   : > { %v9881_v27 = vpop.eup %9232  ;;  %v8489_v15 = vpack.c.bf16 %v8961_v25, %v8960_v26 }
 0x337   : > { %v1044_v28 = vsel %vm983_vm3, %v9881_v27, 0.0 }
 0x338   : > { %1045 = vadd.xlane.f32.xlu0 %v1044_v28  ;;  %8490 = vmatprep.subr.bf16.mxu1 %v8489_v15 }
 0x339   : > { %8492 = vmatpush3.bf16.msra.mxu1 %v8489_v15 }
 0x33a   : > { %v9885_v17 = vpop.eup %9234 }
 0x33b   : > { %v1053_v29 = vsel %vm983_vm3, %v9885_v17, 0.0 }
 0x33c   : > { %1054 = vadd.xlane.f32.xlu0 %v1053_v29 }
 0x33d   : > { %8973 = vrot.lane.b32.xlu1 %v9782_v52, %s9585_s14 }
 0x33e   : > { %v9891_v30 = vpop.eup %9236 }
 0x33f   : > { %v1050_v31 = vsel %vm983_vm3, %v9891_v30, 0.0 }
 0x340   : > { %1051 = vadd.xlane.f32.xlu0 %v1050_v31 }
 0x341   : > { %8978 = vrot.lane.b32.xlu1 %v9788_v56, %s9585_s14 }
 0x345   : > { %1233 = vrot.lane.b32.xlu1 %v9750_v33, %s9585_s14 }
 0x349   : > { %1235 = vrot.lane.b32.xlu1 %v9748_v32, %s9585_s14 }
 0x34d   : > { %1239 = vrot.lane.b32.xlu1 %v9754_v34, %s9585_s14 }
 0x351   : > { %1243 = vrot.lane.b32.xlu1 %v9758_v36, %s9585_s14 }
 0x355   : > { %1247 = vrot.lane.b32.xlu1 %v9762_v38, %s9585_s14 }
 0x356   : > { %8968 = vrot.lane.b32.xlu0 %v9778_v48, %s9585_s14 }
 0x359   : > { %8988 = vrot.lane.b32.xlu1 %v9778_v48, %s9586_s15 }
 0x35a   : > { %1237 = vrot.lane.b32.xlu0 %v9756_v35, %s9585_s14 }
 0x35d   : > { %8998 = vrot.lane.b32.xlu1 %v9788_v56, %s9586_s15 }
 0x35e   : > { %1241 = vrot.lane.b32.xlu0 %v9760_v37, %s9585_s14 }
 0x361   : > { %1911 = vrot.lane.b32.xlu1 %v9748_v32, %s9586_s15 }
 0x362   : > { %1245 = vrot.lane.b32.xlu0 %v9764_v39, %s9585_s14 }
 0x365   : > { %1915 = vrot.lane.b32.xlu1 %v9754_v34, %s9586_s15 }
 0x366   : > { %8983 = vrot.lane.b32.xlu0 %v9772_v44, %s9586_s15 }
 0x369   : > { %1919 = vrot.lane.b32.xlu1 %v9758_v36, %s9586_s15 }
 0x36a   : > { %8993 = vrot.lane.b32.xlu0 %v9782_v52, %s9586_s15 }
 0x36d   : > { %1923 = vrot.lane.b32.xlu1 %v9762_v38, %s9586_s15 }
 0x36e   : > { %1909 = vrot.lane.b32.xlu0 %v9750_v33, %s9586_s15 }
 0x372   : > { %1913 = vrot.lane.b32.xlu0 %v9756_v35, %s9586_s15 }
 0x376   : > { %1917 = vrot.lane.b32.xlu0 %v9760_v37, %s9586_s15 }
 0x37a   : > { %1921 = vrot.lane.b32.xlu0 %v9764_v39, %s9586_s15 }
 0x380   : > { %v1037_v40 = vpop.xlane.xlu1 %1036 }
 0x381   : > { %9238 = vrcp.f32 %v1037_v40 }
 0x384   : > { %v1034_v41 = vpop.xlane.xlu1 %1033 }
 0x385   : > { %9240 = vrcp.f32 %v1034_v41  ;;  %v1040_v43 = vpop.xlane.xlu0 %1039 }
 0x386   : > { %9242 = vrcp.f32 %v1040_v43 }
 0x388   : > { %v8964_v45 = vpop.permute.xlu1 %8963 }
 0x389   : > { %v8966_v46 = vunpack.i.h.bf16 %v8964_v45  ;;  %v8965_v47 = vunpack.i.l.bf16 %v8964_v45 }
 0x38b   : > { %v8493_v50 = vpack.c.bf16 %v8966_v46, %v8965_v47  ;;  %v9239_v51 = vpop.eup %9238 }
 0x38c   : > { %v1073_v58 = vmul.f32 %v9239_v51, %v9855_v49 }
 0x38d   : > { %8495 = vmatprep.subr.msk.bf16.mxu1 %vm9768_vm2, %v8493_v50 }
 0x38f   : > { %v9241_v53 = vpop.eup %9240 }
 0x390   : > { %v9243_v54 = vpop.eup %9242  ;;  %v1072_v55 = vmul.f32 %v9241_v53, %v9859_v59 }
 0x391   : > { %v1074_v61 = vmul.f32 %v9243_v54, %v9861_v60 }
 0x392   : > { %7745 = vmatprep.mubr.msk.f32.mxu1 %vm983_vm3, %v1072_v55 }
 0x393   : > { %7746 = vmatmul.mubr.msk.f32.vlgmr.msra.gmra.mrb[8].mxu1 %vm983_vm3, %v1073_v58 }
 0x394   : > { %8498 = vmatpush3.bf16.xpose.msk.msra.mxu1 %vm9768_vm2, %v8493_v50  ;;  %7748 = vmatprep.mubr.msk.f32.mxu1 %vm983_vm3, %v1074_v61 }
 0x3b9   : > { %v1043_v62 = vpop.xlane.xlu1 %1042 }
 0x3ba   : > { %9244 = vrcp.f32 %v1043_v62 }
 0x3bd   : > { %v8974_v63 = vpop.permute.xlu1 %8973 }
 0x3be   : > { %v8976_v14 = vunpack.i.h.bf16 %v8974_v63  ;;  %v8975_v2 = vunpack.i.l.bf16 %v8974_v63 }
 0x3c0   : > { %v8505_v25 = vpack.c.bf16 %v8976_v14, %v8975_v2 }
 0x3c1   : > { %v1049_v0 = vpop.xlane.xlu0 %1048  ;;  %v8979_v1 = vpop.permute.xlu1 %8978 }
 0x3c2   : > { %9246 = vrcp.f32 %v1049_v0  ;;  %v8981_v28 = vunpack.i.h.bf16 %v8979_v1  ;;  %v8980_v29 = vunpack.i.l.bf16 %v8979_v1 }
 0x3c4   : > { %v9245_v3 = vpop.eup %9244  ;;  %v8511_v43 = vpack.c.bf16 %v8981_v28, %v8980_v29 }
 0x3c5   : > { %v1046_v59 = vpop.xlane.xlu0 %1045  ;;  %v1075_v49 = vmul.f32 %v9245_v3, %v9870_v9  ;;  %v1234_v60 = vpop.permute.xlu1 %1233 }
 0x3c6   : > { %9248 = vrcp.f32 %v1046_v59 }
 0x3c7   : > { %7749 = vmatmul.mubr.msk.f32.gmra.mrb[10].mxu1 %vm983_vm3, %v1075_v49 }
 0x3c9   : > { %v1055_v5 = vpop.xlane.xlu0 %1054  ;;  %v1236_v10 = vpop.permute.xlu1 %1235 }
 0x3ca   : > { %9250 = vrcp.f32 %v1055_v5 }
 0x3cc   : > { %v9247_v8 = vpop.eup %9246 }
 0x3cd   : > { %v1052_v7 = vpop.xlane.xlu0 %1051  ;;  %v1077_v9 = vmul.f32 %v9247_v8, %v9877_v21  ;;  %v1240_v23 = vpop.permute.xlu1 %1239 }
 0x3ce   : > { %9252 = vrcp.f32 %v1052_v7 }
 0x3d0   : > { %v9249_v11 = vpop.eup %9248 }
 0x3d1   : > { %v8969_v16 = vpop.permute.xlu0 %8968  ;;  %v1076_v18 = vmul.f32 %v9249_v11, %v9881_v27  ;;  %v1244_v40 = vpop.permute.xlu1 %1243 }
 0x3d2   : > { %v8971_v19 = vunpack.i.h.bf16 %v8969_v16  ;;  %v8970_v12 = vunpack.i.l.bf16 %v8969_v16 }
 0x3d3   : > { %7751 = vmatprep.mubr.msk.f32.mxu1 %vm983_vm3, %v1076_v18 }
 0x3d4   : > { %v8499_v22 = vpack.c.bf16 %v8971_v19, %v8970_v12  ;;  %7752 = vmatmul.mubr.msk.f32.gmra.mrb[12].mxu1 %vm983_vm3, %v1077_v9  ;;  %v9251_v26 = vpop.eup %9250 }
 0x3d5   : > { %v1238_v13 = vpop.permute.xlu0 %1237  ;;  %v1079_v31 = vmul.f32 %v9251_v26, %v9885_v17 }
 0x3d6   : > { %8501 = vmatprep.subr.msk.bf16.mxu1 %vm9768_vm2, %v8499_v22 }
 0x3d7   : > { %8504 = vmatpush3.bf16.xpose.msk.msra.mxu1 %vm9768_vm2, %v8499_v22 }
 0x3d8   : > { %v9253_v27 = vpop.eup %9252  ;;  %8507 = vmatprep.subr.msk.bf16.mxu1 %vm9768_vm2, %v8505_v25 }
 0x3d9   : > { %v1242_v21 = vpop.permute.xlu0 %1241  ;;  %v1078_v15 = vmul.f32 %v9253_v27, %v9891_v30  ;;  %v1248_v30 = vpop.permute.xlu1 %1247 }
 0x3db   : > { %7754 = vmatprep.mubr.msk.f32.mxu1 %vm983_vm3, %v1078_v15 }
 0x3dc   : > { %7755 = vmatmul.mubr.msk.f32.gmra.mrb[14].mxu1 %vm983_vm3, %v1079_v31 }
 0x3dd   : > { %v1246_v41 = vpop.permute.xlu0 %1245  ;;  %7773 = vmatprep.mubr.msk.f32.mxu1 %vm829_vm1, %v1234_v60  ;;  %v8989_v50 = vpop.permute.xlu1 %8988 }
 0x3de   : > { %v8991_v51 = vunpack.i.h.bf16 %v8989_v50  ;;  %v8990_v53 = vunpack.i.l.bf16 %v8989_v50 }
 0x3df   : > { %8510 = vmatpush3.bf16.xpose.msk.msra.mxu1 %vm9768_vm2, %v8505_v25 }
 0x3e0   : > { %8513 = vmatprep.subr.msk.bf16.mxu1 %vm9768_vm2, %v8511_v43  ;;  %v8539_v54 = vpack.c.bf16 %v8991_v51, %v8990_v53 }
 0x3e1   : > { %v8984_v45 = vpop.permute.xlu0 %8983  ;;  %v8999_v63 = vpop.permute.xlu1 %8998 }
 0x3e2   : > { %v8986_v46 = vunpack.i.h.bf16 %v8984_v45  ;;  %v8985_v47 = vunpack.i.l.bf16 %v8984_v45  ;;  %v9001_v0 = vunpack.i.h.bf16 %v8999_v63  ;;  %v9000_v1 = vunpack.i.l.bf16 %v8999_v63 }
 0x3e4   : > { %v8533_v17 = vpack.c.bf16 %v8986_v46, %v8985_v47  ;;  %v8551_v59 = vpack.c.bf16 %v9001_v0, %v9000_v1 }
 0x3e5   : > { %v8994_v55 = vpop.permute.xlu0 %8993  ;;  %v1912_v49 = vpop.permute.xlu1 %1911 }
 0x3e6   : > { %v8996_v58 = vunpack.i.h.bf16 %v8994_v55  ;;  %v8995_v61 = vunpack.i.l.bf16 %v8994_v55 }
 0x3e7   : > { %8516 = vmatpush3.bf16.xpose.msk.msra.mxu1 %vm9768_vm2, %v8511_v43 }
 0x3e8   : > { %8535 = vmatprep.subr.msk.bf16.mxu1 %vm9768_vm2, %v8533_v17  ;;  %v8545_v62 = vpack.c.bf16 %v8996_v58, %v8995_v61 }
 0x3e9   : > { %v1910_v3 = vpop.permute.xlu0 %1909  ;;  %v1916_v5 = vpop.permute.xlu1 %1915 }
 0x3ed   : > { %v1914_v60 = vpop.permute.xlu0 %1913  ;;  %v1920_v8 = vpop.permute.xlu1 %1919 }
 0x3ee   : > { %7774 = vmatmul.mubr.msk.f32.vlgmr.msra.gmra.mrb[16].mxu1 %vm829_vm1, %v1236_v10 }
 0x3ef   : > { %7776 = vmatprep.mubr.msk.f32.mxu1 %vm829_vm1, %v1238_v13  ;;  %8538 = vmatpush3.bf16.xpose.msk.msra.mxu1 %vm9768_vm2, %v8533_v17 }
 0x3f0   : > { %8541 = vmatprep.subr.msk.bf16.mxu1 %vm9768_vm2, %v8539_v54 }
 0x3f1   : > { %v1918_v7 = vpop.permute.xlu0 %1917  ;;  %v1924_v11 = vpop.permute.xlu1 %1923 }
 0x3f2   : > { %7777 = vmatmul.mubr.msk.f32.gmra.mrb[18].mxu1 %vm829_vm1, %v1240_v23 }
 0x3f3   : > { %7779 = vmatprep.mubr.msk.f32.mxu1 %vm829_vm1, %v1242_v21 }
 0x3f5   : > { %v1922_v10 = vpop.permute.xlu0 %1921 }
 0x3f6   : > { %7780 = vmatmul.mubr.msk.f32.gmra.mrb[20].mxu1 %vm829_vm1, %v1244_v40 }
 0x3f7   : > { %7782 = vmatprep.mubr.msk.f32.mxu1 %vm829_vm1, %v1246_v41  ;;  %8544 = vmatpush3.bf16.xpose.msk.msra.mxu1 %vm9768_vm2, %v8539_v54 }
 0x3f8   : > { %8547 = vmatprep.subr.msk.bf16.mxu1 %vm9768_vm2, %v8545_v62 }
 0x3fa   : > { %7783 = vmatmul.mubr.msk.f32.gmra.mrb[22].mxu1 %vm829_vm1, %v1248_v30 }
 0x3fb   : > { %7857 = vmatprep.mubr.msk.f32.mxu1 %vm829_vm1, %v1910_v3 }
 0x3ff   : > { %8550 = vmatpush3.bf16.xpose.msk.msra.mxu1 %vm9768_vm2, %v8545_v62 }
 0x400   : > { %8553 = vmatprep.subr.msk.bf16.mxu1 %vm9768_vm2, %v8551_v59 }
 0x407   : > { %8556 = vmatpush3.bf16.xpose.msk.msra.mxu1 %vm9768_vm2, %v8551_v59 }
 0x40e   : > { %7858 = vmatmul.mubr.msk.f32.vlgmr.msra.gmra.mrb[24].mxu1 %vm829_vm1, %v1912_v49 }
 0x40f   : > { %7860 = vmatprep.mubr.msk.f32.mxu1 %vm829_vm1, %v1914_v60 }
 0x412   : > { %7861 = vmatmul.mubr.msk.f32.gmra.mrb[26].mxu1 %vm829_vm1, %v1916_v5 }
 0x413   : > { %7863 = vmatprep.mubr.msk.f32.mxu1 %vm829_vm1, %v1918_v7 }
 0x416   : > { %7864 = vmatmul.mubr.msk.f32.gmra.mrb[28].mxu1 %vm829_vm1, %v1920_v8 }
 0x417   : > { %7866 = vmatprep.mubr.msk.f32.mxu1 %vm829_vm1, %v1922_v10 }
 0x41a   : > { %7867 = vmatmul.mubr.msk.f32.gmra.mrb[30].mxu1 %vm829_vm1, %v1924_v11 }
 0x466   : > { %v10003_v14 = vpop.f32.mrb[8].mxu1 }
 0x467   : > { %v10005_v16 = vpop.f32.mrb[9].mxu1 }
 0x49a   : > { %v10007_v18 = vpop.f32.mrb[10].mxu1 }
 0x49b   : > { %v10009_v2 = vpop.f32.mrb[11].mxu1 }
 0x4a7   : > { %v10011_v19 = vpop.f32.mrb[12].mxu1 }
 0x4a8   : > { %v10013_v12 = vpop.f32.mrb[13].mxu1 }
 0x4af   : > { %v10015_v9 = vpop.f32.mrb[14].mxu1 }
 0x4b0   : > { %v10017_v22 = vpop.f32.mrb[15].mxu1 }
 0x4c1   : > { %v7775_v23 = vpop.f32.mrb[16].mxu1 }
 0x4c2   : > { %v1369_v13 = vadd.f32 %v7775_v23, %v9817_v57  ;;  %v1363_v25 = vpop.f32.mrb[17].mxu1 }
 0x4c3   : > { %v1364_v26 = vadd.f32 %v9817_v57, %v1363_v25 }
 0x4c4   : > { %v1405_v27 = vsel %vm983_vm3, %v1369_v13, -inf }
 0x4c5   : > { %1406 = vmax.xlane.f32.xlu1 %v1405_v27  ;;  %v7778_v21 = vpop.f32.mrb[18].mxu1  ;;  %v1402_v15 = vsel %vm983_vm3, %v1364_v26, -inf }
 0x4c6   : > { %v1373_v28 = vpop.f32.mrb[19].mxu1  ;;  %1403 = vmax.xlane.f32.xlu0 %v1402_v15  ;;  %v1379_v31 = vadd.f32 %v7778_v21, %v9817_v57 }
 0x4c7   : > { %v1374_v29 = vadd.f32 %v9817_v57, %v1373_v28 }
 0x4c8   : > { %v1411_v17 = vsel %vm983_vm3, %v1379_v31, -inf }
 0x4c9   : > { %v7781_v40 = vpop.f32.mrb[20].mxu1  ;;  %v1408_v41 = vsel %vm983_vm3, %v1374_v29, -inf }
 0x4ca   : > { %v1383_v43 = vpop.f32.mrb[21].mxu1  ;;  %1409 = vmax.xlane.f32.xlu0 %v1408_v41  ;;  %v1389_v45 = vadd.f32 %v7781_v40, %v9817_v57 }
 0x4cb   : > { %v1384_v30 = vadd.f32 %v9817_v57, %v1383_v43 }
 0x4cc   : > { %v1417_v55 = vsel %vm983_vm3, %v1389_v45, -inf }
 0x4cd   : > { %v7784_v46 = vpop.f32.mrb[22].mxu1  ;;  %v1414_v47 = vsel %vm983_vm3, %v1384_v30, -inf }
 0x4ce   : > { %v1393_v50 = vpop.f32.mrb[23].mxu1  ;;  %1415 = vmax.xlane.f32.xlu1 %v1414_v47  ;;  %1412 = vmax.xlane.f32.xlu0 %v1411_v17  ;;  %v1399_v53 = vadd.f32 %v7784_v46, %v9817_v57 }
 0x4cf   : > { %v1394_v51 = vadd.f32 %v9817_v57, %v1393_v50 }
 0x4d0   : > { %v1423_v58 = vsel %vm983_vm3, %v1399_v53, -inf }
 0x4d1   : > { %v1420_v54 = vsel %vm983_vm3, %v1394_v51, -inf }
 0x4d2   : > { %1421 = vmax.xlane.f32.xlu1 %v1420_v54  ;;  %1418 = vmax.xlane.f32.xlu0 %v1417_v55 }
 0x4d6   : > { %1424 = vmax.xlane.f32.xlu0 %v1423_v58 }
 0x4e1   : > { %v10035_v61 = vpop.f32.mrb[24].mxu1 }
 0x4e2   : > { %v10037_v62 = vpop.f32.mrb[25].mxu1 }
 0x4e3   : > { %9003 = vrot.lane.b32.xlu1 %v9772_v44, %s9587_s16 }
 0x4e5   : > { %v10041_v63 = vpop.f32.mrb[26].mxu1 }
 0x4e6   : > { %v10043_v0 = vpop.f32.mrb[27].mxu1 }
 0x4e9   : > { %v10045_v1 = vpop.f32.mrb[28].mxu1 }
 0x4ea   : > { %v10047_v3 = vpop.f32.mrb[29].mxu1 }
 0x4ed   : > { %v10049_v59 = vpop.f32.mrb[30].mxu1 }
 0x4ee   : > { %v10051_v49 = vpop.f32.mrb[31].mxu1 }
 0x552   : > { %v1407_v60 = vpop.xlane.xlu1 %1406 }
 0x553   : > { %v1427_v5 = vsub.f32 %v1369_v13, %v1407_v60  ;;  %v1404_v7 = vpop.xlane.xlu0 %1403 }
 0x554   : > { %v1426_v8 = vsub.f32 %v1364_v26, %v1404_v7 }
 0x555   : > { %v1436_v10 = vmul.f32 1.442695, %v1427_v5 }
 0x556   : > { %v1434_v11 = vmul.f32 1.442695, %v1426_v8 }
 0x557   : > { %9254 = vpow2.f32 %v1436_v10  ;;  %v1410_v23 = vpop.xlane.xlu0 %1409 }
 0x558   : > { %9256 = vpow2.f32 %v1434_v11  ;;  %v1428_v25 = vsub.f32 %v1374_v29, %v1410_v23 }
 0x55a   : > { %v1438_v27 = vmul.f32 1.442695, %v1428_v25 }
 0x55b   : > { %v1416_v21 = vpop.xlane.xlu1 %1415  ;;  %v1413_v15 = vpop.xlane.xlu0 %1412 }
 0x55c   : > { %9258 = vpow2.f32 %v1438_v27  ;;  %v1430_v28 = vsub.f32 %v1384_v30, %v1416_v21  ;;  %v1429_v40 = vsub.f32 %v1379_v31, %v1413_v15 }
 0x55e   : > { %v1442_v41 = vmul.f32 1.442695, %v1430_v28  ;;  %v1440_v43 = vmul.f32 1.442695, %v1429_v40 }
 0x55f   : > { %v1422_v46 = vpop.xlane.xlu1 %1421  ;;  %v1419_v47 = vpop.xlane.xlu0 %1418 }
 0x560   : > { %9260 = vpow2.f32 %v1442_v41  ;;  %v1431_v13 = vsub.f32 %v1389_v45, %v1419_v47  ;;  %v1432_v54 = vsub.f32 %v1394_v51, %v1422_v46 }
 0x561   : > { %v10053_v17 = vpop.eup %9254  ;;  %9262 = vpow2.f32 %v1440_v43 }
 0x562   : > { %v10055_v26 = vpop.eup %9256  ;;  %v1444_v50 = vmul.f32 1.442695, %v1431_v13  ;;  %v1453_v29 = vsel %vm983_vm3, %v10053_v17, 0.0  ;;  %v1446_v10 = vmul.f32 1.442695, %v1432_v54 }
 0x563   : > { %v9004_v55 = vpop.permute.xlu1 %9003  ;;  %1454 = vadd.xlane.f32.xlu0 %v1453_v29  ;;  %v1425_v30 = vpop.xlane.xlu0 %1424  ;;  %v1450_v31 = vsel %vm983_vm3, %v10055_v26, 0.0 }
 0x564   : > { %v9006_v58 = vunpack.i.h.bf16 %v9004_v55  ;;  %v9005_v60 = vunpack.i.l.bf16 %v9004_v55  ;;  %v1433_v5 = vsub.f32 %v1399_v53, %v1425_v30  ;;  %1451 = vadd.xlane.f32.xlu1 %v1450_v31  ;;  %9264 = vpow2.f32 %v1444_v50 }
 0x566   : > { %v10061_v45 = vpop.eup %9258  ;;  %v1448_v7 = vmul.f32 1.442695, %v1433_v5  ;;  %v8517_v8 = vpack.c.bf16 %v9006_v58, %v9005_v60 }
 0x567   : > { %v1456_v11 = vsel %vm983_vm3, %v10061_v45, 0.0 }
 0x568   : > { %9266 = vpow2.f32 %v1448_v7  ;;  %8518 = vmatprep.subr.bf16.mxu0 %v8517_v8  ;;  %1457 = vadd.xlane.f32.xlu1 %v1456_v11 }
 0x569   : > { %8520 = vmatpush3.bf16.msra.mxu0 %v8517_v8  ;;  %9268 = vpow2.f32 %v1446_v10 }
 0x56a   : > { %v10065_v51 = vpop.eup %9260 }
 0x56b   : > { %v10067_v23 = vpop.eup %9262  ;;  %v1462_v53 = vsel %vm983_vm3, %v10065_v51, 0.0 }
 0x56c   : > { %1463 = vadd.xlane.f32.xlu1 %v1462_v53  ;;  %v1459_v25 = vsel %vm983_vm3, %v10067_v23, 0.0 }
 0x56d   : > { %1460 = vadd.xlane.f32.xlu0 %v1459_v25 }
 0x56e   : > { %v10073_v27 = vpop.eup %9264 }
 0x56f   : > { %v1465_v21 = vsel %vm983_vm3, %v10073_v27, 0.0 }
 0x571   : > { %1466 = vadd.xlane.f32.xlu0 %v1465_v21 }
 0x572   : > { %v10077_v15 = vpop.eup %9266 }
 0x573   : > { %v1471_v28 = vsel %vm983_vm3, %v10077_v15, 0.0  ;;  %v10081_v40 = vpop.eup %9268 }
 0x574   : > { %v1468_v41 = vsel %vm983_vm3, %v10081_v40, 0.0 }
 0x575   : > { %1472 = vadd.xlane.f32.xlu0 %v1471_v28 }
 0x579   : > { %1469 = vadd.xlane.f32.xlu0 %v1468_v41 }
 0x57d   : > { %9013 = vrot.lane.b32.xlu1 %v9782_v52, %s9587_s16 }
 0x581   : > { %9018 = vrot.lane.b32.xlu1 %v9788_v56, %s9587_s16 }
 0x585   : > { %9023 = vrot.lane.b32.xlu1 %v9772_v44, %s11653_s17 }
 0x589   : > { %9028 = vrot.lane.b32.xlu1 %v9778_v48, %s11653_s17 }
 0x58d   : > { %9038 = vrot.lane.b32.xlu1 %v9788_v56, %s11653_s17 }
 0x58f   : > { %9008 = vrot.lane.b32.xlu0 %v9778_v48, %s9587_s16 }
 0x591   : > { %2466 = vrot.lane.b32.xlu1 %v9748_v32, %s11653_s17  ;;  %v10117_v32 = vadd.f32 %v10035_v61, %v9817_v57  ;;  %v10143_v61 = vadd.f32 %v10041_v63, %v9817_v57  ;;  %v10157_v63 = vadd.f32 %v10049_v59, %v9817_v57 }
 0x593   : > { %9033 = vrot.lane.b32.xlu0 %v9782_v52, %s11653_s17  ;;  %v2099_v46 = vsel %vm983_vm3, %v10157_v63, -inf }
 0x595   : > { %2470 = vrot.lane.b32.xlu1 %v9754_v34, %s11653_s17  ;;  %v10125_v34 = vadd.f32 %v9817_v57, %v10047_v3  ;;  %v10151_v3 = vadd.f32 %v10045_v1, %v9817_v57 }
 0x597   : > { %2464 = vrot.lane.b32.xlu0 %v9750_v33, %s11653_s17  ;;  %v10121_v33 = vadd.f32 %v9817_v57, %v10037_v62  ;;  %v2093_v43 = vsel %vm983_vm3, %v10151_v3, -inf }
 0x599   : > { %2474 = vrot.lane.b32.xlu1 %v9758_v36, %s11653_s17  ;;  %v10131_v36 = vadd.f32 %v9817_v57, %v10043_v0 }
 0x59b   : > { %2468 = vrot.lane.b32.xlu0 %v9756_v35, %s11653_s17  ;;  %v2081_v35 = vsel %vm983_vm3, %v10117_v32, -inf  ;;  %v2084_v62 = vsel %vm983_vm3, %v10131_v36, -inf }
 0x59d   : > { %2478 = vrot.lane.b32.xlu1 %v9762_v38, %s11653_s17  ;;  %v10137_v38 = vadd.f32 %v9817_v57, %v10051_v49  ;;  %v2087_v49 = vsel %vm983_vm3, %v10143_v61, -inf }
 0x59f   : > { %2472 = vrot.lane.b32.xlu0 %v9760_v37, %s11653_s17  ;;  %v2078_v37 = vsel %vm983_vm3, %v10121_v33, -inf  ;;  %v2096_v0 = vsel %vm983_vm3, %v10137_v38, -inf }
 0x5a3   : > { %2476 = vrot.lane.b32.xlu0 %v9764_v39, %s11653_s17  ;;  %v2090_v39 = vsel %vm983_vm3, %v10125_v34, -inf }
 0x5c1   : > { %2082 = vmax.xlane.f32.xlu1 %v2081_v35 }
 0x5c2   : > { %2079 = vmax.xlane.f32.xlu0 %v2078_v37 }
 0x5c5   : > { %2091 = vmax.xlane.f32.xlu1 %v2090_v39 }
 0x5c6   : > { %2085 = vmax.xlane.f32.xlu0 %v2084_v62 }
 0x5c9   : > { %2097 = vmax.xlane.f32.xlu1 %v2096_v0 }
 0x5ca   : > { %2088 = vmax.xlane.f32.xlu0 %v2087_v49 }
 0x5ce   : > { %2094 = vmax.xlane.f32.xlu0 %v2093_v43 }
 0x5d2   : > { %2100 = vmax.xlane.f32.xlu0 %v2099_v46 }
 0x5da   : > { %9043 = vrot.lane.b32.xlu1 %v9772_v44, %s11651_s20 }
 0x5f0   : > { %v1455_v13 = vpop.xlane.xlu0 %1454 }
 0x5f1   : > { %v1452_v1 = vpop.xlane.xlu1 %1451 }
 0x5f2   : > { %9270 = vrcp.f32 %v1452_v1 }
 0x5f3   : > { %9272 = vrcp.f32 %v1455_v13 }
 0x5f5   : > { %v1458_v47 = vpop.xlane.xlu1 %1457 }
 0x5f6   : > { %9274 = vrcp.f32 %v1458_v47 }
 0x5f9   : > { %v1464_v50 = vpop.xlane.xlu1 %1463 }
 0x5fa   : > { %v1461_v29 = vpop.xlane.xlu0 %1460 }
 0x5fb   : > { %9276 = vrcp.f32 %v1461_v29 }
 0x5fc   : > { %v9271_v57 = vpop.eup %9270  ;;  %9278 = vrcp.f32 %v1464_v50 }
 0x5fd   : > { %v9014_v59 = vpop.permute.xlu1 %9013  ;;  %v1490_v54 = vmul.f32 %v9271_v57, %v10055_v26  ;;  %v9273_v29 = vpop.eup %9272 }
 0x5fe   : > { %v1467_v55 = vpop.xlane.xlu0 %1466  ;;  %v9016_v11 = vunpack.i.h.bf16 %v9014_v59  ;;  %v9015_v53 = vunpack.i.l.bf16 %v9014_v59 }
 0x5ff   : > { %7801 = vmatprep.mubr.msk.f32.mxu0 %vm983_vm3, %v1490_v54  ;;  %9280 = vrcp.f32 %v1467_v55 }
 0x600   : > { %v8525_v62 = vpack.c.bf16 %v9016_v11, %v9015_v53  ;;  %v9275_v54 = vpop.eup %9274 }
 0x601   : > { %v9019_v30 = vpop.permute.xlu1 %9018 }
 0x602   : > { %v1473_v31 = vpop.xlane.xlu0 %1472  ;;  %v9021_v0 = vunpack.i.h.bf16 %v9019_v30  ;;  %v9020_v49 = vunpack.i.l.bf16 %v9019_v30  ;;  %v1491_v30 = vmul.f32 %v9273_v29, %v10053_v17 }
 0x604   : > { %v8529_v47 = vpack.c.bf16 %v9021_v0, %v9020_v49 }
 0x605   : > { %v9024_v58 = vpop.permute.xlu1 %9023 }
 0x606   : > { %v9026_v60 = vunpack.i.h.bf16 %v9024_v58  ;;  %v9025_v5 = vunpack.i.l.bf16 %v9024_v58  ;;  %v1470_v7 = vpop.xlane.xlu0 %1469  ;;  %v9277_v58 = vpop.eup %9276 }
 0x607   : > { %9282 = vrcp.f32 %v1470_v7  ;;  %v1493_v55 = vmul.f32 %v9277_v58, %v10067_v23 }
 0x608   : > { %v8573_v8 = vpack.c.bf16 %v9026_v60, %v9025_v5  ;;  %9284 = vrcp.f32 %v1473_v31  ;;  %v1492_v5 = vmul.f32 %v9275_v54, %v10061_v45 }
 0x609   : > { %v9029_v10 = vpop.permute.xlu1 %9028 }
 0x60a   : > { %v9031_v25 = vunpack.i.h.bf16 %v9029_v10  ;;  %v9030_v21 = vunpack.i.l.bf16 %v9029_v10  ;;  %v9009_v28 = vpop.permute.xlu0 %9008  ;;  %8575 = vmatprep.subr.msk.bf16.mxu1 %vm9768_vm2, %v8573_v8 }
 0x60b   : > { %v9011_v26 = vunpack.i.h.bf16 %v9009_v28  ;;  %v9010_v41 = vunpack.i.l.bf16 %v9009_v28  ;;  %8578 = vmatpush3.bf16.xpose.msk.msra.mxu1 %vm9768_vm2, %v8573_v8  ;;  %v9279_v8 = vpop.eup %9278 }
 0x60c   : > { %v8579_v35 = vpack.c.bf16 %v9031_v25, %v9030_v21  ;;  %v9281_v31 = vpop.eup %9280  ;;  %v1494_v17 = vmul.f32 %v9279_v8, %v10065_v51 }
 0x60d   : > { %v8521_v37 = vpack.c.bf16 %v9011_v26, %v9010_v41  ;;  %v9039_v13 = vpop.permute.xlu1 %9038  ;;  %v1495_v45 = vmul.f32 %v9281_v31, %v10073_v27 }
 0x60e   : > { %v9034_v39 = vpop.permute.xlu0 %9033  ;;  %8581 = vmatprep.subr.msk.bf16.mxu1 %vm9768_vm2, %v8579_v35  ;;  %v9041_v59 = vunpack.i.h.bf16 %v9039_v13  ;;  %v9040_v50 = vunpack.i.l.bf16 %v9039_v13 }
 0x60f   : > { %v9036_v43 = vunpack.i.h.bf16 %v9034_v39  ;;  %v9035_v46 = vunpack.i.l.bf16 %v9034_v39  ;;  %8522 = vmatprep.subr.bf16.mxu0 %v8521_v37 }
 0x610   : > { %8524 = vmatpush3.bf16.msra.mxu0 %v8521_v37  ;;  %v8591_v60 = vpack.c.bf16 %v9041_v59, %v9040_v50 }
 0x611   : > { %8526 = vmatprep.subr.bf16.mxu0 %v8525_v62  ;;  %v8585_v1 = vpack.c.bf16 %v9036_v43, %v9035_v46  ;;  %v9283_v7 = vpop.eup %9282  ;;  %v2467_v53 = vpop.permute.xlu1 %2466 }
 0x612   : > { %v2465_v57 = vpop.permute.xlu0 %2464  ;;  %v9285_v10 = vpop.eup %9284  ;;  %v1496_v11 = vmul.f32 %v9283_v7, %v10081_v40 }
 0x613   : > { %7927 = vmatprep.mubr.msk.f32.mxu1 %vm829_vm1, %v2465_v57  ;;  %8584 = vmatpush3.bf16.xpose.msk.msra.mxu1 %vm9768_vm2, %v8579_v35  ;;  %v1497_v51 = vmul.f32 %v9285_v10, %v10077_v15 }
 0x614   : > { %8528 = vmatpush3.bf16.msra.mxu0 %v8525_v62  ;;  %8587 = vmatprep.subr.msk.bf16.mxu1 %vm9768_vm2, %v8585_v1 }
 0x615   : > { %8530 = vmatprep.subr.bf16.mxu0 %v8529_v47  ;;  %v2471_v25 = vpop.permute.xlu1 %2470 }
 0x616   : > { %v2469_v23 = vpop.permute.xlu0 %2468 }
 0x618   : > { %8532 = vmatpush3.bf16.msra.mxu0 %v8529_v47 }
 0x619   : > { %v2475_v40 = vpop.permute.xlu1 %2474 }
 0x61a   : > { %v2473_v27 = vpop.permute.xlu0 %2472 }
 0x61b   : > { %7802 = vmatmul.mubr.msk.f32.vlgmr.msra.gmra.mrb[16].mxu0 %vm983_vm3, %v1491_v30  ;;  %8590 = vmatpush3.bf16.xpose.msk.msra.mxu1 %vm9768_vm2, %v8585_v1 }
 0x61c   : > { %7804 = vmatprep.mubr.msk.f32.mxu0 %vm983_vm3, %v1492_v5  ;;  %8593 = vmatprep.subr.msk.bf16.mxu1 %vm9768_vm2, %v8591_v60 }
 0x61d   : > { %v2479_v15 = vpop.permute.xlu1 %2478 }
 0x61e   : > { %v2477_v21 = vpop.permute.xlu0 %2476 }
 0x61f   : > { %7805 = vmatmul.mubr.msk.f32.gmra.mrb[18].mxu0 %vm983_vm3, %v1493_v55 }
 0x620   : > { %7807 = vmatprep.mubr.msk.f32.mxu0 %vm983_vm3, %v1494_v17 }
 0x623   : > { %7808 = vmatmul.mubr.msk.f32.gmra.mrb[20].mxu0 %vm983_vm3, %v1495_v45  ;;  %8596 = vmatpush3.bf16.xpose.msk.msra.mxu1 %vm9768_vm2, %v8591_v60  ;;  %v525_v45 = vld [vmem:[%s11640_s5 + $0x8] sm:$0xff] }
 0x624   : > { %7810 = vmatprep.mubr.msk.f32.mxu0 %vm983_vm3, %v1496_v11  ;;  %7813 = vmatprep.subr.mxu0 %v525_v45 }
 0x625   : > { %7814 = vmatpush3.msra.mxu0 %v525_v45 }
 0x627   : > { %7811 = vmatmul.mubr.msk.f32.gmra.mrb[22].mxu0 %vm983_vm3, %v1497_v51 }
 0x62a   : > { %7928 = vmatmul.mubr.msk.f32.vlgmr.msra.gmra.mrb[32].mxu1 %vm829_vm1, %v2467_v53  ;;  %v524_v53 = vld [vmem:[%s11640_s5] sm:$0xff] }
 0x62b   : > { %7930 = vmatprep.mubr.msk.f32.mxu1 %vm829_vm1, %v2469_v23  ;;  %7827 = vmatprep.subr.mxu0 %v524_v53 }
 0x62e   : > { %7931 = vmatmul.mubr.msk.f32.gmra.mrb[34].mxu1 %vm829_vm1, %v2471_v25 }
 0x62f   : > { %7933 = vmatprep.mubr.msk.f32.mxu1 %vm829_vm1, %v2473_v27 }
 0x632   : > { %7934 = vmatmul.mubr.msk.f32.gmra.mrb[36].mxu1 %vm829_vm1, %v2475_v40 }
 0x633   : > { %7936 = vmatprep.mubr.msk.f32.mxu1 %vm829_vm1, %v2477_v21 }
 0x636   : > { %7937 = vmatmul.mubr.msk.f32.gmra.mrb[38].mxu1 %vm829_vm1, %v2479_v15 }
 0x64e   : > { %v2083_v28 = vpop.xlane.xlu1 %2082 }
 0x64f   : > { %v2103_v26 = vsub.f32 %v10117_v32, %v2083_v28  ;;  %v2080_v41 = vpop.xlane.xlu0 %2079 }
 0x650   : > { %v2102_v35 = vsub.f32 %v10121_v33, %v2080_v41 }
 0x651   : > { %v2112_v37 = vmul.f32 1.442695, %v2103_v26 }
 0x652   : > { %v2110_v39 = vmul.f32 1.442695, %v2102_v35  ;;  %v2092_v62 = vpop.xlane.xlu1 %2091 }
 0x653   : > { %9286 = vpow2.f32 %v2112_v37  ;;  %v2106_v0 = vsub.f32 %v10125_v34, %v2092_v62  ;;  %v2086_v49 = vpop.xlane.xlu0 %2085 }
 0x654   : > { %9288 = vpow2.f32 %v2110_v39  ;;  %v2104_v43 = vsub.f32 %v10131_v36, %v2086_v49 }
 0x655   : > { %v2118_v46 = vmul.f32 1.442695, %v2106_v0 }
 0x656   : > { %v2114_v1 = vmul.f32 1.442695, %v2104_v43  ;;  %v2098_v47 = vpop.xlane.xlu1 %2097 }
 0x657   : > { %v2089_v57 = vpop.xlane.xlu0 %2088  ;;  %v2108_v50 = vsub.f32 %v10137_v38, %v2098_v47  ;;  %v9542_v47 = vld [vmem:[%s9814_s30] ss:$0 sm:$0xff]  ;;  %s10704_s30 = scalar_lea.vmem %s11647_s12, %s9690_s19 }
 0x658   : > { %9290 = vpow2.f32 %v2114_v1  ;;  %v2105_v13 = vsub.f32 %v10143_v61, %v2089_v57 }
 0x659   : > { %9292 = vpow2.f32 %v2118_v46  ;;  %v2122_v60 = vmul.f32 1.442695, %v2108_v50 }
 0x65a   : > { %v2116_v32 = vmul.f32 1.442695, %v2105_v13  ;;  %v9044_v25 = vpop.permute.xlu1 %9043 }
 0x65b   : > { %v2095_v33 = vpop.xlane.xlu0 %2094  ;;  %v9046_v27 = vunpack.i.h.bf16 %v9044_v25  ;;  %v9045_v40 = vunpack.i.l.bf16 %v9044_v25 }
 0x65c   : > { %9294 = vpow2.f32 %v2116_v32  ;;  %v2107_v29 = vsub.f32 %v10151_v3, %v2095_v33 }
 0x65d   : > { %v10211_v59 = vpop.eup %9286  ;;  %v8557_v41 = vpack.c.bf16 %v9046_v27, %v9045_v40 }
 0x65e   : > { %v10213_v34 = vpop.eup %9288  ;;  %v2120_v36 = vmul.f32 1.442695, %v2107_v29  ;;  %v2129_v54 = vsel %vm983_vm3, %v10211_v59, 0.0 }
 0x65f   : > { %v2101_v30 = vpop.xlane.xlu0 %2100  ;;  %2130 = vadd.xlane.f32.xlu0 %v2129_v54  ;;  %v2126_v61 = vsel %vm983_vm3, %v10213_v34, 0.0 }
 0x660   : > { %9296 = vpow2.f32 %v2120_v36  ;;  %v2109_v58 = vsub.f32 %v10157_v63, %v2101_v30  ;;  %2127 = vadd.xlane.f32.xlu1 %v2126_v61 }
 0x662   : > { %v10221_v3 = vpop.eup %9290  ;;  %v2124_v5 = vmul.f32 1.442695, %v2109_v58 }
 0x663   : > { %v2132_v38 = vsel %vm983_vm3, %v10221_v3, 0.0  ;;  %v10225_v8 = vpop.eup %9292 }
 0x664   : > { %9298 = vpow2.f32 %v2124_v5  ;;  %2133 = vadd.xlane.f32.xlu1 %v2132_v38  ;;  %v2138_v31 = vsel %vm983_vm3, %v10225_v8, 0.0 }
 0x665   : > { %9300 = vpow2.f32 %v2122_v60 }
 0x666   : > { %v10227_v55 = vpop.eup %9294 }
 0x667   : > { %v2135_v63 = vsel %vm983_vm3, %v10227_v55, 0.0 }
 0x668   : > { %2139 = vadd.xlane.f32.xlu1 %v2138_v31  ;;  %2136 = vadd.xlane.f32.xlu0 %v2135_v63 }
 0x66a   : > { %v10233_v17 = vpop.eup %9296 }
 0x66b   : > { %v2141_v7 = vsel %vm983_vm3, %v10233_v17, 0.0 }
 0x66c   : > { %2142 = vadd.xlane.f32.xlu0 %v2141_v7 }
 0x66e   : > { %v10240_v10 = vpop.eup %9298 }
 0x66f   : > { %v2147_v11 = vsel %vm983_vm3, %v10240_v10, 0.0  ;;  %v10247_v51 = vpop.eup %9300 }
 0x670   : > { %2148 = vadd.xlane.f32.xlu0 %v2147_v11  ;;  %v2144_v23 = vsel %vm983_vm3, %v10247_v51, 0.0 }
 0x674   : > { %2145 = vadd.xlane.f32.xlu0 %v2144_v23 }
 0x679   : > { %9053 = vrot.lane.b32.xlu1 %v9782_v52, %s11651_s20 }
 0x67d   : > { %9058 = vrot.lane.b32.xlu1 %v9788_v56, %s11651_s20 }
 0x68a   : > { %9048 = vrot.lane.b32.xlu0 %v9778_v48, %s11651_s20  ;;  %s11601_s20 = scalar_lea.vmem %s11648_s13, %s9690_s19 }
 0x6ec   : > { %v2131_v26 = vpop.xlane.xlu0 %2130 }
 0x6ed   : > { %v2128_v28 = vpop.xlane.xlu1 %2127 }
 0x6ee   : > { %v7803_v21 = vpop.f32.mrb[16].mxu0  ;;  %9302 = vrcp.f32 %v2128_v28 }
 0x6ef   : > { %v1612_v15 = vpop.f32.mrb[17].mxu0  ;;  %9304 = vrcp.f32 %v2131_v26 }
 0x6f0   : > { %7815 = vmatprep.mubr.msk.f32.mxu0 %vm829_vm1, %v1612_v15 }
 0x6f1   : > { %7816 = vmatmul.mubr.msk.f32.vlgmr.msra.gmra.mrb[24].mxu0 %vm829_vm1, %v7803_v21  ;;  %v2134_v62 = vpop.xlane.xlu1 %2133 }
 0x6f2   : > { %7828 = vmatpush3.msra.mxu0 %v524_v53  ;;  %v7806_v35 = vpop.f32.mrb[18].mxu0  ;;  %9306 = vrcp.f32 %v2134_v62 }
 0x6f3   : > { %8558 = vmatprep.subr.bf16.mxu0 %v8557_v41  ;;  %v1622_v37 = vpop.f32.mrb[19].mxu0 }
 0x6f4   : > { %7818 = vmatprep.mubr.msk.f32.mxu0 %vm829_vm1, %v1622_v37 }
 0x6f5   : > { %v10260_v39 = vpop.xlane.xlu0 %2136  ;;  %7819 = vmatmul.mubr.msk.f32.gmra.mrb[26].mxu0 %vm829_vm1, %v7806_v35  ;;  %v2140_v57 = vpop.xlane.xlu1 %2139 }
 0x6f6   : > { %v7809_v0 = vpop.f32.mrb[20].mxu0  ;;  %9308 = vrcp.f32 %v10260_v39 }
 0x6f7   : > { %v1632_v49 = vpop.f32.mrb[21].mxu0  ;;  %9310 = vrcp.f32 %v2140_v57 }
 0x6f8   : > { %7821 = vmatprep.mubr.msk.f32.mxu0 %vm829_vm1, %v1632_v49  ;;  %v9303_v21 = vpop.eup %9302 }
 0x6f9   : > { %v10264_v43 = vpop.xlane.xlu0 %2142  ;;  %7822 = vmatmul.mubr.msk.f32.gmra.mrb[28].mxu0 %vm829_vm1, %v7809_v0  ;;  %v9054_v61 = vpop.permute.xlu1 %9053  ;;  %v2166_v0 = vmul.f32 %v9303_v21, %v10213_v34 }
 0x6fa   : > { %v7812_v46 = vpop.f32.mrb[22].mxu0  ;;  %v9056_v53 = vunpack.i.h.bf16 %v9054_v61  ;;  %v9055_v23 = vunpack.i.l.bf16 %v9054_v61  ;;  %9312 = vrcp.f32 %v10264_v43  ;;  %v9305_v39 = vpop.eup %9304 }
 0x6fb   : > { %v1642_v1 = vpop.f32.mrb[23].mxu0 }
 0x6fc   : > { %7824 = vmatprep.mubr.msk.f32.mxu0 %vm829_vm1, %v1642_v1  ;;  %v8565_v62 = vpack.c.bf16 %v9056_v53, %v9055_v23  ;;  %v9307_v34 = vpop.eup %9306 }
 0x6fd   : > { %v10268_v13 = vpop.xlane.xlu0 %2148  ;;  %7825 = vmatmul.mubr.msk.f32.gmra.mrb[30].mxu0 %vm829_vm1, %v7812_v46  ;;  %v7929_v32 = vpop.f32.mrb[32].mxu1  ;;  %v2168_v1 = vmul.f32 %v9307_v34, %v10221_v3 }
 0x6fe   : > { %7829 = vmatprep.mubr.msk.f32.mxu0 %vm829_vm1, %v10005_v16  ;;  %v10274_v33 = vadd.f32 %v9542_v47, %v7929_v32  ;;  %v2594_v29 = vpop.f32.mrb[33].mxu1 }
 0x6ff   : > { %v10276_v50 = vadd.f32 %v9542_v47, %v2594_v29 }
 0x700   : > { %v2636_v54 = vsel %vm983_vm3, %v10274_v33, -inf  ;;  %v9309_v46 = vpop.eup %9308 }
 0x701   : > { %v2146_v36 = vpop.xlane.xlu0 %2145  ;;  %7830 = vmatmul.mubr.msk.f32.vlgmr.msra.gmra.mrb[24].mxu0 %vm829_vm1, %v10003_v14  ;;  %v7932_v30 = vpop.f32.mrb[34].mxu1  ;;  %2637 = vmax.xlane.f32.xlu0 %v2636_v54  ;;  %v2633_v60 = vsel %vm983_vm3, %v10276_v50, -inf  ;;  %v2169_v43 = vmul.f32 %v9309_v46, %v10227_v55  ;;  %v526_v55 = vld [vmem:[%s11640_s5 + $0x10] sm:$0xff] }
 0x702   : > { %8560 = vmatpush3.bf16.msra.mxu0 %v8557_v41  ;;  %v10282_v16 = vadd.f32 %v9542_v47, %v7932_v30  ;;  %v2604_v58 = vpop.f32.mrb[35].mxu1  ;;  %7832 = vmatprep.mubr.msk.f32.mxu0 %vm829_vm1, %v10009_v2  ;;  %9314 = vrcp.f32 %v2146_v36  ;;  %v9311_v57 = vpop.eup %9310 }
 0x703   : > { %v10288_v5 = vadd.f32 %v9542_v47, %v2604_v58  ;;  %2634 = vmax.xlane.f32.xlu1 %v2633_v60  ;;  %9316 = vrcp.f32 %v10268_v13 }
 0x704   : > { %v2642_v14 = vsel %vm983_vm3, %v10282_v16, -inf  ;;  %v9313_v32 = vpop.eup %9312 }
 0x705   : > { %v9049_v38 = vpop.permute.xlu0 %9048  ;;  %7833 = vmatmul.mubr.msk.f32.gmra.mrb[26].mxu0 %vm829_vm1, %v10007_v18  ;;  %v7935_v31 = vpop.f32.mrb[36].mxu1  ;;  %v2639_v63 = vsel %vm983_vm3, %v10288_v5, -inf  ;;  %2643 = vmax.xlane.f32.xlu0 %v2642_v14 }
 0x706   : > { %v9051_v7 = vunpack.i.h.bf16 %v9049_v38  ;;  %v9050_v45 = vunpack.i.l.bf16 %v9049_v38  ;;  %7835 = vmatprep.mubr.msk.f32.mxu0 %vm829_vm1, %v10013_v12  ;;  %v10298_v2 = vadd.f32 %v9542_v47, %v7935_v31  ;;  %v2614_v11 = vpop.f32.mrb[37].mxu1  ;;  %v9059_v18 = vpop.permute.xlu1 %9058 }
 0x707   : > { %v10300_v25 = vadd.f32 %v9542_v47, %v2614_v11  ;;  %2640 = vmax.xlane.f32.xlu1 %v2639_v63  ;;  %v9061_v41 = vunpack.i.h.bf16 %v9059_v18  ;;  %v9060_v35 = vunpack.i.l.bf16 %v9059_v18 }
 0x708   : > { %v2648_v27 = vsel %vm983_vm3, %v10298_v2, -inf  ;;  %v8561_v40 = vpack.c.bf16 %v9051_v7, %v9050_v45 }
 0x709   : > { %7836 = vmatmul.mubr.msk.f32.gmra.mrb[28].mxu0 %vm829_vm1, %v10011_v19  ;;  %v7938_v12 = vpop.f32.mrb[38].mxu1  ;;  %v2645_v15 = vsel %vm983_vm3, %v10300_v25, -inf  ;;  %2649 = vmax.xlane.f32.xlu0 %v2648_v27  ;;  %v8569_v49 = vpack.c.bf16 %v9061_v41, %v9060_v35 }
 0x70a   : > { %7838 = vmatprep.mubr.msk.f32.mxu0 %vm829_vm1, %v10017_v22  ;;  %v10310_v28 = vadd.f32 %v9542_v47, %v7938_v12  ;;  %v2624_v26 = vpop.f32.mrb[39].mxu1  ;;  %8562 = vmatprep.subr.bf16.mxu0 %v8561_v40 }
 0x70b   : > { %v10312_v37 = vadd.f32 %v9542_v47, %v2624_v26  ;;  %2646 = vmax.xlane.f32.xlu1 %v2645_v15  ;;  %8564 = vmatpush3.bf16.msra.mxu0 %v8561_v40  ;;  %v2170_v47 = vmul.f32 %v9311_v57, %v10225_v8 }
 0x70c   : > { %v2654_v19 = vsel %vm983_vm3, %v10310_v28, -inf  ;;  %8566 = vmatprep.subr.bf16.mxu0 %v8565_v62  ;;  %v9315_v29 = vpop.eup %9314 }
 0x70d   : > { %7839 = vmatmul.mubr.msk.f32.gmra.mrb[30].mxu0 %vm829_vm1, %v10015_v9  ;;  %v2651_v22 = vsel %vm983_vm3, %v10312_v37, -inf  ;;  %2655 = vmax.xlane.f32.xlu0 %v2654_v19  ;;  %v2167_v9 = vmul.f32 %v9305_v39, %v10211_v59  ;;  %v2171_v59 = vmul.f32 %v9313_v32, %v10233_v17  ;;  %v9317_v13 = vpop.eup %9316  ;;  %v2172_v3 = vmul.f32 %v9315_v29, %v10247_v51 }
 0x70e   : > { %7885 = vmatprep.mubr.msk.f32.mxu0 %vm983_vm3, %v2166_v0  ;;  %v2173_v8 = vmul.f32 %v9317_v13, %v10240_v10 }
 0x70f   : > { %2652 = vmax.xlane.f32.xlu1 %v2651_v22  ;;  %8568 = vmatpush3.bf16.msra.mxu0 %v8565_v62 }
 0x710   : > { %8570 = vmatprep.subr.bf16.mxu0 %v8569_v49 }
 0x713   : > { %8572 = vmatpush3.bf16.msra.mxu0 %v8569_v49 }
 0x714   : > { %7897 = vmatprep.subr.mxu0 %v526_v55 }
 0x716   : > { %7886 = vmatmul.mubr.msk.f32.vlgmr.msra.gmra.mrb[32].mxu0 %vm983_vm3, %v2167_v9 }
 0x717   : > { %7888 = vmatprep.mubr.msk.f32.mxu0 %vm983_vm3, %v2168_v1  ;;  %7898 = vmatpush3.msra.mxu0 %v526_v55 }
 0x71a   : > { %7889 = vmatmul.mubr.msk.f32.gmra.mrb[34].mxu0 %vm983_vm3, %v2169_v43 }
 0x71b   : > { %7891 = vmatprep.mubr.msk.f32.mxu0 %vm983_vm3, %v2170_v47 }
 0x71e   : > { %7892 = vmatmul.mubr.msk.f32.gmra.mrb[36].mxu0 %vm983_vm3, %v2171_v59 }
 0x71f   : > { %7894 = vmatprep.mubr.msk.f32.mxu0 %vm983_vm3, %v2172_v3 }
 0x720   : > { %9063 = vrot.lane.b32.xlu1 %v9772_v44, %s11649_s29 }
 0x722   : > { %7895 = vmatmul.mubr.msk.f32.gmra.mrb[38].mxu0 %vm983_vm3, %v2173_v8 }
 0x78e   : > { %v2638_v17 = vpop.xlane.xlu0 %2637 }
 0x78f   : > { %v2658_v51 = vsub.f32 %v10274_v33, %v2638_v17 }
 0x790   : > { %v2635_v36 = vpop.xlane.xlu1 %2634 }
 0x791   : > { %v2657_v54 = vsub.f32 %v10276_v50, %v2635_v36  ;;  %v2667_v30 = vmul.f32 1.442695, %v2658_v51 }
 0x792   : > { %v2644_v58 = vpop.xlane.xlu0 %2643 }
 0x793   : > { %v2665_v61 = vmul.f32 1.442695, %v2657_v54  ;;  %9318 = vpow2.f32 %v2667_v30  ;;  %v2660_v44 = vsub.f32 %v10282_v16, %v2644_v58 }
 0x794   : > { %v2641_v10 = vpop.xlane.xlu1 %2640 }
 0x795   : > { %9320 = vpow2.f32 %v2665_v61  ;;  %v2659_v60 = vsub.f32 %v10288_v5, %v2641_v10  ;;  %v2671_v14 = vmul.f32 1.442695, %v2660_v44 }
 0x796   : > { %v2650_v31 = vpop.xlane.xlu0 %2649 }
 0x797   : > { %v2669_v38 = vmul.f32 1.442695, %v2659_v60  ;;  %9322 = vpow2.f32 %v2671_v14  ;;  %v2662_v63 = vsub.f32 %v10298_v2, %v2650_v31 }
 0x798   : > { %v2647_v33 = vpop.xlane.xlu1 %2646 }
 0x799   : > { %9324 = vpow2.f32 %v2669_v38  ;;  %v2661_v50 = vsub.f32 %v10300_v25, %v2647_v33  ;;  %v2675_v7 = vmul.f32 1.442695, %v2662_v63 }
 0x79a   : > { %v2656_v11 = vpop.xlane.xlu0 %2655 }
 0x79b   : > { %v2673_v45 = vmul.f32 1.442695, %v2661_v50  ;;  %9326 = vpow2.f32 %v2675_v7  ;;  %v2664_v16 = vsub.f32 %v10310_v28, %v2656_v11  ;;  %v527_v7 = vld [vmem:[%s11640_s5 + $0x18] sm:$0xff] }
 0x79c   : > { %v2653_v53 = vpop.xlane.xlu1 %2652 }
 0x79d   : > { %9328 = vpow2.f32 %v2673_v45  ;;  %v2663_v5 = vsub.f32 %v10312_v37, %v2653_v53  ;;  %v10352_v23 = vpop.eup %9318  ;;  %v2679_v18 = vmul.f32 1.442695, %v2664_v16 }
 0x79e   : > { %v2684_v2 = vsel %vm983_vm3, %v10352_v23, 0.0 }
 0x79f   : > { %v9321_v27 = vpop.eup %9320  ;;  %v2677_v40 = vmul.f32 1.442695, %v2663_v5  ;;  %9330 = vpow2.f32 %v2679_v18  ;;  %2685 = vadd.xlane.f32.xlu0 %v2684_v2 }
 0x7a0   : > { %v9064_v25 = vpop.permute.xlu1 %9063  ;;  %v2681_v21 = vsel %vm983_vm3, %v9321_v27, 0.0 }
 0x7a1   : > { %v9066_v12 = vunpack.i.h.bf16 %v9064_v25  ;;  %v9065_v15 = vunpack.i.l.bf16 %v9064_v25  ;;  %2682 = vadd.xlane.f32.xlu1 %v2681_v21  ;;  %v10357_v28 = vpop.eup %9322  ;;  %9332 = vpow2.f32 %v2677_v40 }
 0x7a2   : > { %v2690_v41 = vsel %vm983_vm3, %v10357_v28, 0.0 }
 0x7a3   : > { %v10359_v26 = vpop.eup %9324  ;;  %v8597_v35 = vpack.c.bf16 %v9066_v12, %v9065_v15  ;;  %2691 = vadd.xlane.f32.xlu0 %v2690_v41  ;;  %v536_v15 = vld [vmem:[%s11642_s7] sm:$0xff]  ;;  %v538_v41 = vld [vmem:[%s11642_s7 + $0x10] sm:$0xff] }
 0x7a4   : > { %v2687_v37 = vsel %vm983_vm3, %v10359_v26, 0.0 }
 0x7a5   : > { %2688 = vadd.xlane.f32.xlu1 %v2687_v37  ;;  %8598 = vmatprep.subr.bf16.mxu0 %v8597_v35  ;;  %v10365_v62 = vpop.eup %9326 }
 0x7a6   : > { %v2696_v0 = vsel %vm983_vm3, %v10365_v62, 0.0 }
 0x7a7   : > { %v10367_v19 = vpop.eup %9328  ;;  %2697 = vadd.xlane.f32.xlu0 %v2696_v0  ;;  %v540_v0 = vld [vmem:[%s11642_s7 + $0x20] sm:$0xff] }
 0x7a8   : > { %v2693_v22 = vsel %vm983_vm3, %v10367_v19, 0.0 }
 0x7a9   : > { %2694 = vadd.xlane.f32.xlu1 %v2693_v22  ;;  %v10373_v49 = vpop.eup %9330  ;;  %v541_v22 = vld [vmem:[%s11642_s7 + $0x28] sm:$0xff] }
 0x7aa   : > { %v2702_v39 = vsel %vm983_vm3, %v10373_v49, 0.0 }
 0x7ab   : > { %v10377_v34 = vpop.eup %9332  ;;  %2703 = vadd.xlane.f32.xlu0 %v2702_v39 }
 0x7ac   : > { %v2699_v9 = vsel %vm983_vm3, %v10377_v34, 0.0 }
 0x7af   : > { %2700 = vadd.xlane.f32.xlu0 %v2699_v9  ;;  %v542_v9 = vld [vmem:[%s11642_s7 + $0x30] sm:$0xff] }
 0x7ba   : > { %9073 = vrot.lane.b32.xlu1 %v9782_v52, %s11649_s29 }
 0x7be   : > { %9078 = vrot.lane.b32.xlu1 %v9788_v56, %s11649_s29 }
 0x7c5   : > { %9068 = vrot.lane.b32.xlu0 %v9778_v48, %s11649_s29 }
 0x7e9   : > { %v7887_v46 = vpop.f32.mrb[32].mxu0 }
 0x7ea   : > { %v2288_v1 = vpop.f32.mrb[33].mxu0 }
 0x7eb   : > { %7899 = vmatprep.mubr.msk.f32.mxu0 %vm829_vm1, %v2288_v1 }
 0x7ec   : > { %7900 = vmatmul.mubr.msk.f32.vlgmr.msra.gmra.mrb[24].mxu0 %vm829_vm1, %v7887_v46  ;;  %v543_v46 = vld [vmem:[%s11642_s7 + $0x38] sm:$0xff] }
 0x7ed   : > { %8600 = vmatpush3.bf16.msra.mxu0 %v8597_v35  ;;  %v7890_v57 = vpop.f32.mrb[34].mxu0  ;;  %v539_v35 = vld [vmem:[%s11642_s7 + $0x18] sm:$0xff] }
 0x7ee   : > { %v2298_v43 = vpop.f32.mrb[35].mxu0 }
 0x7ef   : > { %7902 = vmatprep.mubr.msk.f32.mxu0 %vm829_vm1, %v2298_v43  ;;  %v10452_v43 = vpack.c.bf16 %v543_v46, %v542_v9 }
 0x7f0   : > { %7903 = vmatmul.mubr.msk.f32.gmra.mrb[26].mxu0 %vm829_vm1, %v7890_v57 }
 0x7f1   : > { %v7893_v52 = vpop.f32.mrb[36].mxu0 }
 0x7f2   : > { %v2308_v32 = vpop.f32.mrb[37].mxu0 }
 0x7f3   : > { %7905 = vmatprep.mubr.msk.f32.mxu0 %vm829_vm1, %v2308_v32 }
 0x7f4   : > { %7906 = vmatmul.mubr.msk.f32.gmra.mrb[28].mxu0 %vm829_vm1, %v7893_v52 }
 0x7f5   : > { %v7896_v48 = vpop.f32.mrb[38].mxu0 }
 0x7f6   : > { %v2318_v56 = vpop.f32.mrb[39].mxu0 }
 0x7f7   : > { %7908 = vmatprep.mubr.msk.f32.mxu0 %vm829_vm1, %v2318_v56 }
 0x7f8   : > { %7909 = vmatmul.mubr.msk.f32.gmra.mrb[30].mxu0 %vm829_vm1, %v7896_v48 }
 0x82c   : > { %v2686_v47 = vpop.xlane.xlu0 %2685 }
 0x82e   : > { %v2683_v29 = vpop.xlane.xlu1 %2682 }
 0x82f   : > { %9334 = vrcp.f32 %v2683_v29 }
 0x830   : > { %v2692_v59 = vpop.xlane.xlu0 %2691  ;;  %9336 = vrcp.f32 %v2686_v47 }
 0x832   : > { %v2689_v13 = vpop.xlane.xlu1 %2688 }
 0x833   : > { %9338 = vrcp.f32 %v2689_v13 }
 0x834   : > { %v2698_v3 = vpop.xlane.xlu0 %2697  ;;  %9340 = vrcp.f32 %v2692_v59 }
 0x836   : > { %v2695_v8 = vpop.xlane.xlu1 %2694 }
 0x837   : > { %9342 = vrcp.f32 %v2695_v8 }
 0x838   : > { %v2704_v17 = vpop.xlane.xlu0 %2703  ;;  %9344 = vrcp.f32 %v2698_v3 }
 0x839   : > { %v9335_v55 = vpop.eup %9334 }
 0x83a   : > { %v2721_v51 = vmul.f32 %v9335_v55, %v9321_v27  ;;  %v9074_v36 = vpop.permute.xlu1 %9073  ;;  %v9337_v50 = vpop.eup %9336 }
 0x83b   : > { %v9076_v61 = vunpack.i.h.bf16 %v9074_v36  ;;  %v9075_v58 = vunpack.i.l.bf16 %v9074_v36  ;;  %v2722_v11 = vmul.f32 %v9337_v50, %v10352_v23 }
 0x83c   : > { %7955 = vmatprep.mubr.msk.f32.mxu0 %vm983_vm3, %v2721_v51  ;;  %v2701_v54 = vpop.xlane.xlu0 %2700 }
 0x83d   : > { %v8605_v63 = vpack.c.bf16 %v9076_v61, %v9075_v58  ;;  %9346 = vrcp.f32 %v2701_v54  ;;  %v9339_v45 = vpop.eup %9338 }
 0x83e   : > { %v9079_v60 = vpop.permute.xlu1 %9078  ;;  %9348 = vrcp.f32 %v2704_v17  ;;  %v9341_v16 = vpop.eup %9340  ;;  %v2723_v53 = vmul.f32 %v9339_v45, %v10359_v26 }
 0x83f   : > { %v9081_v38 = vunpack.i.h.bf16 %v9079_v60  ;;  %v9080_v31 = vunpack.i.l.bf16 %v9079_v60  ;;  %v2724_v18 = vmul.f32 %v9341_v16, %v10357_v28  ;;  %v537_v28 = vld [vmem:[%s11642_s7 + $0x8] sm:$0xff] }
 0x840   : > { %v9069_v30 = vpop.permute.xlu0 %9068  ;;  %v10419_v26 = vpack.c.bf16 %v537_v28, %v536_v15 }
 0x841   : > { %v9071_v44 = vunpack.i.h.bf16 %v9069_v30  ;;  %v9070_v10 = vunpack.i.l.bf16 %v9069_v30  ;;  %v8609_v33 = vpack.c.bf16 %v9081_v38, %v9080_v31  ;;  %v9343_v5 = vpop.eup %9342 }
 0x842   : > { %v9345_v27 = vpop.eup %9344  ;;  %v2725_v40 = vmul.f32 %v9343_v5, %v10367_v19  ;;  %v10428_v19 = vpack.c.bf16 %v539_v35, %v538_v41 }
 0x843   : > { %v8601_v14 = vpack.c.bf16 %v9071_v44, %v9070_v10  ;;  %v2726_v23 = vmul.f32 %v9345_v27, %v10365_v62 }
 0x845   : > { %8602 = vmatprep.subr.bf16.mxu0 %v8601_v14 }
 0x846   : > { %8604 = vmatpush3.bf16.msra.mxu0 %v8601_v14 }
 0x847   : > { %8606 = vmatprep.subr.bf16.mxu0 %v8605_v63  ;;  %v9347_v2 = vpop.eup %9346 }
 0x848   : > { %v9349_v25 = vpop.eup %9348  ;;  %v2727_v21 = vmul.f32 %v9347_v2, %v10377_v34  ;;  %v10440_v34 = vpack.c.bf16 %v541_v22, %v540_v0 }
 0x849   : > { %v2728_v12 = vmul.f32 %v9349_v25, %v10373_v49 }
 0x84a   : > { %8608 = vmatpush3.bf16.msra.mxu0 %v8605_v63 }
 0x84b   : > { %8610 = vmatprep.subr.bf16.mxu0 %v8609_v33 }
 0x84e   : > { %8612 = vmatpush3.bf16.msra.mxu0 %v8609_v33 }
 0x84f   : > { %7967 = vmatprep.subr.mxu0 %v527_v7 }
 0x851   : > { %7956 = vmatmul.mubr.msk.f32.vlgmr.msra.gmra.mrb[40].mxu0 %vm983_vm3, %v2722_v11 }
 0x852   : > { %7958 = vmatprep.mubr.msk.f32.mxu0 %vm983_vm3, %v2723_v53  ;;  %7968 = vmatpush3.msra.mxu0 %v527_v7 }
 0x853   : > { %8630 = vmatprep.subr.bf16.mxu0 %v10419_v26 }
 0x855   : > { %7959 = vmatmul.mubr.msk.f32.gmra.mrb[42].mxu0 %vm983_vm3, %v2724_v18 }
 0x856   : > { %7961 = vmatprep.mubr.msk.f32.mxu0 %vm983_vm3, %v2725_v40 }
 0x859   : > { %7962 = vmatmul.mubr.msk.f32.gmra.mrb[44].mxu0 %vm983_vm3, %v2726_v23 }
 0x85a   : > { %7964 = vmatprep.mubr.msk.f32.mxu0 %vm983_vm3, %v2727_v21 }
 0x85d   : > { %7965 = vmatmul.mubr.msk.f32.gmra.mrb[46].mxu0 %vm983_vm3, %v2728_v12 }
 0x924   : > { %v7957_v37 = vpop.f32.mrb[40].mxu0 }
 0x925   : > { %v2843_v62 = vpop.f32.mrb[41].mxu0 }
 0x926   : > { %7969 = vmatprep.mubr.msk.f32.mxu0 %vm829_vm1, %v2843_v62 }
 0x927   : > { %7970 = vmatmul.mubr.msk.f32.vlgmr.msra.gmra.mrb[24].mxu0 %vm829_vm1, %v7957_v37 }
 0x928   : > { %8632 = vmatpush3.bf16.msra.mxu0 %v10419_v26  ;;  %v7960_v49 = vpop.f32.mrb[42].mxu0 }
 0x929   : > { %v2853_v39 = vpop.f32.mrb[43].mxu0  ;;  %8634 = vmatprep.subr.bf16.mxu0 %v10428_v19 }
 0x92a   : > { %7972 = vmatprep.mubr.msk.f32.mxu0 %vm829_vm1, %v2853_v39 }
 0x92b   : > { %7973 = vmatmul.mubr.msk.f32.gmra.mrb[26].mxu0 %vm829_vm1, %v7960_v49 }
 0x92c   : > { %8636 = vmatpush3.bf16.msra.mxu0 %v10428_v19  ;;  %v7963_v1 = vpop.f32.mrb[44].mxu0 }
 0x92d   : > { %v2863_v57 = vpop.f32.mrb[45].mxu0  ;;  %8638 = vmatprep.subr.bf16.mxu0 %v10440_v34 }
 0x92e   : > { %7975 = vmatprep.mubr.msk.f32.mxu0 %vm829_vm1, %v2863_v57 }
 0x92f   : > { %7976 = vmatmul.mubr.msk.f32.gmra.mrb[28].mxu0 %vm829_vm1, %v7963_v1 }
 0x930   : > { %8640 = vmatpush3.bf16.msra.mxu0 %v10440_v34  ;;  %v7966_v52 = vpop.f32.mrb[46].mxu0 }
 0x931   : > { %v2873_v32 = vpop.f32.mrb[47].mxu0  ;;  %8642 = vmatprep.subr.bf16.mxu0 %v10452_v43 }
 0x932   : > { %7978 = vmatprep.mubr.msk.f32.mxu0 %vm829_vm1, %v2873_v32 }
 0x933   : > { %7979 = vmatmul.mubr.msk.f32.gmra.mrb[30].mxu0 %vm829_vm1, %v7966_v52 }
 0x934   : > { %8644 = vmatpush3.bf16.msra.mxu0 %v10452_v43 }
 0x935   : > { %8654 = vmatprep.subr.bf16.mxu0 %v9726_v20 }
 0x9fa   : > { %v7971_v48 = vpop.f32.mrb[24].mxu0 }
 0x9fb   : > { %v2972_v56 = vpop.f32.mrb[25].mxu0  ;;  %v3022_v47 = vsel %vm548_vm0, %v7971_v48, 0.0 }
 0x9fc   : > { %3023 = vadd.xlane.f32.xlu0 %v3022_v47  ;;  %v3019_v29 = vsel %vm548_vm0, %v2972_v56, 0.0  ;;  %v533_v47 = vld [vmem:[%s11641_s6 + $0x28] sm:$0xff] }
 0x9fd   : > { %3020 = vadd.xlane.f32.xlu1 %v3019_v29 }
 0x9fe   : > { %v7974_v59 = vpop.f32.mrb[26].mxu0 }
 0x9ff   : > { %v2982_v13 = vpop.f32.mrb[27].mxu0  ;;  %v3028_v3 = vsel %vm548_vm0, %v7974_v59, 0.0 }
 0xa00   : > { %3029 = vadd.xlane.f32.xlu0 %v3028_v3  ;;  %v3025_v8 = vsel %vm548_vm0, %v2982_v13, 0.0 }
 0xa01   : > { %3026 = vadd.xlane.f32.xlu1 %v3025_v8  ;;  %v528_v8 = vld [vmem:[%s11641_s6] sm:$0xff] }
 0xa02   : > { %v7977_v55 = vpop.f32.mrb[28].mxu0 }
 0xa03   : > { %v2992_v17 = vpop.f32.mrb[29].mxu0  ;;  %v3034_v51 = vsel %vm548_vm0, %v7977_v55, 0.0 }
 0xa04   : > { %3035 = vadd.xlane.f32.xlu0 %v3034_v51  ;;  %v3031_v36 = vsel %vm548_vm0, %v2992_v17, 0.0 }
 0xa05   : > { %3032 = vadd.xlane.f32.xlu1 %v3031_v36 }
 0xa06   : > { %v7980_v54 = vpop.f32.mrb[30].mxu0 }
 0xa07   : > { %v3002_v30 = vpop.f32.mrb[31].mxu0  ;;  %v3040_v61 = vsel %vm548_vm0, %v7980_v54, 0.0 }
 0xa08   : > { %3041 = vadd.xlane.f32.xlu0 %v3040_v61  ;;  %v3037_v58 = vsel %vm548_vm0, %v3002_v30, 0.0 }
 0xa09   : > { %3038 = vadd.xlane.f32.xlu1 %v3037_v58 }
 0xa89   : > { %v3024_v44 = vpop.xlane.xlu0 %3023 }
 0xa8a   : > { %v3045_v10 = vmul.f32 0.03125, %v3024_v44  ;;  %v3021_v60 = vpop.xlane.xlu1 %3020 }
 0xa8b   : > { %v3044_v14 = vmul.f32 0.03125, %v3021_v60 }
 0xa8c   : > { %v10470_v38 = vsub.f32 %v7971_v48, %v3045_v10 }
 0xa8d   : > { %v10472_v31 = vsub.f32 %v2972_v56, %v3044_v14  ;;  %v3030_v63 = vpop.xlane.xlu0 %3029  ;;  %v532_v56 = vld [vmem:[%s11641_s6 + $0x20] sm:$0xff] }
 0xa8e   : > { %v3047_v33 = vmul.f32 0.03125, %v3030_v63  ;;  %v3027_v50 = vpop.xlane.xlu1 %3026  ;;  %v3061_v7 = vmul.f32 %v10470_v38, %v10470_v38  ;;  %v10516_v29 = vpack.c.bf16 %v533_v47, %v532_v56 }
 0xa8f   : > { %v3046_v45 = vmul.f32 0.03125, %v3027_v50  ;;  %v3060_v11 = vmul.f32 %v10472_v31, %v10472_v31 }
 0xa90   : > { %v10478_v16 = vsub.f32 %v7974_v59, %v3047_v33  ;;  %v3071_v53 = vsel %vm548_vm0, %v3061_v7, 0.0  ;;  %8614 = vmatprep.subr.bf16.mxu1 %v10516_v29  ;;  %v534_v59 = vld [vmem:[%s11641_s6 + $0x30] sm:$0xff] }
 0xa91   : > { %v10481_v5 = vsub.f32 %v2982_v13, %v3046_v45  ;;  %v3036_v18 = vpop.xlane.xlu0 %3035  ;;  %3072 = vadd.xlane.f32.xlu0 %v3071_v53  ;;  %v3068_v27 = vsel %vm548_vm0, %v3060_v11, 0.0  ;;  %v535_v13 = vld [vmem:[%s11641_s6 + $0x38] sm:$0xff]  ;;  %8616 = vmatpush3.bf16.msra.mxu1 %v10516_v29 }
 0xa92   : > { %v3049_v40 = vmul.f32 0.03125, %v3036_v18  ;;  %v3033_v2 = vpop.xlane.xlu1 %3032  ;;  %3069 = vadd.xlane.f32.xlu1 %v3068_v27  ;;  %v3063_v23 = vmul.f32 %v10478_v16, %v10478_v16  ;;  %v10526_v3 = vpack.c.bf16 %v535_v13, %v534_v59 }
 0xa93   : > { %v3048_v25 = vmul.f32 0.03125, %v3033_v2  ;;  %v3062_v21 = vmul.f32 %v10481_v5, %v10481_v5 }
 0xa94   : > { %v10488_v12 = vsub.f32 %v7977_v55, %v3049_v40  ;;  %v3077_v15 = vsel %vm548_vm0, %v3063_v23, 0.0  ;;  %8618 = vmatprep.subr.bf16.mxu1 %v10526_v3  ;;  %v529_v55 = vld [vmem:[%s11641_s6 + $0x8] sm:$0xff] }
 0xa95   : > { %v10491_v28 = vsub.f32 %v2992_v17, %v3048_v25  ;;  %3078 = vadd.xlane.f32.xlu0 %v3077_v15  ;;  %v3042_v41 = vpop.xlane.xlu0 %3041  ;;  %v3074_v35 = vsel %vm548_vm0, %v3062_v21, 0.0  ;;  %8620 = vmatpush3.bf16.msra.mxu1 %v10526_v3  ;;  %v10536_v17 = vpack.c.bf16 %v529_v55, %v528_v8  ;;  %v7002_v21 = vld [vmem:[%s11643_s8] ss:$0 sm:$0xff] }
 0xa96   : > { %v3051_v37 = vmul.f32 0.03125, %v3042_v41  ;;  %3075 = vadd.xlane.f32.xlu1 %v3074_v35  ;;  %v3039_v62 = vpop.xlane.xlu1 %3038  ;;  %v3065_v0 = vmul.f32 %v10488_v12, %v10488_v12 }
 0xa97   : > { %v3050_v22 = vmul.f32 0.03125, %v3039_v62  ;;  %v3064_v49 = vmul.f32 %v10491_v28, %v10491_v28  ;;  %8622 = vmatprep.subr.bf16.mxu1 %v10536_v17 }
 0xa98   : > { %v10498_v39 = vsub.f32 %v7980_v54, %v3051_v37  ;;  %v3083_v9 = vsel %vm548_vm0, %v3065_v0, 0.0 }
 0xa99   : > { %v10501_v46 = vsub.f32 %v3002_v30, %v3050_v22  ;;  %3084 = vadd.xlane.f32.xlu0 %v3083_v9  ;;  %v3080_v1 = vsel %vm548_vm0, %v3064_v49, 0.0  ;;  %v7003_v22 = vld [vmem:[%s11644_s9] ss:$0 sm:$0xff] }
 0xa9a   : > { %3081 = vadd.xlane.f32.xlu1 %v3080_v1  ;;  %v3067_v57 = vmul.f32 %v10498_v39, %v10498_v39  ;;  %v530_v1 = vld [vmem:[%s11641_s6 + $0x10] sm:$0xff] }
 0xa9b   : > { %v3066_v52 = vmul.f32 %v10501_v46, %v10501_v46 }
 0xa9c   : > { %v3089_v32 = vsel %vm548_vm0, %v3067_v57, 0.0 }
 0xa9d   : > { %3090 = vadd.xlane.f32.xlu0 %v3089_v32  ;;  %v3086_v48 = vsel %vm548_vm0, %v3066_v52, 0.0 }
 0xa9e   : > { %3087 = vadd.xlane.f32.xlu1 %v3086_v48 }
 0xb1e   : > { %v3073_v51 = vpop.xlane.xlu0 %3072 }
 0xb1f   : > { %v3093_v36 = vmul.f32 0.03125, %v3073_v51  ;;  %v3070_v54 = vpop.xlane.xlu1 %3069 }
 0xb20   : > { %v3092_v30 = vmul.f32 0.03125, %v3070_v54 }
 0xb21   : > { %v3101_v61 = vadd.f32 1e-05, %v3093_v36 }
 0xb22   : > { %v3100_v58 = vadd.f32 1e-05, %v3092_v30  ;;  %v3079_v44 = vpop.xlane.xlu0 %3078 }
 0xb23   : > { %9350 = vrsqrt.f32 %v3101_v61  ;;  %v3095_v10 = vmul.f32 0.03125, %v3079_v44  ;;  %v3076_v60 = vpop.xlane.xlu1 %3075 }
 0xb24   : > { %9352 = vrsqrt.f32 %v3100_v58  ;;  %v3094_v14 = vmul.f32 0.03125, %v3076_v60 }
 0xb25   : > { %v3103_v63 = vadd.f32 1e-05, %v3095_v10 }
 0xb26   : > { %v3102_v33 = vadd.f32 1e-05, %v3094_v14  ;;  %v3085_v50 = vpop.xlane.xlu0 %3084 }
 0xb27   : > { %9354 = vrsqrt.f32 %v3103_v63  ;;  %v3097_v7 = vmul.f32 0.03125, %v3085_v50  ;;  %v3082_v45 = vpop.xlane.xlu1 %3081  ;;  %v10579_v63 = vld [vmem:[%s9708_s27 + $0x8] sm:$0xff]  ;;  %v10591_v50 = vld [vmem:[%s9708_s27 + $0x18] sm:$0xff] }
 0xb28   : > { %9356 = vrsqrt.f32 %v3102_v33  ;;  %v3096_v11 = vmul.f32 0.03125, %v3082_v45  ;;  %v10584_v33 = vld [vmem:[%s9708_s27 + $0x10] sm:$0xff]  ;;  %v10602_v45 = vld [vmem:[%s9708_s27 + $0x28] sm:$0xff] }
 0xb29   : > { %v3105_v53 = vadd.f32 1e-05, %v3097_v7  ;;  %v10596_v7 = vld [vmem:[%s9708_s27 + $0x20] sm:$0xff] }
 0xb2a   : > { %v3104_v18 = vadd.f32 1e-05, %v3096_v11  ;;  %v3091_v27 = vpop.xlane.xlu0 %3090  ;;  %v10612_v11 = vld [vmem:[%s9708_s27 + $0x38] sm:$0xff] }
 0xb2b   : > { %9358 = vrsqrt.f32 %v3105_v53  ;;  %v3099_v40 = vmul.f32 0.03125, %v3091_v27  ;;  %v3088_v2 = vpop.xlane.xlu1 %3087  ;;  %v9551_v53 = vld [vmem:[%s9697_s22] sm:$0xff]  ;;  %v9554_v27 = vld [vmem:[%s9697_s22 + $0x18] sm:$0xff] }
 0xb2c   : > { %9360 = vrsqrt.f32 %v3104_v18  ;;  %v3098_v23 = vmul.f32 0.03125, %v3088_v2  ;;  %v9553_v18 = vld [vmem:[%s9697_s22 + $0x10] sm:$0xff]  ;;  %v9556_v2 = vld [vmem:[%s9697_s22 + $0x28] sm:$0xff] }
 0xb2d   : > { %v9351_v25 = vpop.eup %9350  ;;  %v3107_v15 = vadd.f32 1e-05, %v3099_v40  ;;  %v9555_v40 = vld [vmem:[%s9697_s22 + $0x20] sm:$0xff] }
 0xb2e   : > { %v9353_v41 = vpop.eup %9352  ;;  %v3117_v35 = vmul.f32 %v9351_v25, %v10470_v38  ;;  %v3106_v37 = vadd.f32 1e-05, %v3098_v23  ;;  %v531_v38 = vld [vmem:[%s11641_s6 + $0x18] sm:$0xff]  ;;  %v9557_v23 = vld [vmem:[%s9697_s22 + $0x30] sm:$0xff] }
 0xb2f   : > { %9362 = vrsqrt.f32 %v3107_v15  ;;  %v3116_v62 = vmul.f32 %v9353_v41, %v10472_v31  ;;  %v10555_v47 = vpack.c.bf16 %v531_v38, %v530_v1  ;;  %v9558_v25 = vld [vmem:[%s9697_s22 + $0x38] sm:$0xff] }
 0xb30   : > { %v3131_v0 = vmul.f32 %v7002_v21, %v3117_v35  ;;  %9364 = vrsqrt.f32 %v3106_v37 }
 0xb31   : > { %v9355_v49 = vpop.eup %9354  ;;  %v3130_v9 = vmul.f32 %v7002_v21, %v3116_v62 }
 0xb32   : > { %v9357_v57 = vpop.eup %9356  ;;  %v3119_v52 = vmul.f32 %v9355_v49, %v10478_v16  ;;  %v3145_v48 = vadd.f32 %v7003_v22, %v3131_v0 }
 0xb33   : > { %v3144_v31 = vadd.f32 %v7003_v22, %v3130_v9  ;;  %v3118_v32 = vmul.f32 %v9357_v57, %v10481_v5 }
 0xb34   : > { %v3133_v56 = vmul.f32 %v7002_v21, %v3119_v52 }
 0xb35   : > { %v9359_v59 = vpop.eup %9358  ;;  %7989 = vmatprep.mubr.msk.f32.mxu1 %vm548_vm0, %v3144_v31  ;;  %v3132_v13 = vmul.f32 %v7002_v21, %v3118_v32 }
 0xb36   : > { %v9361_v8 = vpop.eup %9360  ;;  %7990 = vmatmul.mubr.msk.f32.vlgmr.msra.gmra.mrb[40].mxu1 %vm548_vm0, %v3145_v48  ;;  %v3121_v55 = vmul.f32 %v9359_v59, %v10488_v12  ;;  %v3147_v36 = vadd.f32 %v7003_v22, %v3133_v56 }
 0xb37   : > { %8624 = vmatpush3.bf16.msra.mxu1 %v10536_v17  ;;  %v3146_v51 = vadd.f32 %v7003_v22, %v3132_v13  ;;  %v3120_v16 = vmul.f32 %v9361_v8, %v10491_v28 }
 0xb38   : > { %v3135_v5 = vmul.f32 %v7002_v21, %v3121_v55  ;;  %8626 = vmatprep.subr.bf16.mxu1 %v10555_v47 }
 0xb39   : > { %v9363_v54 = vpop.eup %9362  ;;  %7992 = vmatprep.mubr.msk.f32.mxu1 %vm548_vm0, %v3146_v51  ;;  %v3134_v30 = vmul.f32 %v7002_v21, %v3120_v16 }
 0xb3a   : > { %v9365_v61 = vpop.eup %9364  ;;  %7993 = vmatmul.mubr.msk.f32.gmra.mrb[42].mxu1 %vm548_vm0, %v3147_v36  ;;  %v3123_v58 = vmul.f32 %v9363_v54, %v10498_v39  ;;  %v3149_v44 = vadd.f32 %v7003_v22, %v3135_v5 }
 0xb3b   : > { %v3148_v12 = vadd.f32 %v7003_v22, %v3134_v30  ;;  %8628 = vmatpush3.bf16.msra.mxu1 %v10555_v47  ;;  %v3122_v28 = vmul.f32 %v9365_v61, %v10501_v46  ;;  %v10574_v46 = vld [vmem:[%s9708_s27] sm:$0xff] }
 0xb3c   : > { %v3137_v10 = vmul.f32 %v7002_v21, %v3123_v58  ;;  %8646 = vmatprep.subr.bf16.mxu1 %v9678_v4 }
 0xb3d   : > { %7995 = vmatprep.mubr.msk.f32.mxu1 %vm548_vm0, %v3148_v12  ;;  %v3136_v60 = vmul.f32 %v7002_v21, %v3122_v28 }
 0xb3e   : > { %7996 = vmatmul.mubr.msk.f32.gmra.mrb[44].mxu1 %vm548_vm0, %v3149_v44  ;;  %v3151_v39 = vadd.f32 %v7003_v22, %v3137_v10 }
 0xb3f   : > { %v3150_v14 = vadd.f32 %v7003_v22, %v3136_v60 }
 0xb41   : > { %7998 = vmatprep.mubr.msk.f32.mxu1 %vm548_vm0, %v3150_v14 }
 0xb42   : > { %7999 = vmatmul.mubr.msk.f32.gmra.mrb[46].mxu1 %vm548_vm0, %v3151_v39 }
 0xb43   : > { %8009 = vmatprep.mubr.msk.f32.mxu1 %vm548_vm0, %v10574_v46 }
 0xb46   : > { %8010 = vmatmul.mubr.msk.f32.vlgmr.msra.gmra.mrb[40].mxu1 %vm548_vm0, %v10579_v63 }
 0xb47   : > { %8012 = vmatprep.mubr.msk.f32.mxu1 %vm548_vm0, %v10584_v33  ;;  %8648 = vmatpush3.bf16.msra.mxu1 %v9678_v4  ;;  %v10607_v4 = vld [vmem:[%s9708_s27 + $0x30] sm:$0xff]  ;;  %s10805_s27 = scalar_lea.vmem %s11638_s3, %s11661_s26  ;;  %s11657_s26 = smov 104  }
 0xb48   : > { %8650 = vmatprep.subr.bf16.mxu1 %v9683_v6 }
 0xb4a   : > { %8013 = vmatmul.mubr.msk.f32.gmra.mrb[42].mxu1 %vm548_vm0, %v10591_v50 }
 0xb4b   : > { %8015 = vmatprep.mubr.msk.f32.mxu1 %vm548_vm0, %v10596_v7  ;;  %8652 = vmatpush3.bf16.msra.mxu1 %v9683_v6  ;;  %v9552_v6 = vld [vmem:[%s9697_s22 + $0x8] sm:$0xff] }
 0xb4e   : > { %8016 = vmatmul.mubr.msk.f32.gmra.mrb[44].mxu1 %vm548_vm0, %v10602_v45 }
 0xb4f   : > { %8018 = vmatprep.mubr.msk.f32.mxu1 %vm548_vm0, %v10607_v4 }
 0xb52   : > { %8019 = vmatmul.mubr.msk.f32.gmra.mrb[46].mxu1 %vm548_vm0, %v10612_v11 }
 0xb53   : > { %8057 = vmatprep.mubr.msk.f32.mxu1 %vm548_vm0, %v9551_v53 }
 0xb56   : > { %8058 = vmatmul.mubr.msk.f32.vlgmr.msra.gmra.mrb[48].mxu1 %vm548_vm0, %v9552_v6 }
 0xb57   : > { %8060 = vmatprep.mubr.msk.f32.mxu1 %vm548_vm0, %v9553_v18 }
 0xb5a   : > { %8061 = vmatmul.mubr.msk.f32.gmra.mrb[50].mxu1 %vm548_vm0, %v9554_v27 }
 0xb5b   : > { %8063 = vmatprep.mubr.msk.f32.mxu1 %vm548_vm0, %v9555_v40 }
 0xb5e   : > { %8064 = vmatmul.mubr.msk.f32.gmra.mrb[52].mxu1 %vm548_vm0, %v9556_v2 }
 0xb5f   : > { %8066 = vmatprep.mubr.msk.f32.mxu1 %vm548_vm0, %v9557_v23 }
 0xb62   : > { %8067 = vmatmul.mubr.msk.f32.gmra.mrb[54].mxu1 %vm548_vm0, %v9558_v25 }
 0xc19   : > { %v8011_v21 = vpop.f32.mrb[40].mxu1 }
 0xc1a   : > { %v3347_v15 = vpop.f32.mrb[41].mxu1  ;;  %v3387_v35 = vmax.f32 %v8011_v21, 0.0 }
 0xc1b   : > { %v3386_v41 = vmax.f32 %v3347_v15, 0.0 }
 0xc1d   : > { %v8014_v37 = vpop.f32.mrb[42].mxu1  ;;  %8037 = vmatprep.mubr.msk.f32.mxu0 %vm983_vm3, %v3386_v41 }
 0xc1e   : > { %v3357_v62 = vpop.f32.mrb[43].mxu1  ;;  %8038 = vmatmul.mubr.msk.f32.vlgmr.msra.gmra.mrb[48].mxu0 %vm983_vm3, %v3387_v35  ;;  %v3389_v22 = vmax.f32 %v8014_v37, 0.0 }
 0xc1f   : > { %v3388_v0 = vmax.f32 %v3357_v62, 0.0  ;;  %8656 = vmatpush3.bf16.msra.mxu0 %v9726_v20 }
 0xc20   : > { %8658 = vmatprep.subr.bf16.mxu0 %v9730_v24 }
 0xc21   : > { %v8017_v49 = vpop.f32.mrb[44].mxu1  ;;  %8040 = vmatprep.mubr.msk.f32.mxu0 %vm983_vm3, %v3388_v0 }
 0xc22   : > { %v3367_v9 = vpop.f32.mrb[45].mxu1  ;;  %8041 = vmatmul.mubr.msk.f32.gmra.mrb[50].mxu0 %vm983_vm3, %v3389_v22  ;;  %v3391_v38 = vmax.f32 %v8017_v49, 0.0 }
 0xc23   : > { %v3390_v1 = vmax.f32 %v3367_v9, 0.0  ;;  %8660 = vmatpush3.bf16.msra.mxu0 %v9730_v24 }
 0xc25   : > { %v8020_v57 = vpop.f32.mrb[46].mxu1  ;;  %8043 = vmatprep.mubr.msk.f32.mxu0 %vm983_vm3, %v3390_v1 }
 0xc26   : > { %v3377_v52 = vpop.f32.mrb[47].mxu1  ;;  %8044 = vmatmul.mubr.msk.f32.gmra.mrb[52].mxu0 %vm983_vm3, %v3391_v38  ;;  %v3393_v31 = vmax.f32 %v8020_v57, 0.0 }
 0xc27   : > { %v3392_v20 = vmax.f32 %v3377_v52, 0.0 }
 0xc29   : > { %8046 = vmatprep.mubr.msk.f32.mxu0 %vm983_vm3, %v3392_v20 }
 0xc2a   : > { %8047 = vmatmul.mubr.msk.f32.gmra.mrb[54].mxu0 %vm983_vm3, %v3393_v31 }
 0xcf1   : > { %v8039_v32 = vpop.f32.mrb[48].mxu0 }
 0xcf2   : > { %v3484_v48 = vpop.f32.mrb[49].mxu0  ;;  %v3526_v56 = vsel %vm548_vm0, %v8039_v32, 0.0 }
 0xcf3   : > { %3527 = vadd.xlane.f32.xlu0 %v3526_v56  ;;  %v3523_v24 = vsel %vm548_vm0, %v3484_v48, 0.0 }
 0xcf4   : > { %3524 = vadd.xlane.f32.xlu1 %v3523_v24 }
 0xcf5   : > { %v8042_v59 = vpop.f32.mrb[50].mxu0 }
 0xcf6   : > { %v3494_v13 = vpop.f32.mrb[51].mxu0  ;;  %v3532_v8 = vsel %vm548_vm0, %v8042_v59, 0.0 }
 0xcf7   : > { %3533 = vadd.xlane.f32.xlu0 %v3532_v8  ;;  %v3529_v55 = vsel %vm548_vm0, %v3494_v13, 0.0 }
 0xcf8   : > { %3530 = vadd.xlane.f32.xlu1 %v3529_v55 }
 0xcf9   : > { %v8045_v51 = vpop.f32.mrb[52].mxu0 }
 0xcfa   : > { %v3504_v16 = vpop.f32.mrb[53].mxu0  ;;  %v3538_v36 = vsel %vm548_vm0, %v8045_v51, 0.0 }
 0xcfb   : > { %3539 = vadd.xlane.f32.xlu0 %v3538_v36  ;;  %v3535_v5 = vsel %vm548_vm0, %v3504_v16, 0.0 }
 0xcfc   : > { %3536 = vadd.xlane.f32.xlu1 %v3535_v5 }
 0xcfd   : > { %v8048_v54 = vpop.f32.mrb[54].mxu0 }
 0xcfe   : > { %v3514_v30 = vpop.f32.mrb[55].mxu0  ;;  %v3544_v61 = vsel %vm548_vm0, %v8048_v54, 0.0 }
 0xcff   : > { %3545 = vadd.xlane.f32.xlu0 %v3544_v61  ;;  %v3541_v58 = vsel %vm548_vm0, %v3514_v30, 0.0 }
 0xd00   : > { %3542 = vadd.xlane.f32.xlu1 %v3541_v58 }
 0xd80   : > { %v3528_v12 = vpop.xlane.xlu0 %3527 }
 0xd81   : > { %v3548_v28 = vmul.f32 0.03125, %v3528_v12  ;;  %v3525_v44 = vpop.xlane.xlu1 %3524 }
 0xd82   : > { %v3547_v10 = vmul.f32 0.03125, %v3525_v44 }
 0xd83   : > { %v10651_v60 = vsub.f32 %v8039_v32, %v3548_v28 }
 0xd84   : > { %v10653_v14 = vsub.f32 %v3484_v48, %v3547_v10  ;;  %v3534_v39 = vpop.xlane.xlu0 %3533 }
 0xd85   : > { %v3550_v53 = vmul.f32 0.03125, %v3534_v39  ;;  %v3531_v6 = vpop.xlane.xlu1 %3530  ;;  %v3564_v18 = vmul.f32 %v10651_v60, %v10651_v60 }
 0xd86   : > { %v3549_v27 = vmul.f32 0.03125, %v3531_v6  ;;  %v3563_v40 = vmul.f32 %v10653_v14, %v10653_v14 }
 0xd87   : > { %v10659_v2 = vsub.f32 %v8042_v59, %v3550_v53  ;;  %v3574_v23 = vsel %vm548_vm0, %v3564_v18, 0.0 }
 0xd88   : > { %v10662_v25 = vsub.f32 %v3494_v13, %v3549_v27  ;;  %v3540_v21 = vpop.xlane.xlu0 %3539  ;;  %3575 = vadd.xlane.f32.xlu0 %v3574_v23  ;;  %v3571_v15 = vsel %vm548_vm0, %v3563_v40, 0.0 }
 0xd89   : > { %v3552_v41 = vmul.f32 0.03125, %v3540_v21  ;;  %v3537_v35 = vpop.xlane.xlu1 %3536  ;;  %3572 = vadd.xlane.f32.xlu1 %v3571_v15  ;;  %v3566_v37 = vmul.f32 %v10659_v2, %v10659_v2 }
 0xd8a   : > { %v3551_v62 = vmul.f32 0.03125, %v3537_v35  ;;  %v3565_v0 = vmul.f32 %v10662_v25, %v10662_v25 }
 0xd8b   : > { %v10669_v22 = vsub.f32 %v8045_v51, %v3552_v41  ;;  %v3580_v49 = vsel %vm548_vm0, %v3566_v37, 0.0 }
 0xd8c   : > { %v10672_v9 = vsub.f32 %v3504_v16, %v3551_v62  ;;  %3581 = vadd.xlane.f32.xlu0 %v3580_v49  ;;  %v3546_v1 = vpop.xlane.xlu0 %3545  ;;  %v3577_v38 = vsel %vm548_vm0, %v3565_v0, 0.0  ;;  %v7028_v62 = vld [vmem:[%s11645_s10] ss:$0 sm:$0xff] }
 0xd8d   : > { %v3554_v57 = vmul.f32 0.03125, %v3546_v1  ;;  %3578 = vadd.xlane.f32.xlu1 %v3577_v38  ;;  %v3543_v52 = vpop.xlane.xlu1 %3542  ;;  %v3568_v20 = vmul.f32 %v10669_v22, %v10669_v22 }
 0xd8e   : > { %v3553_v31 = vmul.f32 0.03125, %v3543_v52  ;;  %v3567_v32 = vmul.f32 %v10672_v9, %v10672_v9 }
 0xd8f   : > { %v10679_v48 = vsub.f32 %v8048_v54, %v3554_v57  ;;  %v3586_v56 = vsel %vm548_vm0, %v3568_v20, 0.0  ;;  %v7029_v57 = vld [vmem:[%s11646_s11] ss:$0 sm:$0xff] }
 0xd90   : > { %v10682_v24 = vsub.f32 %v3514_v30, %v3553_v31  ;;  %3587 = vadd.xlane.f32.xlu0 %v3586_v56  ;;  %v3583_v59 = vsel %vm548_vm0, %v3567_v32, 0.0 }
 0xd91   : > { %3584 = vadd.xlane.f32.xlu1 %v3583_v59  ;;  %v3570_v13 = vmul.f32 %v10679_v48, %v10679_v48 }
 0xd92   : > { %v3569_v8 = vmul.f32 %v10682_v24, %v10682_v24 }
 0xd93   : > { %v3592_v55 = vsel %vm548_vm0, %v3570_v13, 0.0 }
 0xd94   : > { %3593 = vadd.xlane.f32.xlu0 %v3592_v55  ;;  %v3589_v51 = vsel %vm548_vm0, %v3569_v8, 0.0 }
 0xd95   : > { %3590 = vadd.xlane.f32.xlu1 %v3589_v51 }
 0xe15   : > { %v3576_v16 = vpop.xlane.xlu0 %3575 }
 0xe16   : > { %v3596_v36 = vmul.f32 0.03125, %v3576_v16  ;;  %v3573_v5 = vpop.xlane.xlu1 %3572 }
 0xe17   : > { %v3595_v54 = vmul.f32 0.03125, %v3573_v5 }
 0xe18   : > { %v3604_v30 = vadd.f32 1e-05, %v3596_v36 }
 0xe19   : > { %v3603_v61 = vadd.f32 1e-05, %v3595_v54  ;;  %v3582_v58 = vpop.xlane.xlu0 %3581 }
 0xe1a   : > { %9366 = vrsqrt.f32 %v3604_v30  ;;  %v3598_v12 = vmul.f32 0.03125, %v3582_v58  ;;  %v3579_v28 = vpop.xlane.xlu1 %3578 }
 0xe1b   : > { %9368 = vrsqrt.f32 %v3603_v61  ;;  %v3597_v44 = vmul.f32 0.03125, %v3579_v28 }
 0xe1c   : > { %v3606_v10 = vadd.f32 1e-05, %v3598_v12 }
 0xe1d   : > { %v3605_v39 = vadd.f32 1e-05, %v3597_v44  ;;  %v3588_v53 = vpop.xlane.xlu0 %3587 }
 0xe1e   : > { %9370 = vrsqrt.f32 %v3606_v10  ;;  %v3600_v6 = vmul.f32 0.03125, %v3588_v53  ;;  %v3585_v18 = vpop.xlane.xlu1 %3584 }
 0xe1f   : > { %9372 = vrsqrt.f32 %v3605_v39  ;;  %v3599_v27 = vmul.f32 0.03125, %v3585_v18 }
 0xe20   : > { %v3608_v40 = vadd.f32 1e-05, %v3600_v6 }
 0xe21   : > { %v3607_v23 = vadd.f32 1e-05, %v3599_v27  ;;  %v3594_v21 = vpop.xlane.xlu0 %3593 }
 0xe22   : > { %9374 = vrsqrt.f32 %v3608_v40  ;;  %v3602_v15 = vmul.f32 0.03125, %v3594_v21  ;;  %v3591_v41 = vpop.xlane.xlu1 %3590 }
 0xe23   : > { %9376 = vrsqrt.f32 %v3607_v23  ;;  %v3601_v35 = vmul.f32 0.03125, %v3591_v41 }
 0xe24   : > { %v9367_v37 = vpop.eup %9366  ;;  %v3610_v0 = vadd.f32 1e-05, %v3602_v15 }
 0xe25   : > { %v9369_v49 = vpop.eup %9368  ;;  %v3620_v1 = vmul.f32 %v9367_v37, %v10651_v60  ;;  %v3609_v38 = vadd.f32 1e-05, %v3601_v35 }
 0xe26   : > { %9378 = vrsqrt.f32 %v3610_v0  ;;  %v3619_v52 = vmul.f32 %v9369_v49, %v10653_v14 }
 0xe27   : > { %v3634_v20 = vmul.f32 %v7028_v62, %v3620_v1  ;;  %9380 = vrsqrt.f32 %v3609_v38 }
 0xe28   : > { %v9371_v31 = vpop.eup %9370  ;;  %v3633_v32 = vmul.f32 %v7028_v62, %v3619_v52 }
 0xe29   : > { %v9373_v56 = vpop.eup %9372  ;;  %v3648_v59 = vadd.f32 %v7029_v57, %v3634_v20  ;;  %v3622_v13 = vmul.f32 %v9371_v31, %v10659_v2 }
 0xe2a   : > { %v3647_v60 = vadd.f32 %v7029_v57, %v3633_v32  ;;  %v3621_v8 = vmul.f32 %v9373_v56, %v10662_v25 }
 0xe2b   : > { %v3656_v14 = vadd.f32 %v10579_v63, %v3648_v59  ;;  %v3636_v55 = vmul.f32 %v7028_v62, %v3622_v13 }
 0xe2c   : > { %v9375_v51 = vpop.eup %9374  ;;  %v3655_v16 = vadd.f32 %v10574_v46, %v3647_v60  ;;  %v3635_v36 = vmul.f32 %v7028_v62, %v3621_v8 }
 0xe2d   : > { %v9377_v5 = vpop.eup %9376  ;;  %6711 = vst.msk [vmem:[%s10704_s30 + $0x8] sm:$0xff] %vm548_vm0, %v3656_v14  ;;  %v3650_v2 = vadd.f32 %v7029_v57, %v3636_v55  ;;  %v3624_v54 = vmul.f32 %v9375_v51, %v10669_v22  ;;  %v10808_v55 = vld [vmem:[%s10805_s27] ss:$0 sm:$0xff] }
 0xe2e   : > { %8077 = vmatprep.mubr.msk.f32.mxu0 %vm548_vm0, %v3655_v16  ;;  %6710 = vst.msk [vmem:[%s10704_s30] sm:$0xff] %vm548_vm0, %v3655_v16  ;;  %v3649_v25 = vadd.f32 %v7029_v57, %v3635_v36  ;;  %v3623_v63 = vmul.f32 %v9377_v5, %v10672_v9 }
 0xe2f   : > { %8078 = vmatmul.mubr.msk.f32.vlgmr.msra.gmra.mrb[56].mxu0 %vm548_vm0, %v3656_v14  ;;  %v3658_v46 = vadd.f32 %v10591_v50, %v3650_v2  ;;  %v3638_v30 = vmul.f32 %v7028_v62, %v3624_v54 }
 0xe30   : > { %v9379_v61 = vpop.eup %9378  ;;  %v3657_v58 = vadd.f32 %v10584_v33, %v3649_v25  ;;  %v3637_v12 = vmul.f32 %v7028_v62, %v3623_v63 }
 0xe31   : > { %v9381_v28 = vpop.eup %9380  ;;  %6713 = vst.msk [vmem:[%s10704_s30 + $0x18] sm:$0xff] %vm548_vm0, %v3658_v46  ;;  %v3652_v22 = vadd.f32 %v7029_v57, %v3638_v30  ;;  %v3626_v44 = vmul.f32 %v9379_v61, %v10679_v48 }
 0xe32   : > { %8080 = vmatprep.mubr.msk.f32.mxu0 %vm548_vm0, %v3657_v58  ;;  %6712 = vst.msk [vmem:[%s10704_s30 + $0x10] sm:$0xff] %vm548_vm0, %v3657_v58  ;;  %v3651_v9 = vadd.f32 %v7029_v57, %v3637_v12  ;;  %v3625_v50 = vmul.f32 %v9381_v28, %v10682_v24 }
 0xe33   : > { %8081 = vmatmul.mubr.msk.f32.gmra.mrb[58].mxu0 %vm548_vm0, %v3658_v46  ;;  %v3660_v33 = vadd.f32 %v10602_v45, %v3652_v22  ;;  %v3640_v10 = vmul.f32 %v7028_v62, %v3626_v44 }
 0xe34   : > { %v3659_v39 = vadd.f32 %v10596_v7, %v3651_v9  ;;  %v3639_v53 = vmul.f32 %v7028_v62, %v3625_v50  ;;  %v10743_v7 = vpop.f32.mrb[48].mxu1 }
 0xe35   : > { %6715 = vst.msk [vmem:[%s10704_s30 + $0x28] sm:$0xff] %vm548_vm0, %v3660_v33  ;;  %v3654_v48 = vadd.f32 %v7029_v57, %v3640_v10  ;;  %v10745_v45 = vpop.f32.mrb[49].mxu1 }
 0xe36   : > { %8083 = vmatprep.mubr.msk.f32.mxu0 %vm548_vm0, %v3659_v39  ;;  %6714 = vst.msk [vmem:[%s10704_s30 + $0x20] sm:$0xff] %vm548_vm0, %v3659_v39  ;;  %v3653_v6 = vadd.f32 %v7029_v57, %v3639_v53  ;;  %8105 = vmatprep.mubr.msk.f32.mxu1 %vm829_vm1, %v10745_v45  ;;  %v10749_v27 = vpop.f32.mrb[50].mxu1 }
 0xe37   : > { %8084 = vmatmul.mubr.msk.f32.gmra.mrb[60].mxu0 %vm548_vm0, %v3660_v33  ;;  %v3662_v24 = vadd.f32 %v10612_v11, %v3654_v48  ;;  %v10751_v11 = vpop.f32.mrb[51].mxu1 }
 0xe38   : > { %v3661_v18 = vadd.f32 %v10607_v4, %v3653_v6  ;;  %v10753_v4 = vpop.f32.mrb[52].mxu1 }
 0xe39   : > { %6717 = vst.msk [vmem:[%s10704_s30 + $0x38] sm:$0xff] %vm548_vm0, %v3662_v24  ;;  %v10755_v40 = vpop.f32.mrb[53].mxu1 }
 0xe3a   : > { %8086 = vmatprep.mubr.msk.f32.mxu0 %vm548_vm0, %v3661_v18  ;;  %6716 = vst.msk [vmem:[%s10704_s30 + $0x30] sm:$0xff] %vm548_vm0, %v3661_v18  ;;  %v10757_v23 = vpop.f32.mrb[54].mxu1 }
 0xe3b   : > { %8087 = vmatmul.mubr.msk.f32.gmra.mrb[62].mxu0 %vm548_vm0, %v3662_v24  ;;  %v10759_v21 = vpop.f32.mrb[55].mxu1 }
 0xf02   : > { %v8079_v15 = vpop.f32.mrb[56].mxu0 }
 0xf03   : > { %v3858_v41 = vpop.f32.mrb[57].mxu0 }
 0xf04   : > { %v10761_v35 = vpack.i.bf16 %v8079_v15, %v3858_v41  ;;  %v8661_v37 = vpack.c.bf16 %v8079_v15, %v3858_v41 }
 0xf06   : > { %9083 = vrot.lane.b32.xlu1 %v10761_v35, %s9584_s18  ;;  %v8082_v62 = vpop.f32.mrb[58].mxu0  ;;  %8663 = vmatprep.subr.msk.bf16.mxu1 %vm9768_vm2, %v8661_v37 }
 0xf07   : > { %v3868_v0 = vpop.f32.mrb[59].mxu0  ;;  %8666 = vmatpush3.bf16.xpose.msk.msra.mxu1 %vm9768_vm2, %v8661_v37 }
 0xf08   : > { %v8667_v49 = vpack.c.bf16 %v8082_v62, %v3868_v0  ;;  %v10769_v1 = vpack.i.bf16 %v8082_v62, %v3868_v0 }
 0xf0a   : > { %v8085_v38 = vpop.f32.mrb[60].mxu0  ;;  %8669 = vmatprep.subr.msk.bf16.mxu1 %vm9768_vm2, %v8667_v49 }
 0xf0b   : > { %v3878_v57 = vpop.f32.mrb[61].mxu0 }
 0xf0c   : > { %v8673_v52 = vpack.c.bf16 %v8085_v38, %v3878_v57  ;;  %v10773_v20 = vpack.i.bf16 %v8085_v38, %v3878_v57 }
 0xf0e   : > { %v8088_v31 = vpop.f32.mrb[62].mxu0 }
 0xf0f   : > { %v3888_v32 = vpop.f32.mrb[63].mxu0  ;;  %8672 = vmatpush3.bf16.xpose.msk.msra.mxu1 %vm9768_vm2, %v8667_v49 }
 0xf10   : > { %8675 = vmatprep.subr.msk.bf16.mxu1 %vm9768_vm2, %v8673_v52  ;;  %v8679_v56 = vpack.c.bf16 %v8088_v31, %v3888_v32  ;;  %v10779_v59 = vpack.i.bf16 %v8088_v31, %v3888_v32 }
 0xf17   : > { %8678 = vmatpush3.bf16.xpose.msk.msra.mxu1 %vm9768_vm2, %v8673_v52 }
 0xf18   : > { %8681 = vmatprep.subr.msk.bf16.mxu1 %vm9768_vm2, %v8679_v56 }
 0xf1f   : > { %8684 = vmatpush3.bf16.xpose.msk.msra.mxu1 %vm9768_vm2, %v8679_v56 }
 0xf26   : > { %8106 = vmatmul.mubr.msk.f32.vlgmr.msra.gmra.mrb[56].mxu1 %vm829_vm1, %v10743_v7 }
 0xf27   : > { %8108 = vmatprep.mubr.msk.f32.mxu1 %vm829_vm1, %v10751_v11 }
 0xf2a   : > { %8109 = vmatmul.mubr.msk.f32.gmra.mrb[58].mxu1 %vm829_vm1, %v10749_v27 }
 0xf2b   : > { %8111 = vmatprep.mubr.msk.f32.mxu1 %vm829_vm1, %v10755_v40 }
 0xf2e   : > { %8112 = vmatmul.mubr.msk.f32.gmra.mrb[60].mxu1 %vm829_vm1, %v10753_v4 }
 0xf2f   : > { %8114 = vmatprep.mubr.msk.f32.mxu1 %vm829_vm1, %v10759_v21 }
 0xf32   : > { %8115 = vmatmul.mubr.msk.f32.gmra.mrb[62].mxu1 %vm829_vm1, %v10757_v23 }
 0xf78   : > { %v9084_v13 = vpop.permute.xlu1 %9083 }
 0xf79   : > { %v9086_v60 = vunpack.i.h.bf16 %v9084_v13  ;;  %v9085_v8 = vunpack.i.l.bf16 %v9084_v13 }
 0xf7b   : > { %v8685_v14 = vpack.c.bf16 %v9086_v60, %v9085_v8 }
 0xf7d   : > { %8686 = vmatprep.subr.bf16.mxu0 %v8685_v14 }
 0xf7e   : > { %8688 = vmatpush3.bf16.msra.mxu0 %v8685_v14 }
 0xff9   : > { %v8107_v51 = vpop.f32.mrb[56].mxu1 }
 0xffa   : > { %v4023_v16 = vadd.f32 %v8107_v51, %v10808_v55  ;;  %v4017_v36 = vpop.f32.mrb[57].mxu1 }
 0xffb   : > { %v4018_v5 = vadd.f32 %v10808_v55, %v4017_v36 }
 0xffc   : > { %v4059_v2 = vsel %vm983_vm3, %v4023_v16, -inf }
 0xffd   : > { %4060 = vmax.xlane.f32.xlu0 %v4059_v2  ;;  %v8110_v54 = vpop.f32.mrb[58].mxu1  ;;  %v4056_v25 = vsel %vm983_vm3, %v4018_v5, -inf }
 0xffe   : > { %v10815_v63 = vadd.f32 %v8110_v54, %v10808_v55  ;;  %v4027_v46 = vpop.f32.mrb[59].mxu1  ;;  %4057 = vmax.xlane.f32.xlu1 %v4056_v25 }
 0xfff   : > { %v4028_v30 = vadd.f32 %v10808_v55, %v4027_v46 }
0x1000   : > { %v4065_v61 = vsel %vm983_vm3, %v10815_v63, -inf }
0x1001   : > { %4066 = vmax.xlane.f32.xlu0 %v4065_v61  ;;  %v8113_v58 = vpop.f32.mrb[60].mxu1  ;;  %v4062_v12 = vsel %vm983_vm3, %v4028_v30, -inf }
0x1002   : > { %v4043_v28 = vadd.f32 %v8113_v58, %v10808_v55  ;;  %v4037_v22 = vpop.f32.mrb[61].mxu1  ;;  %4063 = vmax.xlane.f32.xlu1 %v4062_v12 }
0x1003   : > { %v4038_v44 = vadd.f32 %v10808_v55, %v4037_v22 }
0x1004   : > { %v4071_v9 = vsel %vm983_vm3, %v4043_v28, -inf }
0x1005   : > { %4072 = vmax.xlane.f32.xlu0 %v4071_v9  ;;  %v8116_v50 = vpop.f32.mrb[62].mxu1  ;;  %v4068_v33 = vsel %vm983_vm3, %v4038_v44, -inf }
0x1006   : > { %v4053_v10 = vadd.f32 %v8116_v50, %v10808_v55  ;;  %4069 = vmax.xlane.f32.xlu1 %v4068_v33  ;;  %v4047_v39 = vpop.f32.mrb[63].mxu1 }
0x1007   : > { %v10832_v48 = vadd.f32 %v10808_v55, %v4047_v39 }
0x1008   : > { %v4077_v53 = vsel %vm983_vm3, %v4053_v10, -inf }
0x1009   : > { %4078 = vmax.xlane.f32.xlu0 %v4077_v53  ;;  %v4074_v6 = vsel %vm983_vm3, %v10832_v48, -inf }
0x1017   : > { %9093 = vrot.lane.b32.xlu1 %v10773_v20, %s9584_s18 }
0x101f   : > { %9088 = vrot.lane.b32.xlu0 %v10769_v1, %s9584_s18 }
0x103b   : > { %4075 = vmax.xlane.f32.xlu1 %v4074_v6 }
0x104c   : > { %9098 = vrot.lane.b32.xlu1 %v10779_v59, %s9584_s18  ;;  %s11658_s18 = smov 80  }
0x108a   : > { %v4061_v24 = vpop.xlane.xlu0 %4060 }
0x108b   : > { %v4081_v18 = vsub.f32 %v4023_v16, %v4061_v24  ;;  %v4058_v15 = vpop.xlane.xlu1 %4057 }
0x108c   : > { %v4080_v41 = vsub.f32 %v4018_v5, %v4058_v15 }
0x108d   : > { %v4090_v37 = vmul.f32 1.442695, %v4081_v18 }
0x108e   : > { %v4088_v62 = vmul.f32 1.442695, %v4080_v41  ;;  %v4067_v0 = vpop.xlane.xlu0 %4066 }
0x108f   : > { %9382 = vpow2.f32 %v4090_v37  ;;  %v4064_v49 = vpop.xlane.xlu1 %4063  ;;  %v4083_v6 = vsub.f32 %v10815_v63, %v4067_v0 }
0x1090   : > { %9384 = vpow2.f32 %v4088_v62  ;;  %v4082_v38 = vsub.f32 %v4028_v30, %v4064_v49 }
0x1091   : > { %v4094_v24 = vmul.f32 1.442695, %v4083_v6 }
0x1092   : > { %v4092_v57 = vmul.f32 1.442695, %v4082_v38  ;;  %v4073_v52 = vpop.xlane.xlu0 %4072 }
0x1093   : > { %v4085_v31 = vsub.f32 %v4043_v28, %v4073_v52  ;;  %v4070_v32 = vpop.xlane.xlu1 %4069 }
0x1094   : > { %9386 = vpow2.f32 %v4092_v57  ;;  %v4084_v56 = vsub.f32 %v4038_v44, %v4070_v32 }
0x1095   : > { %v4098_v13 = vmul.f32 1.442695, %v4085_v31 }
0x1096   : > { %v4096_v60 = vmul.f32 1.442695, %v4084_v56  ;;  %v4079_v8 = vpop.xlane.xlu0 %4078 }
0x1097   : > { %9388 = vpow2.f32 %v4098_v13  ;;  %v4087_v14 = vsub.f32 %v4053_v10, %v4079_v8  ;;  %v9094_v51 = vpop.permute.xlu1 %9093 }
0x1098   : > { %9390 = vpow2.f32 %v4096_v60  ;;  %v9096_v2 = vunpack.i.h.bf16 %v9094_v51  ;;  %v9095_v46 = vunpack.i.l.bf16 %v9094_v51 }
0x1099   : > { %v10838_v16 = vpop.eup %9382  ;;  %v4102_v5 = vmul.f32 1.442695, %v4087_v14 }
0x109a   : > { %v10840_v36 = vpop.eup %9384  ;;  %v9089_v54 = vpop.permute.xlu0 %9088  ;;  %v4107_v25 = vsel %vm983_vm3, %v10838_v16, 0.0  ;;  %v8693_v44 = vpack.c.bf16 %v9096_v2, %v9095_v46 }
0x109b   : > { %v9091_v30 = vunpack.i.h.bf16 %v9089_v54  ;;  %v9090_v61 = vunpack.i.l.bf16 %v9089_v54  ;;  %4108 = vadd.xlane.f32.xlu0 %v4107_v25  ;;  %v4104_v58 = vsel %vm983_vm3, %v10840_v36, 0.0  ;;  %9392 = vpow2.f32 %v4102_v5 }
0x109c   : > { %4105 = vadd.xlane.f32.xlu1 %v4104_v58  ;;  %9394 = vpow2.f32 %v4094_v24 }
0x109d   : > { %v8689_v12 = vpack.c.bf16 %v9091_v30, %v9090_v61 }
0x109e   : > { %v10846_v28 = vpop.eup %9386 }
0x109f   : > { %8690 = vmatprep.subr.bf16.mxu0 %v8689_v12  ;;  %v4110_v22 = vsel %vm983_vm3, %v10846_v28, 0.0 }
0x10a0   : > { %4111 = vadd.xlane.f32.xlu0 %v4110_v22  ;;  %8692 = vmatpush3.bf16.msra.mxu0 %v8689_v12 }
0x10a1   : > { %v10850_v9 = vpop.eup %9388  ;;  %8694 = vmatprep.subr.bf16.mxu0 %v8693_v44 }
0x10a2   : > { %v4119_v50 = vsel %vm983_vm3, %v10850_v9, 0.0  ;;  %v10854_v33 = vpop.eup %9390 }
0x10a3   : > { %v4116_v10 = vsel %vm983_vm3, %v10854_v33, 0.0 }
0x10a4   : > { %4120 = vadd.xlane.f32.xlu0 %v4119_v50  ;;  %8696 = vmatpush3.bf16.msra.mxu0 %v8693_v44 }
0x10a5   : > { %v10858_v39 = vpop.eup %9392 }
0x10a6   : > { %v4125_v53 = vsel %vm983_vm3, %v10858_v39, 0.0  ;;  %v10866_v62 = vpop.eup %9394 }
0x10a7   : > { %v4113_v52 = vsel %vm983_vm3, %v10866_v62, 0.0 }
0x10a8   : > { %4117 = vadd.xlane.f32.xlu0 %v4116_v10 }
0x10ac   : > { %4126 = vadd.xlane.f32.xlu0 %v4125_v53 }
0x10ad   : > { %9103 = vrot.lane.b32.xlu1 %v10761_v35, %s9585_s14 }
0x10c8   : > { %v4076_v18 = vpop.xlane.xlu1 %4075 }
0x10c9   : > { %v4086_v15 = vsub.f32 %v10832_v48, %v4076_v18 }
0x10cb   : > { %v4100_v41 = vmul.f32 1.442695, %v4086_v15 }
0x10cc   : > { %v9099_v37 = vpop.permute.xlu1 %9098 }
0x10cd   : > { %9396 = vpow2.f32 %v4100_v41  ;;  %v9101_v49 = vunpack.i.h.bf16 %v9099_v37  ;;  %v9100_v38 = vunpack.i.l.bf16 %v9099_v37 }
0x10cf   : > { %v8697_v57 = vpack.c.bf16 %v9101_v49, %v9100_v38 }
0x10d1   : > { %4114 = vadd.xlane.f32.xlu1 %v4113_v52  ;;  %8698 = vmatprep.subr.bf16.mxu0 %v8697_v57 }
0x10d2   : > { %8700 = vmatpush3.bf16.msra.mxu0 %v8697_v57 }
0x10d7   : > { %v10870_v63 = vpop.eup %9396 }
0x10d8   : > { %v4122_v0 = vsel %vm983_vm3, %v10870_v63, 0.0 }
0x10d9   : > { %4123 = vadd.xlane.f32.xlu0 %v4122_v0 }
0x10e2   : > { %9113 = vrot.lane.b32.xlu1 %v10773_v20, %s9585_s14 }
0x10e6   : > { %9118 = vrot.lane.b32.xlu1 %v10779_v59, %s9585_s14 }
0x10ea   : > { %4305 = vrot.lane.b32.xlu1 %v10745_v45, %s9585_s14 }
0x10ee   : > { %4307 = vrot.lane.b32.xlu1 %v10743_v7, %s9585_s14 }
0x10ef   : > { %9108 = vrot.lane.b32.xlu0 %v10769_v1, %s9585_s14 }
0x10f2   : > { %4311 = vrot.lane.b32.xlu1 %v10749_v27, %s9585_s14 }
0x10f3   : > { %4309 = vrot.lane.b32.xlu0 %v10751_v11, %s9585_s14 }
0x10f6   : > { %4315 = vrot.lane.b32.xlu1 %v10753_v4, %s9585_s14 }
0x10f7   : > { %4313 = vrot.lane.b32.xlu0 %v10755_v40, %s9585_s14 }
0x10fa   : > { %4319 = vrot.lane.b32.xlu1 %v10757_v23, %s9585_s14 }
0x10fb   : > { %4317 = vrot.lane.b32.xlu0 %v10759_v21, %s9585_s14 }
0x10fe   : > { %9128 = vrot.lane.b32.xlu1 %v10769_v1, %s9586_s15 }
0x10ff   : > { %9123 = vrot.lane.b32.xlu0 %v10761_v35, %s9586_s15 }
0x1102   : > { %9138 = vrot.lane.b32.xlu1 %v10779_v59, %s9586_s15 }
0x1103   : > { %9133 = vrot.lane.b32.xlu0 %v10773_v20, %s9586_s15 }
0x1106   : > { %4983 = vrot.lane.b32.xlu1 %v10743_v7, %s9586_s15 }
0x1107   : > { %4981 = vrot.lane.b32.xlu0 %v10745_v45, %s9586_s15 }
0x110a   : > { %4987 = vrot.lane.b32.xlu1 %v10749_v27, %s9586_s15 }
0x110b   : > { %4985 = vrot.lane.b32.xlu0 %v10751_v11, %s9586_s15 }
0x110e   : > { %4991 = vrot.lane.b32.xlu1 %v10753_v4, %s9586_s15 }
0x110f   : > { %4989 = vrot.lane.b32.xlu0 %v10755_v40, %s9586_s15 }
0x1112   : > { %4995 = vrot.lane.b32.xlu1 %v10757_v23, %s9586_s15 }
0x1113   : > { %4993 = vrot.lane.b32.xlu0 %v10759_v21, %s9586_s15 }
0x1128   : > { %v4109_v48 = vpop.xlane.xlu0 %4108 }
0x1129   : > { %9398 = vrcp.f32 %v4109_v48  ;;  %v4106_v31 = vpop.xlane.xlu1 %4105 }
0x112a   : > { %9400 = vrcp.f32 %v4106_v31 }
0x112d   : > { %v4112_v32 = vpop.xlane.xlu0 %4111  ;;  %v9104_v56 = vpop.permute.xlu1 %9103 }
0x112e   : > { %9402 = vrcp.f32 %v4112_v32  ;;  %v9106_v13 = vunpack.i.h.bf16 %v9104_v56  ;;  %v9105_v60 = vunpack.i.l.bf16 %v9104_v56 }
0x1130   : > { %v8701_v8 = vpack.c.bf16 %v9106_v13, %v9105_v60 }
0x1131   : > { %v4121_v46 = vpop.xlane.xlu0 %4120 }
0x1132   : > { %8703 = vmatprep.subr.msk.bf16.mxu0 %vm9768_vm2, %v8701_v8 }
0x1133   : > { %v9399_v14 = vpop.eup %9398 }
0x1134   : > { %v9401_v51 = vpop.eup %9400  ;;  %v4145_v2 = vmul.f32 %v9399_v14, %v10838_v16 }
0x1135   : > { %v4144_v5 = vmul.f32 %v9401_v51, %v10840_v36  ;;  %v4118_v30 = vpop.xlane.xlu0 %4117 }
0x1136   : > { %9404 = vrcp.f32 %v4118_v30 }
0x1137   : > { %8133 = vmatprep.mubr.msk.f32.mxu0 %vm983_vm3, %v4144_v5 }
0x1138   : > { %v9403_v54 = vpop.eup %9402  ;;  %8134 = vmatmul.mubr.msk.f32.vlgmr.msra.gmra.mrb[64].mxu0 %vm983_vm3, %v4145_v2 }
0x1139   : > { %8706 = vmatpush3.bf16.xpose.msk.msra.mxu0 %vm9768_vm2, %v8701_v8  ;;  %v4146_v25 = vmul.f32 %v9403_v54, %v10846_v28  ;;  %v4127_v36 = vpop.xlane.xlu0 %4126 }
0x113b   : > { %8136 = vmatprep.mubr.msk.f32.mxu0 %vm983_vm3, %v4146_v25 }
0x1140   : > { %v9405_v22 = vpop.eup %9404 }
0x1141   : > { %v4148_v18 = vmul.f32 %v9405_v22, %v10854_v33 }
0x115e   : > { %v4115_v61 = vpop.xlane.xlu1 %4114 }
0x115f   : > { %9406 = vrcp.f32 %v4115_v61 }
0x1160   : > { %9408 = vrcp.f32 %v4121_v46 }
0x1161   : > { %9410 = vrcp.f32 %v4127_v36 }
0x1162   : > { %v9114_v16 = vpop.permute.xlu1 %9113 }
0x1163   : > { %v9116_v15 = vunpack.i.h.bf16 %v9114_v16  ;;  %v9115_v41 = vunpack.i.l.bf16 %v9114_v16 }
0x1165   : > { %v8713_v52 = vpack.c.bf16 %v9116_v15, %v9115_v41 }
0x1166   : > { %v4124_v58 = vpop.xlane.xlu0 %4123  ;;  %v9119_v12 = vpop.permute.xlu1 %9118 }
0x1167   : > { %9412 = vrcp.f32 %v4124_v58  ;;  %v9121_v32 = vunpack.i.h.bf16 %v9119_v12  ;;  %v9120_v56 = vunpack.i.l.bf16 %v9119_v12 }
0x1169   : > { %v9407_v44 = vpop.eup %9406  ;;  %v8719_v8 = vpack.c.bf16 %v9121_v32, %v9120_v56 }
0x116a   : > { %v9109_v50 = vpop.permute.xlu0 %9108  ;;  %v4306_v10 = vpop.permute.xlu1 %4305  ;;  %v4147_v28 = vmul.f32 %v9407_v44, %v10866_v62 }
0x116b   : > { %v9409_v53 = vpop.eup %9408  ;;  %v9111_v6 = vunpack.i.h.bf16 %v9109_v50  ;;  %v9110_v24 = vunpack.i.l.bf16 %v9109_v50 }
0x116c   : > { %8137 = vmatmul.mubr.msk.f32.gmra.mrb[66].mxu0 %vm983_vm3, %v4147_v28  ;;  %v4149_v57 = vmul.f32 %v9409_v53, %v10850_v9  ;;  %v9411_v62 = vpop.eup %9410 }
0x116d   : > { %v8707_v37 = vpack.c.bf16 %v9111_v6, %v9110_v24  ;;  %8139 = vmatprep.mubr.msk.f32.mxu0 %vm983_vm3, %v4148_v18  ;;  %v4151_v9 = vmul.f32 %v9411_v62, %v10858_v39 }
0x116e   : > { %v4310_v49 = vpop.permute.xlu0 %4309  ;;  %v4308_v38 = vpop.permute.xlu1 %4307 }
0x116f   : > { %8709 = vmatprep.subr.msk.bf16.mxu0 %vm9768_vm2, %v8707_v37 }
0x1170   : > { %8140 = vmatmul.mubr.msk.f32.gmra.mrb[68].mxu0 %vm983_vm3, %v4149_v57 }
0x1171   : > { %v9413_v0 = vpop.eup %9412  ;;  %8712 = vmatpush3.bf16.xpose.msk.msra.mxu0 %vm9768_vm2, %v8707_v37 }
0x1172   : > { %8715 = vmatprep.subr.msk.bf16.mxu0 %vm9768_vm2, %v8713_v52  ;;  %v4314_v33 = vpop.permute.xlu0 %4313  ;;  %v4312_v48 = vpop.permute.xlu1 %4311  ;;  %v4150_v31 = vmul.f32 %v9413_v0, %v10870_v63 }
0x1174   : > { %8142 = vmatprep.mubr.msk.f32.mxu0 %vm983_vm3, %v4150_v31 }
0x1175   : > { %8143 = vmatmul.mubr.msk.f32.gmra.mrb[70].mxu0 %vm983_vm3, %v4151_v9 }
0x1176   : > { %v4318_v13 = vpop.permute.xlu0 %4317  ;;  %v4316_v60 = vpop.permute.xlu1 %4315  ;;  %8161 = vmatprep.mubr.msk.f32.mxu0 %vm829_vm1, %v4306_v10 }
0x1179   : > { %8718 = vmatpush3.bf16.xpose.msk.msra.mxu0 %vm9768_vm2, %v8713_v52 }
0x117a   : > { %8721 = vmatprep.subr.msk.bf16.mxu0 %vm9768_vm2, %v8719_v8  ;;  %v9124_v63 = vpop.permute.xlu0 %9123  ;;  %v4320_v14 = vpop.permute.xlu1 %4319 }
0x117b   : > { %v9126_v39 = vunpack.i.h.bf16 %v9124_v63  ;;  %v9125_v51 = vunpack.i.l.bf16 %v9124_v63 }
0x117d   : > { %v8741_v5 = vpack.c.bf16 %v9126_v39, %v9125_v51 }
0x117e   : > { %v9129_v2 = vpop.permute.xlu1 %9128  ;;  %v9134_v30 = vpop.permute.xlu0 %9133 }
0x117f   : > { %v9131_v54 = vunpack.i.h.bf16 %v9129_v2  ;;  %v9130_v25 = vunpack.i.l.bf16 %v9129_v2  ;;  %v9136_v61 = vunpack.i.h.bf16 %v9134_v30  ;;  %v9135_v36 = vunpack.i.l.bf16 %v9134_v30 }
0x1181   : > { %8724 = vmatpush3.bf16.xpose.msk.msra.mxu0 %vm9768_vm2, %v8719_v8  ;;  %v8747_v46 = vpack.c.bf16 %v9131_v54, %v9130_v25  ;;  %v8753_v16 = vpack.c.bf16 %v9136_v61, %v9135_v36 }
0x1182   : > { %8743 = vmatprep.subr.msk.bf16.mxu0 %vm9768_vm2, %v8741_v5  ;;  %v9139_v58 = vpop.permute.xlu1 %9138  ;;  %v4982_v12 = vpop.permute.xlu0 %4981 }
0x1183   : > { %v9141_v22 = vunpack.i.h.bf16 %v9139_v58  ;;  %v9140_v44 = vunpack.i.l.bf16 %v9139_v58 }
0x1185   : > { %v8759_v50 = vpack.c.bf16 %v9141_v22, %v9140_v44 }
0x1186   : > { %v4984_v10 = vpop.permute.xlu1 %4983  ;;  %v4986_v28 = vpop.permute.xlu0 %4985 }
0x1188   : > { %8162 = vmatmul.mubr.msk.f32.vlgmr.msra.gmra.mrb[72].mxu0 %vm829_vm1, %v4308_v38 }
0x1189   : > { %8164 = vmatprep.mubr.msk.f32.mxu0 %vm829_vm1, %v4310_v49  ;;  %8746 = vmatpush3.bf16.xpose.msk.msra.mxu0 %vm9768_vm2, %v8741_v5 }
0x118a   : > { %8749 = vmatprep.subr.msk.bf16.mxu0 %vm9768_vm2, %v8747_v46  ;;  %v4988_v53 = vpop.permute.xlu1 %4987  ;;  %v4990_v6 = vpop.permute.xlu0 %4989 }
0x118c   : > { %8165 = vmatmul.mubr.msk.f32.gmra.mrb[74].mxu0 %vm829_vm1, %v4312_v48 }
0x118d   : > { %8167 = vmatprep.mubr.msk.f32.mxu0 %vm829_vm1, %v4314_v33 }
0x118e   : > { %v4992_v24 = vpop.permute.xlu1 %4991  ;;  %v4994_v18 = vpop.permute.xlu0 %4993 }
0x1190   : > { %8168 = vmatmul.mubr.msk.f32.gmra.mrb[76].mxu0 %vm829_vm1, %v4316_v60 }
0x1191   : > { %8170 = vmatprep.mubr.msk.f32.mxu0 %vm829_vm1, %v4318_v13  ;;  %8752 = vmatpush3.bf16.xpose.msk.msra.mxu0 %vm9768_vm2, %v8747_v46 }
0x1192   : > { %8755 = vmatprep.subr.msk.bf16.mxu0 %vm9768_vm2, %v8753_v16  ;;  %v4996_v15 = vpop.permute.xlu1 %4995 }
0x1194   : > { %8171 = vmatmul.mubr.msk.f32.gmra.mrb[78].mxu0 %vm829_vm1, %v4320_v14 }
0x1195   : > { %8245 = vmatprep.mubr.msk.f32.mxu0 %vm829_vm1, %v4982_v12 }
0x1199   : > { %8758 = vmatpush3.bf16.xpose.msk.msra.mxu0 %vm9768_vm2, %v8753_v16 }
0x119a   : > { %8761 = vmatprep.subr.msk.bf16.mxu0 %vm9768_vm2, %v8759_v50 }
0x11a1   : > { %8764 = vmatpush3.bf16.xpose.msk.msra.mxu0 %vm9768_vm2, %v8759_v50 }
0x11a8   : > { %8246 = vmatmul.mubr.msk.f32.vlgmr.msra.gmra.mrb[80].mxu0 %vm829_vm1, %v4984_v10 }
0x11a9   : > { %8248 = vmatprep.mubr.msk.f32.mxu0 %vm829_vm1, %v4986_v28 }
0x11ac   : > { %8249 = vmatmul.mubr.msk.f32.gmra.mrb[82].mxu0 %vm829_vm1, %v4988_v53 }
0x11ad   : > { %8251 = vmatprep.mubr.msk.f32.mxu0 %vm829_vm1, %v4990_v6 }
0x11b0   : > { %8252 = vmatmul.mubr.msk.f32.gmra.mrb[84].mxu0 %vm829_vm1, %v4992_v24 }
0x11b1   : > { %8254 = vmatprep.mubr.msk.f32.mxu0 %vm829_vm1, %v4994_v18 }
0x11b4   : > { %8255 = vmatmul.mubr.msk.f32.gmra.mrb[86].mxu0 %vm829_vm1, %v4996_v15 }
0x120b   : > { %v10984_v41 = vpop.f32.mrb[64].mxu0 }
0x120c   : > { %v10986_v37 = vpop.f32.mrb[65].mxu0 }
0x123f   : > { %v10988_v49 = vpop.f32.mrb[66].mxu0 }
0x1240   : > { %v10990_v38 = vpop.f32.mrb[67].mxu0 }
0x1243   : > { %v10992_v57 = vpop.f32.mrb[68].mxu0 }
0x1244   : > { %v10994_v62 = vpop.f32.mrb[69].mxu0 }
0x1248   : > { %v10996_v52 = vpop.f32.mrb[70].mxu0 }
0x1249   : > { %v10998_v0 = vpop.f32.mrb[71].mxu0 }
0x125b   : > { %v8163_v33 = vpop.f32.mrb[72].mxu0 }
0x125c   : > { %v4441_v48 = vadd.f32 %v8163_v33, %v10808_v55  ;;  %v4435_v31 = vpop.f32.mrb[73].mxu0 }
0x125d   : > { %v4436_v9 = vadd.f32 %v10808_v55, %v4435_v31 }
0x125e   : > { %v4477_v32 = vsel %vm983_vm3, %v4441_v48, -inf }
0x125f   : > { %4478 = vmax.xlane.f32.xlu1 %v4477_v32  ;;  %v8166_v56 = vpop.f32.mrb[74].mxu0  ;;  %v4474_v13 = vsel %vm983_vm3, %v4436_v9, -inf }
0x1260   : > { %v4445_v60 = vpop.f32.mrb[75].mxu0  ;;  %4475 = vmax.xlane.f32.xlu0 %v4474_v13  ;;  %v4451_v63 = vadd.f32 %v8166_v56, %v10808_v55 }
0x1261   : > { %v4446_v8 = vadd.f32 %v10808_v55, %v4445_v60 }
0x1262   : > { %v4483_v46 = vsel %vm983_vm3, %v4451_v63, -inf }
0x1263   : > { %v8169_v14 = vpop.f32.mrb[76].mxu0  ;;  %v4480_v39 = vsel %vm983_vm3, %v4446_v8, -inf }
0x1264   : > { %v4455_v51 = vpop.f32.mrb[77].mxu0  ;;  %4481 = vmax.xlane.f32.xlu0 %v4480_v39  ;;  %v4461_v2 = vadd.f32 %v8169_v14, %v10808_v55 }
0x1265   : > { %v4456_v5 = vadd.f32 %v10808_v55, %v4455_v51 }
0x1266   : > { %v4489_v58 = vsel %vm983_vm3, %v4461_v2, -inf }
0x1267   : > { %v8172_v54 = vpop.f32.mrb[78].mxu0  ;;  %v4486_v25 = vsel %vm983_vm3, %v4456_v5, -inf }
0x1268   : > { %v4465_v30 = vpop.f32.mrb[79].mxu0  ;;  %4487 = vmax.xlane.f32.xlu1 %v4486_v25  ;;  %4484 = vmax.xlane.f32.xlu0 %v4483_v46  ;;  %v4471_v36 = vadd.f32 %v8172_v54, %v10808_v55 }
0x1269   : > { %v4466_v61 = vadd.f32 %v10808_v55, %v4465_v30 }
0x126a   : > { %v4495_v12 = vsel %vm983_vm3, %v4471_v36, -inf }
0x126b   : > { %v4492_v16 = vsel %vm983_vm3, %v4466_v61, -inf }
0x126c   : > { %4493 = vmax.xlane.f32.xlu1 %v4492_v16  ;;  %4490 = vmax.xlane.f32.xlu0 %v4489_v58 }
0x1270   : > { %4496 = vmax.xlane.f32.xlu0 %v4495_v12 }
0x127b   : > { %v11016_v22 = vpop.f32.mrb[80].mxu0 }
0x127c   : > { %v11018_v44 = vpop.f32.mrb[81].mxu0 }
0x127d   : > { %9143 = vrot.lane.b32.xlu1 %v10761_v35, %s9587_s16 }
0x127f   : > { %v11022_v50 = vpop.f32.mrb[82].mxu0 }
0x1280   : > { %v11024_v10 = vpop.f32.mrb[83].mxu0 }
0x1283   : > { %v11026_v28 = vpop.f32.mrb[84].mxu0 }
0x1284   : > { %v11028_v53 = vpop.f32.mrb[85].mxu0 }
0x1287   : > { %v11030_v6 = vpop.f32.mrb[86].mxu0 }
0x1288   : > { %v11032_v24 = vpop.f32.mrb[87].mxu0 }
0x12ec   : > { %v4479_v18 = vpop.xlane.xlu1 %4478 }
0x12ed   : > { %v4499_v15 = vsub.f32 %v4441_v48, %v4479_v18  ;;  %v4476_v33 = vpop.xlane.xlu0 %4475 }
0x12ee   : > { %v4498_v31 = vsub.f32 %v4436_v9, %v4476_v33 }
0x12ef   : > { %v4508_v32 = vmul.f32 1.442695, %v4499_v15 }
0x12f0   : > { %v4506_v56 = vmul.f32 1.442695, %v4498_v31 }
0x12f1   : > { %9414 = vpow2.f32 %v4508_v32  ;;  %v4482_v13 = vpop.xlane.xlu0 %4481 }
0x12f2   : > { %9416 = vpow2.f32 %v4506_v56  ;;  %v4500_v60 = vsub.f32 %v4446_v8, %v4482_v13 }
0x12f4   : > { %v4510_v14 = vmul.f32 1.442695, %v4500_v60 }
0x12f5   : > { %v4488_v39 = vpop.xlane.xlu1 %4487  ;;  %v4485_v51 = vpop.xlane.xlu0 %4484 }
0x12f6   : > { %9418 = vpow2.f32 %v4510_v14  ;;  %v4502_v54 = vsub.f32 %v4456_v5, %v4488_v39  ;;  %v4501_v25 = vsub.f32 %v4451_v63, %v4485_v51 }
0x12f8   : > { %v4514_v46 = vmul.f32 1.442695, %v4502_v54  ;;  %v4512_v30 = vmul.f32 1.442695, %v4501_v25 }
0x12f9   : > { %v4494_v16 = vpop.xlane.xlu1 %4493  ;;  %v4491_v58 = vpop.xlane.xlu0 %4490 }
0x12fa   : > { %9420 = vpow2.f32 %v4514_v46  ;;  %v4503_v48 = vsub.f32 %v4461_v2, %v4491_v58  ;;  %v4504_v15 = vsub.f32 %v4466_v61, %v4494_v16 }
0x12fb   : > { %v11034_v12 = vpop.eup %9414  ;;  %9422 = vpow2.f32 %v4512_v30 }
0x12fc   : > { %v11036_v9 = vpop.eup %9416  ;;  %v4516_v18 = vmul.f32 1.442695, %v4503_v48  ;;  %v4525_v8 = vsel %vm983_vm3, %v11034_v12, 0.0  ;;  %v4518_v14 = vmul.f32 1.442695, %v4504_v15 }
0x12fd   : > { %v9144_v33 = vpop.permute.xlu1 %9143  ;;  %4526 = vadd.xlane.f32.xlu0 %v4525_v8  ;;  %v4497_v5 = vpop.xlane.xlu0 %4496  ;;  %v4522_v63 = vsel %vm983_vm3, %v11036_v9, 0.0 }
0x12fe   : > { %v9146_v31 = vunpack.i.h.bf16 %v9144_v33  ;;  %v9145_v32 = vunpack.i.l.bf16 %v9144_v33  ;;  %v4505_v56 = vsub.f32 %v4471_v36, %v4497_v5  ;;  %4523 = vadd.xlane.f32.xlu1 %v4522_v63  ;;  %9424 = vpow2.f32 %v4516_v18 }
0x1300   : > { %v11042_v2 = vpop.eup %9418  ;;  %v8725_v13 = vpack.c.bf16 %v9146_v31, %v9145_v32  ;;  %v4520_v60 = vmul.f32 1.442695, %v4505_v56 }
0x1301   : > { %v4528_v39 = vsel %vm983_vm3, %v11042_v2, 0.0 }
0x1302   : > { %9426 = vpow2.f32 %v4520_v60  ;;  %8726 = vmatprep.subr.bf16.mxu1 %v8725_v13  ;;  %4529 = vadd.xlane.f32.xlu1 %v4528_v39 }
0x1303   : > { %8728 = vmatpush3.bf16.msra.mxu1 %v8725_v13  ;;  %9428 = vpow2.f32 %v4518_v14 }
0x1304   : > { %v11046_v61 = vpop.eup %9420 }
0x1305   : > { %v11048_v51 = vpop.eup %9422  ;;  %v4534_v36 = vsel %vm983_vm3, %v11046_v61, 0.0 }
0x1306   : > { %4535 = vadd.xlane.f32.xlu1 %v4534_v36  ;;  %v4531_v54 = vsel %vm983_vm3, %v11048_v51, 0.0 }
0x1307   : > { %4532 = vadd.xlane.f32.xlu0 %v4531_v54 }
0x1308   : > { %v11054_v25 = vpop.eup %9424 }
0x1309   : > { %v4537_v46 = vsel %vm983_vm3, %v11054_v25, 0.0 }
0x130b   : > { %4538 = vadd.xlane.f32.xlu0 %v4537_v46 }
0x130c   : > { %v11058_v30 = vpop.eup %9426 }
0x130d   : > { %v4543_v16 = vsel %vm983_vm3, %v11058_v30, 0.0  ;;  %v11062_v58 = vpop.eup %9428 }
0x130e   : > { %v4540_v48 = vsel %vm983_vm3, %v11062_v58, 0.0 }
0x130f   : > { %4544 = vadd.xlane.f32.xlu0 %v4543_v16 }
0x1313   : > { %4541 = vadd.xlane.f32.xlu0 %v4540_v48 }
0x1317   : > { %9153 = vrot.lane.b32.xlu1 %v10773_v20, %s9587_s16 }
0x131b   : > { %9158 = vrot.lane.b32.xlu1 %v10779_v59, %s9587_s16 }
0x131f   : > { %9163 = vrot.lane.b32.xlu1 %v10761_v35, %s11657_s26 }
0x1323   : > { %9168 = vrot.lane.b32.xlu1 %v10769_v1, %s11657_s26 }
0x1327   : > { %9178 = vrot.lane.b32.xlu1 %v10779_v59, %s11657_s26 }
0x1329   : > { %9148 = vrot.lane.b32.xlu0 %v10769_v1, %s9587_s16 }
0x132b   : > { %5538 = vrot.lane.b32.xlu1 %v10743_v7, %s11657_s26  ;;  %v11098_v7 = vadd.f32 %v11016_v22, %v10808_v55  ;;  %v11124_v22 = vadd.f32 %v11022_v50, %v10808_v55  ;;  %v11138_v50 = vadd.f32 %v11030_v6, %v10808_v55 }
0x132d   : > { %9173 = vrot.lane.b32.xlu0 %v10773_v20, %s11657_s26  ;;  %v5171_v8 = vsel %vm983_vm3, %v11138_v50, -inf }
0x132f   : > { %5542 = vrot.lane.b32.xlu1 %v10749_v27, %s11657_s26  ;;  %v11106_v27 = vadd.f32 %v10808_v55, %v11028_v53  ;;  %v11132_v53 = vadd.f32 %v11026_v28, %v10808_v55 }
0x1331   : > { %5536 = vrot.lane.b32.xlu0 %v10745_v45, %s11657_s26  ;;  %v11102_v45 = vadd.f32 %v10808_v55, %v11018_v44  ;;  %v5165_v18 = vsel %vm983_vm3, %v11132_v53, -inf }
0x1333   : > { %5546 = vrot.lane.b32.xlu1 %v10753_v4, %s11657_s26  ;;  %v11112_v4 = vadd.f32 %v10808_v55, %v11024_v10 }
0x1335   : > { %5540 = vrot.lane.b32.xlu0 %v10751_v11, %s11657_s26  ;;  %v5153_v11 = vsel %vm983_vm3, %v11098_v7, -inf  ;;  %v5156_v44 = vsel %vm983_vm3, %v11112_v4, -inf }
0x1337   : > { %5550 = vrot.lane.b32.xlu1 %v10757_v23, %s11657_s26  ;;  %v11118_v23 = vadd.f32 %v10808_v55, %v11032_v24  ;;  %v5159_v24 = vsel %vm983_vm3, %v11124_v22, -inf }
0x1339   : > { %5544 = vrot.lane.b32.xlu0 %v10755_v40, %s11657_s26  ;;  %v5150_v40 = vsel %vm983_vm3, %v11102_v45, -inf  ;;  %v5168_v10 = vsel %vm983_vm3, %v11118_v23, -inf }
0x133d   : > { %5548 = vrot.lane.b32.xlu0 %v10759_v21, %s11657_s26  ;;  %v5162_v21 = vsel %vm983_vm3, %v11106_v27, -inf }
0x135b   : > { %5154 = vmax.xlane.f32.xlu1 %v5153_v11 }
0x135c   : > { %5151 = vmax.xlane.f32.xlu0 %v5150_v40 }
0x135f   : > { %5163 = vmax.xlane.f32.xlu1 %v5162_v21 }
0x1360   : > { %5157 = vmax.xlane.f32.xlu0 %v5156_v44 }
0x1363   : > { %5169 = vmax.xlane.f32.xlu1 %v5168_v10 }
0x1364   : > { %5160 = vmax.xlane.f32.xlu0 %v5159_v24 }
0x1368   : > { %5166 = vmax.xlane.f32.xlu0 %v5165_v18 }
0x136c   : > { %5172 = vmax.xlane.f32.xlu0 %v5171_v8 }
0x1374   : > { %9183 = vrot.lane.b32.xlu1 %v10761_v35, %s11658_s18 }
0x138a   : > { %v4527_v33 = vpop.xlane.xlu0 %4526 }
0x138b   : > { %v4524_v28 = vpop.xlane.xlu1 %4523 }
0x138c   : > { %9430 = vrcp.f32 %v4524_v28 }
0x138d   : > { %9432 = vrcp.f32 %v4527_v33 }
0x138f   : > { %v4530_v15 = vpop.xlane.xlu1 %4529 }
0x1390   : > { %9434 = vrcp.f32 %v4530_v15 }
0x1393   : > { %v4536_v5 = vpop.xlane.xlu1 %4535 }
0x1394   : > { %v4533_v63 = vpop.xlane.xlu0 %4532 }
0x1395   : > { %9436 = vrcp.f32 %v4533_v63 }
0x1396   : > { %v9431_v31 = vpop.eup %9430  ;;  %9438 = vrcp.f32 %v4536_v5 }
0x1397   : > { %v9154_v55 = vpop.permute.xlu1 %9153  ;;  %v4562_v6 = vmul.f32 %v9431_v31, %v11036_v9  ;;  %v9433_v15 = vpop.eup %9432 }
0x1398   : > { %v4539_v32 = vpop.xlane.xlu0 %4538  ;;  %v9156_v16 = vunpack.i.h.bf16 %v9154_v55  ;;  %v9155_v48 = vunpack.i.l.bf16 %v9154_v55 }
0x1399   : > { %8189 = vmatprep.mubr.msk.f32.mxu1 %vm983_vm3, %v4562_v6  ;;  %9440 = vrcp.f32 %v4539_v32 }
0x139a   : > { %v8733_v18 = vpack.c.bf16 %v9156_v16, %v9155_v48 }
0x139b   : > { %v9159_v56 = vpop.permute.xlu1 %9158 }
0x139c   : > { %v4545_v13 = vpop.xlane.xlu0 %4544  ;;  %v9161_v28 = vunpack.i.h.bf16 %v9159_v56  ;;  %v9160_v31 = vunpack.i.l.bf16 %v9159_v56  ;;  %v9435_v56 = vpop.eup %9434 }
0x139d   : > { %v4564_v48 = vmul.f32 %v9435_v56, %v11042_v2  ;;  %v11175_v2 = vld [vmem:[%s11640_s5] sm:$0xff] }
0x139e   : > { %v8737_v33 = vpack.c.bf16 %v9161_v28, %v9160_v31 }
0x139f   : > { %v9164_v60 = vpop.permute.xlu1 %9163  ;;  %v9437_v32 = vpop.eup %9436 }
0x13a0   : > { %v9166_v14 = vunpack.i.h.bf16 %v9164_v60  ;;  %v9165_v39 = vunpack.i.l.bf16 %v9164_v60  ;;  %v4542_v36 = vpop.xlane.xlu0 %4541 }
0x13a1   : > { %9442 = vrcp.f32 %v4542_v36 }
0x13a2   : > { %v8781_v54 = vpack.c.bf16 %v9166_v14, %v9165_v39  ;;  %9444 = vrcp.f32 %v4545_v13 }
0x13a3   : > { %v9169_v46 = vpop.permute.xlu1 %9168 }
0x13a4   : > { %v9171_v11 = vunpack.i.h.bf16 %v9169_v46  ;;  %v9170_v40 = vunpack.i.l.bf16 %v9169_v46  ;;  %v9149_v21 = vpop.permute.xlu0 %9148  ;;  %8783 = vmatprep.subr.msk.bf16.mxu0 %vm9768_vm2, %v8781_v54  ;;  %v9559_v46 = vld [vmem:[%s11640_s5 + $0x8] sm:$0xff] }
0x13a5   : > { %v9151_v9 = vunpack.i.h.bf16 %v9149_v21  ;;  %v9150_v44 = vunpack.i.l.bf16 %v9149_v21  ;;  %8786 = vmatpush3.bf16.xpose.msk.msra.mxu0 %vm9768_vm2, %v8781_v54  ;;  %v4563_v54 = vmul.f32 %v9433_v15, %v11034_v12  ;;  %v4565_v12 = vmul.f32 %v9437_v32, %v11048_v51 }
0x13a6   : > { %v8787_v10 = vpack.c.bf16 %v9171_v11, %v9170_v40  ;;  %v9439_v11 = vpop.eup %9438 }
0x13a7   : > { %v8729_v24 = vpack.c.bf16 %v9151_v9, %v9150_v44  ;;  %v9179_v39 = vpop.permute.xlu1 %9178  ;;  %v9441_v13 = vpop.eup %9440  ;;  %v4566_v36 = vmul.f32 %v9439_v11, %v11046_v61 }
0x13a8   : > { %v9174_v8 = vpop.permute.xlu0 %9173  ;;  %8789 = vmatprep.subr.msk.bf16.mxu0 %vm9768_vm2, %v8787_v10  ;;  %v9181_v63 = vunpack.i.h.bf16 %v9179_v39  ;;  %v9180_v5 = vunpack.i.l.bf16 %v9179_v39  ;;  %v4567_v21 = vmul.f32 %v9441_v13, %v11054_v25 }
0x13a9   : > { %v9176_v55 = vunpack.i.h.bf16 %v9174_v8  ;;  %v9175_v6 = vunpack.i.l.bf16 %v9174_v8  ;;  %8730 = vmatprep.subr.bf16.mxu1 %v8729_v24 }
0x13aa   : > { %8732 = vmatpush3.bf16.msra.mxu1 %v8729_v24  ;;  %v8799_v16 = vpack.c.bf16 %v9181_v63, %v9180_v5 }
0x13ab   : > { %8734 = vmatprep.subr.bf16.mxu1 %v8733_v18  ;;  %v8793_v60 = vpack.c.bf16 %v9176_v55, %v9175_v6  ;;  %v9443_v40 = vpop.eup %9442  ;;  %v5539_v44 = vpop.permute.xlu1 %5538 }
0x13ac   : > { %v5537_v14 = vpop.permute.xlu0 %5536  ;;  %v9445_v9 = vpop.eup %9444  ;;  %v4568_v51 = vmul.f32 %v9443_v40, %v11062_v58 }
0x13ad   : > { %8315 = vmatprep.mubr.msk.f32.mxu0 %vm829_vm1, %v5537_v14  ;;  %8792 = vmatpush3.bf16.xpose.msk.msra.mxu0 %vm9768_vm2, %v8787_v10  ;;  %v4569_v61 = vmul.f32 %v9445_v9, %v11058_v30 }
0x13ae   : > { %8736 = vmatpush3.bf16.msra.mxu1 %v8733_v18  ;;  %8795 = vmatprep.subr.msk.bf16.mxu0 %vm9768_vm2, %v8793_v60 }
0x13af   : > { %8738 = vmatprep.subr.bf16.mxu1 %v8737_v33  ;;  %v5543_v24 = vpop.permute.xlu1 %5542 }
0x13b0   : > { %v5541_v10 = vpop.permute.xlu0 %5540 }
0x13b2   : > { %8740 = vmatpush3.bf16.msra.mxu1 %v8737_v33 }
0x13b3   : > { %8201 = vmatprep.subr.mxu1 %v9559_v46  ;;  %v5547_v42 = vpop.permute.xlu1 %5546 }
0x13b4   : > { %v5545_v25 = vpop.permute.xlu0 %5544 }
0x13b5   : > { %8190 = vmatmul.mubr.msk.f32.vlgmr.msra.gmra.mrb[64].mxu1 %vm983_vm3, %v4563_v54  ;;  %8798 = vmatpush3.bf16.xpose.msk.msra.mxu0 %vm9768_vm2, %v8793_v60 }
0x13b6   : > { %8192 = vmatprep.mubr.msk.f32.mxu1 %vm983_vm3, %v4564_v48  ;;  %8801 = vmatprep.subr.msk.bf16.mxu0 %vm9768_vm2, %v8799_v16 }
0x13b7   : > { %8202 = vmatpush3.msra.mxu1 %v9559_v46  ;;  %v5551_v58 = vpop.permute.xlu1 %5550 }
0x13b8   : > { %8215 = vmatprep.subr.mxu1 %v11175_v2  ;;  %v5549_v30 = vpop.permute.xlu0 %5548 }
0x13b9   : > { %8193 = vmatmul.mubr.msk.f32.gmra.mrb[66].mxu1 %vm983_vm3, %v4565_v12 }
0x13ba   : > { %8195 = vmatprep.mubr.msk.f32.mxu1 %vm983_vm3, %v4566_v36 }
0x13bd   : > { %8196 = vmatmul.mubr.msk.f32.gmra.mrb[68].mxu1 %vm983_vm3, %v4567_v21  ;;  %8804 = vmatpush3.bf16.xpose.msk.msra.mxu0 %vm9768_vm2, %v8799_v16 }
0x13be   : > { %8198 = vmatprep.mubr.msk.f32.mxu1 %vm983_vm3, %v4568_v51  ;;  %8822 = vmatprep.subr.bf16.mxu0 %v10516_v29 }
0x13c1   : > { %8199 = vmatmul.mubr.msk.f32.gmra.mrb[70].mxu1 %vm983_vm3, %v4569_v61 }
0x13c4   : > { %8316 = vmatmul.mubr.msk.f32.vlgmr.msra.gmra.mrb[88].mxu0 %vm829_vm1, %v5539_v44 }
0x13c5   : > { %8318 = vmatprep.mubr.msk.f32.mxu0 %vm829_vm1, %v5541_v10  ;;  %8824 = vmatpush3.bf16.msra.mxu0 %v10516_v29 }
0x13c6   : > { %8826 = vmatprep.subr.bf16.mxu0 %v10526_v3 }
0x13c8   : > { %8319 = vmatmul.mubr.msk.f32.gmra.mrb[90].mxu0 %vm829_vm1, %v5543_v24 }
0x13c9   : > { %8321 = vmatprep.mubr.msk.f32.mxu0 %vm829_vm1, %v5545_v25  ;;  %8828 = vmatpush3.bf16.msra.mxu0 %v10526_v3 }
0x13ca   : > { %8830 = vmatprep.subr.bf16.mxu0 %v10536_v17 }
0x13cc   : > { %8322 = vmatmul.mubr.msk.f32.gmra.mrb[92].mxu0 %vm829_vm1, %v5547_v42 }
0x13cd   : > { %8324 = vmatprep.mubr.msk.f32.mxu0 %vm829_vm1, %v5549_v30 }
0x13d0   : > { %8325 = vmatmul.mubr.msk.f32.gmra.mrb[94].mxu0 %vm829_vm1, %v5551_v58 }
0x13e8   : > { %v5155_v29 = vpop.xlane.xlu1 %5154 }
0x13e9   : > { %v5175_v18 = vsub.f32 %v11098_v7, %v5155_v29  ;;  %v5152_v8 = vpop.xlane.xlu0 %5151 }
0x13ea   : > { %v5174_v28 = vsub.f32 %v11102_v45, %v5152_v8 }
0x13eb   : > { %v5184_v31 = vmul.f32 1.442695, %v5175_v18 }
0x13ec   : > { %v5182_v55 = vmul.f32 1.442695, %v5174_v28  ;;  %v5164_v6 = vpop.xlane.xlu1 %5163 }
0x13ed   : > { %9446 = vpow2.f32 %v5184_v31  ;;  %v5178_v3 = vsub.f32 %v11106_v27, %v5164_v6  ;;  %v5158_v60 = vpop.xlane.xlu0 %5157 }
0x13ee   : > { %9448 = vpow2.f32 %v5182_v55  ;;  %v5176_v14 = vsub.f32 %v11112_v4, %v5158_v60 }
0x13ef   : > { %v5190_v33 = vmul.f32 1.442695, %v5178_v3 }
0x13f0   : > { %v5186_v39 = vmul.f32 1.442695, %v5176_v14  ;;  %v5170_v5 = vpop.xlane.xlu1 %5169 }
0x13f1   : > { %v5161_v15 = vpop.xlane.xlu0 %5160  ;;  %v5180_v46 = vsub.f32 %v11118_v23, %v5170_v5 }
0x13f2   : > { %9450 = vpow2.f32 %v5186_v39  ;;  %v5177_v63 = vsub.f32 %v11124_v22, %v5161_v15 }
0x13f3   : > { %9452 = vpow2.f32 %v5190_v33  ;;  %v5194_v11 = vmul.f32 1.442695, %v5180_v46 }
0x13f4   : > { %v5188_v7 = vmul.f32 1.442695, %v5177_v63  ;;  %v9184_v24 = vpop.permute.xlu1 %9183 }
0x13f5   : > { %v5167_v45 = vpop.xlane.xlu0 %5166  ;;  %v9186_v25 = vunpack.i.h.bf16 %v9184_v24  ;;  %v9185_v42 = vunpack.i.l.bf16 %v9184_v24 }
0x13f6   : > { %9454 = vpow2.f32 %v5188_v7  ;;  %v5179_v56 = vsub.f32 %v11132_v53, %v5167_v45  ;;  %v9561_v7 = vld [vmem:[%s10805_s27] ss:$0 sm:$0xff] }
0x13f7   : > { %v11206_v54 = vpop.eup %9446  ;;  %v8765_v18 = vpack.c.bf16 %v9186_v25, %v9185_v42 }
0x13f8   : > { %v11208_v27 = vpop.eup %9448  ;;  %v5192_v4 = vmul.f32 1.442695, %v5179_v56  ;;  %v5201_v32 = vsel %vm983_vm3, %v11206_v54, 0.0 }
0x13f9   : > { %v5173_v16 = vpop.xlane.xlu0 %5172  ;;  %5202 = vadd.xlane.f32.xlu0 %v5201_v32  ;;  %v5198_v22 = vsel %vm983_vm3, %v11208_v27, 0.0 }
0x13fa   : > { %9456 = vpow2.f32 %v5192_v4  ;;  %v5181_v48 = vsub.f32 %v11138_v50, %v5173_v16  ;;  %5199 = vadd.xlane.f32.xlu1 %v5198_v22 }
0x13fc   : > { %v11216_v53 = vpop.eup %9450  ;;  %v5196_v12 = vmul.f32 1.442695, %v5181_v48 }
0x13fd   : > { %v5204_v23 = vsel %vm983_vm3, %v11216_v53, 0.0  ;;  %v11220_v13 = vpop.eup %9452 }
0x13fe   : > { %9458 = vpow2.f32 %v5196_v12  ;;  %5205 = vadd.xlane.f32.xlu1 %v5204_v23  ;;  %v5210_v40 = vsel %vm983_vm3, %v11220_v13, 0.0 }
0x13ff   : > { %9460 = vpow2.f32 %v5194_v11 }
0x1400   : > { %v11222_v36 = vpop.eup %9454 }
0x1401   : > { %v5207_v50 = vsel %vm983_vm3, %v11222_v36, 0.0 }
0x1402   : > { %5211 = vadd.xlane.f32.xlu1 %v5210_v40  ;;  %5208 = vadd.xlane.f32.xlu0 %v5207_v50 }
0x1404   : > { %v11228_v21 = vpop.eup %9456 }
0x1405   : > { %v5213_v9 = vsel %vm983_vm3, %v11228_v21, 0.0 }
0x1406   : > { %5214 = vadd.xlane.f32.xlu0 %v5213_v9 }
0x1408   : > { %v11232_v51 = vpop.eup %9458 }
0x1409   : > { %v5219_v44 = vsel %vm983_vm3, %v11232_v51, 0.0  ;;  %v11236_v61 = vpop.eup %9460 }
0x140a   : > { %5220 = vadd.xlane.f32.xlu0 %v5219_v44  ;;  %v5216_v10 = vsel %vm983_vm3, %v11236_v61, 0.0 }
0x140e   : > { %5217 = vadd.xlane.f32.xlu0 %v5216_v10 }
0x1413   : > { %9193 = vrot.lane.b32.xlu1 %v10773_v20, %s11658_s18 }
0x1417   : > { %9198 = vrot.lane.b32.xlu1 %v10779_v59, %s11658_s18 }
0x1424   : > { %9188 = vrot.lane.b32.xlu0 %v10769_v1, %s11658_s18 }
0x1486   : > { %v5203_v8 = vpop.xlane.xlu0 %5202 }
0x1487   : > { %v5200_v29 = vpop.xlane.xlu1 %5199 }
0x1488   : > { %v8191_v30 = vpop.f32.mrb[64].mxu1  ;;  %9462 = vrcp.f32 %v5200_v29 }
0x1489   : > { %v4684_v58 = vpop.f32.mrb[65].mxu1  ;;  %9464 = vrcp.f32 %v5203_v8 }
0x148a   : > { %8203 = vmatprep.mubr.msk.f32.mxu1 %vm829_vm1, %v4684_v58 }
0x148b   : > { %8204 = vmatmul.mubr.msk.f32.vlgmr.msra.gmra.mrb[72].mxu1 %vm829_vm1, %v8191_v30  ;;  %v5206_v6 = vpop.xlane.xlu1 %5205 }
0x148c   : > { %8216 = vmatpush3.msra.mxu1 %v11175_v2  ;;  %v8194_v28 = vpop.f32.mrb[66].mxu1  ;;  %9466 = vrcp.f32 %v5206_v6 }
0x148d   : > { %8766 = vmatprep.subr.bf16.mxu1 %v8765_v18  ;;  %v4694_v31 = vpop.f32.mrb[67].mxu1 }
0x148e   : > { %8206 = vmatprep.mubr.msk.f32.mxu1 %vm829_vm1, %v4694_v31 }
0x148f   : > { %v11250_v55 = vpop.xlane.xlu0 %5208  ;;  %8207 = vmatmul.mubr.msk.f32.gmra.mrb[74].mxu1 %vm829_vm1, %v8194_v28  ;;  %v5212_v39 = vpop.xlane.xlu1 %5211 }
0x1490   : > { %v8197_v3 = vpop.f32.mrb[68].mxu1  ;;  %9468 = vrcp.f32 %v11250_v55 }
0x1491   : > { %v4704_v60 = vpop.f32.mrb[69].mxu1  ;;  %9470 = vrcp.f32 %v5212_v39 }
0x1492   : > { %8209 = vmatprep.mubr.msk.f32.mxu1 %vm829_vm1, %v4704_v60  ;;  %v9463_v58 = vpop.eup %9462 }
0x1493   : > { %v11254_v14 = vpop.xlane.xlu0 %5214  ;;  %8210 = vmatmul.mubr.msk.f32.gmra.mrb[76].mxu1 %vm829_vm1, %v8197_v3  ;;  %v9194_v16 = vpop.permute.xlu1 %9193  ;;  %v5238_v6 = vmul.f32 %v9463_v58, %v11208_v27 }
0x1494   : > { %v8200_v2 = vpop.f32.mrb[70].mxu1  ;;  %v9196_v10 = vunpack.i.h.bf16 %v9194_v16  ;;  %v9195_v24 = vunpack.i.l.bf16 %v9194_v16  ;;  %9472 = vrcp.f32 %v11254_v14  ;;  %v9465_v55 = vpop.eup %9464 }
0x1495   : > { %v4714_v33 = vpop.f32.mrb[71].mxu1 }
0x1496   : > { %8212 = vmatprep.mubr.msk.f32.mxu1 %vm829_vm1, %v4714_v33  ;;  %v8773_v28 = vpack.c.bf16 %v9196_v10, %v9195_v24  ;;  %v9467_v27 = vpop.eup %9466  ;;  %v9562_v33 = vld [vmem:[%s11640_s5 + $0x10] sm:$0xff] }
0x1497   : > { %v11258_v15 = vpop.xlane.xlu0 %5220  ;;  %8213 = vmatmul.mubr.msk.f32.gmra.mrb[78].mxu1 %vm829_vm1, %v8200_v2  ;;  %v8317_v63 = vpop.f32.mrb[88].mxu0 }
0x1498   : > { %8217 = vmatprep.mubr.msk.f32.mxu1 %vm829_vm1, %v10986_v37  ;;  %v11264_v5 = vadd.f32 %v9561_v7, %v8317_v63  ;;  %v5666_v45 = vpop.f32.mrb[89].mxu0  ;;  %v5240_v63 = vmul.f32 %v9467_v27, %v11216_v53 }
0x1499   : > { %v11266_v56 = vadd.f32 %v9561_v7, %v5666_v45 }
0x149a   : > { %v5708_v4 = vsel %vm983_vm3, %v11264_v5, -inf  ;;  %v9469_v39 = vpop.eup %9468 }
0x149b   : > { %v5218_v46 = vpop.xlane.xlu0 %5217  ;;  %8218 = vmatmul.mubr.msk.f32.vlgmr.msra.gmra.mrb[72].mxu1 %vm829_vm1, %v10984_v41  ;;  %v8320_v32 = vpop.f32.mrb[90].mxu0  ;;  %5709 = vmax.xlane.f32.xlu0 %v5708_v4  ;;  %v5705_v48 = vsel %vm983_vm3, %v11266_v56, -inf  ;;  %v5241_v14 = vmul.f32 %v9469_v39, %v11222_v36 }
0x149c   : > { %8768 = vmatpush3.bf16.msra.mxu1 %v8765_v18  ;;  %v11272_v37 = vadd.f32 %v9561_v7, %v8320_v32  ;;  %v5676_v22 = vpop.f32.mrb[91].mxu0  ;;  %8220 = vmatprep.mubr.msk.f32.mxu1 %vm829_vm1, %v10990_v38  ;;  %9474 = vrcp.f32 %v5218_v46 }
0x149d   : > { %v11278_v11 = vadd.f32 %v9561_v7, %v5676_v22  ;;  %5706 = vmax.xlane.f32.xlu1 %v5705_v48  ;;  %9476 = vrcp.f32 %v11258_v15 }
0x149e   : > { %v5714_v41 = vsel %vm983_vm3, %v11272_v37, -inf }
0x149f   : > { %v9189_v12 = vpop.permute.xlu0 %9188  ;;  %8221 = vmatmul.mubr.msk.f32.gmra.mrb[74].mxu1 %vm829_vm1, %v10988_v49  ;;  %v8323_v23 = vpop.f32.mrb[92].mxu0  ;;  %v5711_v40 = vsel %vm983_vm3, %v11278_v11, -inf  ;;  %5715 = vmax.xlane.f32.xlu0 %v5714_v41 }
0x14a0   : > { %v9191_v50 = vunpack.i.h.bf16 %v9189_v12  ;;  %v9190_v9 = vunpack.i.l.bf16 %v9189_v12  ;;  %8223 = vmatprep.mubr.msk.f32.mxu1 %vm829_vm1, %v10994_v62  ;;  %v11288_v38 = vadd.f32 %v9561_v7, %v8323_v23  ;;  %v5686_v44 = vpop.f32.mrb[93].mxu0  ;;  %v9199_v49 = vpop.permute.xlu1 %9198 }
0x14a1   : > { %v11290_v25 = vadd.f32 %v9561_v7, %v5686_v44  ;;  %5712 = vmax.xlane.f32.xlu1 %v5711_v40  ;;  %v9201_v31 = vunpack.i.h.bf16 %v9199_v49  ;;  %v9200_v3 = vunpack.i.l.bf16 %v9199_v49 }
0x14a2   : > { %v8769_v42 = vpack.c.bf16 %v9191_v50, %v9190_v9  ;;  %v5720_v30 = vsel %vm983_vm3, %v11288_v38, -inf }
0x14a3   : > { %8224 = vmatmul.mubr.msk.f32.gmra.mrb[76].mxu1 %vm829_vm1, %v10992_v57  ;;  %v8326_v62 = vpop.f32.mrb[94].mxu0  ;;  %v5717_v29 = vsel %vm983_vm3, %v11290_v25, -inf  ;;  %5721 = vmax.xlane.f32.xlu0 %v5720_v30  ;;  %v8777_v2 = vpack.c.bf16 %v9201_v31, %v9200_v3 }
0x14a4   : > { %8226 = vmatprep.mubr.msk.f32.mxu1 %vm829_vm1, %v10998_v0  ;;  %v11300_v18 = vadd.f32 %v9561_v7, %v8326_v62  ;;  %v5696_v8 = vpop.f32.mrb[95].mxu0  ;;  %8770 = vmatprep.subr.bf16.mxu1 %v8769_v42 }
0x14a5   : > { %v11302_v60 = vadd.f32 %v9561_v7, %v5696_v8  ;;  %5718 = vmax.xlane.f32.xlu1 %v5717_v29  ;;  %8772 = vmatpush3.bf16.msra.mxu1 %v8769_v42  ;;  %v9471_v7 = vpop.eup %9470 }
0x14a6   : > { %v5726_v57 = vsel %vm983_vm3, %v11300_v18, -inf  ;;  %8774 = vmatprep.subr.bf16.mxu1 %v8773_v28  ;;  %v9473_v15 = vpop.eup %9472  ;;  %v5242_v45 = vmul.f32 %v9471_v7, %v11220_v13 }
0x14a7   : > { %8227 = vmatmul.mubr.msk.f32.gmra.mrb[78].mxu1 %vm829_vm1, %v10996_v52  ;;  %v5723_v0 = vsel %vm983_vm3, %v11302_v60, -inf  ;;  %5727 = vmax.xlane.f32.xlu0 %v5726_v57  ;;  %v5239_v52 = vmul.f32 %v9465_v55, %v11206_v54  ;;  %v9475_v54 = vpop.eup %9474  ;;  %v5243_v46 = vmul.f32 %v9473_v15, %v11228_v21 }
0x14a8   : > { %8273 = vmatprep.mubr.msk.f32.mxu1 %vm983_vm3, %v5238_v6  ;;  %v9477_v4 = vpop.eup %9476  ;;  %v5244_v53 = vmul.f32 %v9475_v54, %v11236_v61 }
0x14a9   : > { %5724 = vmax.xlane.f32.xlu1 %v5723_v0  ;;  %8776 = vmatpush3.bf16.msra.mxu1 %v8773_v28  ;;  %v5245_v36 = vmul.f32 %v9477_v4, %v11232_v51 }
0x14aa   : > { %8778 = vmatprep.subr.bf16.mxu1 %v8777_v2 }
0x14ad   : > { %8780 = vmatpush3.bf16.msra.mxu1 %v8777_v2 }
0x14ae   : > { %8285 = vmatprep.subr.mxu1 %v9562_v33 }
0x14b0   : > { %8274 = vmatmul.mubr.msk.f32.vlgmr.msra.gmra.mrb[80].mxu1 %vm983_vm3, %v5239_v52 }
0x14b1   : > { %8276 = vmatprep.mubr.msk.f32.mxu1 %vm983_vm3, %v5240_v63  ;;  %8286 = vmatpush3.msra.mxu1 %v9562_v33 }
0x14b4   : > { %8277 = vmatmul.mubr.msk.f32.gmra.mrb[82].mxu1 %vm983_vm3, %v5241_v14 }
0x14b5   : > { %8279 = vmatprep.mubr.msk.f32.mxu1 %vm983_vm3, %v5242_v45 }
0x14b8   : > { %8280 = vmatmul.mubr.msk.f32.gmra.mrb[84].mxu1 %vm983_vm3, %v5243_v46 }
0x14b9   : > { %8282 = vmatprep.mubr.msk.f32.mxu1 %vm983_vm3, %v5244_v53 }
0x14ba   : > { %9203 = vrot.lane.b32.xlu1 %v10761_v35, %s11659_s24 }
0x14bc   : > { %8283 = vmatmul.mubr.msk.f32.gmra.mrb[86].mxu1 %vm983_vm3, %v5245_v36 }
0x1528   : > { %v5710_v13 = vpop.xlane.xlu0 %5709 }
0x1529   : > { %v5730_v32 = vsub.f32 %v11264_v5, %v5710_v13 }
0x152a   : > { %v5707_v16 = vpop.xlane.xlu1 %5706 }
0x152b   : > { %v5729_v21 = vsub.f32 %v11266_v56, %v5707_v16  ;;  %v5739_v22 = vmul.f32 1.442695, %v5730_v32 }
0x152c   : > { %v5716_v61 = vpop.xlane.xlu0 %5715 }
0x152d   : > { %v5737_v48 = vmul.f32 1.442695, %v5729_v21  ;;  %9478 = vpow2.f32 %v5739_v22  ;;  %v5732_v41 = vsub.f32 %v11272_v37, %v5716_v61 }
0x152e   : > { %v5713_v12 = vpop.xlane.xlu1 %5712 }
0x152f   : > { %9480 = vpow2.f32 %v5737_v48  ;;  %v5731_v35 = vsub.f32 %v11278_v11, %v5713_v12  ;;  %v5743_v23 = vmul.f32 1.442695, %v5732_v41 }
0x1530   : > { %v5722_v40 = vpop.xlane.xlu0 %5721 }
0x1531   : > { %v5741_v51 = vmul.f32 1.442695, %v5731_v35  ;;  %9482 = vpow2.f32 %v5743_v23  ;;  %v5734_v50 = vsub.f32 %v11288_v38, %v5722_v40 }
0x1532   : > { %v5719_v5 = vpop.xlane.xlu1 %5718 }
0x1533   : > { %9484 = vpow2.f32 %v5741_v51  ;;  %v5733_v56 = vsub.f32 %v11290_v25, %v5719_v5  ;;  %v5747_v9 = vmul.f32 1.442695, %v5734_v50 }
0x1534   : > { %v5728_v10 = vpop.xlane.xlu0 %5727 }
0x1535   : > { %v5745_v44 = vmul.f32 1.442695, %v5733_v56  ;;  %9486 = vpow2.f32 %v5747_v9  ;;  %v5736_v37 = vsub.f32 %v11300_v18, %v5728_v10 }
0x1536   : > { %v5725_v24 = vpop.xlane.xlu1 %5724 }
0x1537   : > { %9488 = vpow2.f32 %v5745_v44  ;;  %v5735_v11 = vsub.f32 %v11302_v60, %v5725_v24  ;;  %v11342_v49 = vpop.eup %9478  ;;  %v5751_v42 = vmul.f32 1.442695, %v5736_v37  ;;  %v9563_v37 = vld [vmem:[%s11640_s5 + $0x18] sm:$0xff] }
0x1538   : > { %v5756_v38 = vsel %vm983_vm3, %v11342_v49, 0.0 }
0x1539   : > { %v9481_v30 = vpop.eup %9480  ;;  %v5749_v58 = vmul.f32 1.442695, %v5735_v11  ;;  %9490 = vpow2.f32 %v5751_v42  ;;  %5757 = vadd.xlane.f32.xlu0 %v5756_v38 }
0x153a   : > { %v9204_v25 = vpop.permute.xlu1 %9203  ;;  %v5753_v62 = vsel %vm983_vm3, %v9481_v30, 0.0 }
0x153b   : > { %v9206_v29 = vunpack.i.h.bf16 %v9204_v25  ;;  %v9205_v8 = vunpack.i.l.bf16 %v9204_v25  ;;  %5754 = vadd.xlane.f32.xlu1 %v5753_v62  ;;  %v11347_v18 = vpop.eup %9482  ;;  %9492 = vpow2.f32 %v5749_v58 }
0x153c   : > { %v5762_v3 = vsel %vm983_vm3, %v11347_v18, 0.0 }
0x153d   : > { %v11349_v28 = vpop.eup %9484  ;;  %v8805_v31 = vpack.c.bf16 %v9206_v29, %v9205_v8  ;;  %5763 = vadd.xlane.f32.xlu0 %v5762_v3 }
0x153e   : > { %v5759_v60 = vsel %vm983_vm3, %v11349_v28, 0.0 }
0x153f   : > { %5760 = vadd.xlane.f32.xlu1 %v5759_v60  ;;  %8806 = vmatprep.subr.bf16.mxu1 %v8805_v31  ;;  %v11355_v57 = vpop.eup %9486 }
0x1540   : > { %v5768_v0 = vsel %vm983_vm3, %v11355_v57, 0.0 }
0x1541   : > { %v11357_v6 = vpop.eup %9488  ;;  %5769 = vadd.xlane.f32.xlu0 %v5768_v0 }
0x1542   : > { %v5765_v2 = vsel %vm983_vm3, %v11357_v6, 0.0 }
0x1543   : > { %5766 = vadd.xlane.f32.xlu1 %v5765_v2  ;;  %v11363_v55 = vpop.eup %9490 }
0x1544   : > { %v5774_v27 = vsel %vm983_vm3, %v11363_v55, 0.0 }
0x1545   : > { %v11367_v52 = vpop.eup %9492  ;;  %5775 = vadd.xlane.f32.xlu0 %v5774_v27 }
0x1546   : > { %v5771_v33 = vsel %vm983_vm3, %v11367_v52, 0.0 }
0x1549   : > { %5772 = vadd.xlane.f32.xlu0 %v5771_v33 }
0x1554   : > { %9213 = vrot.lane.b32.xlu1 %v10773_v20, %s11659_s24 }
0x1558   : > { %9218 = vrot.lane.b32.xlu1 %v10779_v59, %s11659_s24 }
0x155f   : > { %9208 = vrot.lane.b32.xlu0 %v10769_v1, %s11659_s24 }
0x1583   : > { %v8275_v39 = vpop.f32.mrb[80].mxu1 }
0x1584   : > { %v5360_v63 = vpop.f32.mrb[81].mxu1 }
0x1585   : > { %8287 = vmatprep.mubr.msk.f32.mxu1 %vm829_vm1, %v5360_v63 }
0x1586   : > { %8288 = vmatmul.mubr.msk.f32.vlgmr.msra.gmra.mrb[72].mxu1 %vm829_vm1, %v8275_v39 }
0x1587   : > { %8808 = vmatpush3.bf16.msra.mxu1 %v8805_v31  ;;  %v8278_v7 = vpop.f32.mrb[82].mxu1 }
0x1588   : > { %v5370_v14 = vpop.f32.mrb[83].mxu1 }
0x1589   : > { %8290 = vmatprep.mubr.msk.f32.mxu1 %vm829_vm1, %v5370_v14 }
0x158a   : > { %8291 = vmatmul.mubr.msk.f32.gmra.mrb[74].mxu1 %vm829_vm1, %v8278_v7 }
0x158b   : > { %v8281_v20 = vpop.f32.mrb[84].mxu1 }
0x158c   : > { %v5380_v15 = vpop.f32.mrb[85].mxu1 }
0x158d   : > { %8293 = vmatprep.mubr.msk.f32.mxu1 %vm829_vm1, %v5380_v15 }
0x158e   : > { %8294 = vmatmul.mubr.msk.f32.gmra.mrb[76].mxu1 %vm829_vm1, %v8281_v20 }
0x158f   : > { %v8284_v1 = vpop.f32.mrb[86].mxu1 }
0x1590   : > { %v5390_v59 = vpop.f32.mrb[87].mxu1 }
0x1591   : > { %8296 = vmatprep.mubr.msk.f32.mxu1 %vm829_vm1, %v5390_v59 }
0x1592   : > { %8297 = vmatmul.mubr.msk.f32.gmra.mrb[78].mxu1 %vm829_vm1, %v8284_v1 }
0x15c6   : > { %v5758_v45 = vpop.xlane.xlu0 %5757 }
0x15c8   : > { %v5755_v54 = vpop.xlane.xlu1 %5754 }
0x15c9   : > { %9494 = vrcp.f32 %v5755_v54 }
0x15ca   : > { %v5764_v46 = vpop.xlane.xlu0 %5763  ;;  %9496 = vrcp.f32 %v5758_v45 }
0x15cc   : > { %v5761_v4 = vpop.xlane.xlu1 %5760 }
0x15cd   : > { %9498 = vrcp.f32 %v5761_v4 }
0x15ce   : > { %v5770_v53 = vpop.xlane.xlu0 %5769  ;;  %9500 = vrcp.f32 %v5764_v46 }
0x15d0   : > { %v5767_v36 = vpop.xlane.xlu1 %5766 }
0x15d1   : > { %9502 = vrcp.f32 %v5767_v36 }
0x15d2   : > { %v5776_v32 = vpop.xlane.xlu0 %5775  ;;  %9504 = vrcp.f32 %v5770_v53 }
0x15d3   : > { %v9495_v13 = vpop.eup %9494 }
0x15d4   : > { %v5793_v16 = vmul.f32 %v9495_v13, %v9481_v30  ;;  %v9214_v21 = vpop.permute.xlu1 %9213  ;;  %v9497_v9 = vpop.eup %9496 }
0x15d5   : > { %v9216_v61 = vunpack.i.h.bf16 %v9214_v21  ;;  %v9215_v41 = vunpack.i.l.bf16 %v9214_v21  ;;  %v5794_v10 = vmul.f32 %v9497_v9, %v11342_v49 }
0x15d6   : > { %8343 = vmatprep.mubr.msk.f32.mxu1 %vm983_vm3, %v5793_v16  ;;  %v5773_v22 = vpop.xlane.xlu0 %5772 }
0x15d7   : > { %v8813_v40 = vpack.c.bf16 %v9216_v61, %v9215_v41  ;;  %9506 = vrcp.f32 %v5773_v22  ;;  %v9499_v44 = vpop.eup %9498 }
0x15d8   : > { %v9219_v23 = vpop.permute.xlu1 %9218  ;;  %9508 = vrcp.f32 %v5776_v32  ;;  %v9501_v24 = vpop.eup %9500  ;;  %v5795_v11 = vmul.f32 %v9499_v44, %v11349_v28 }
0x15d9   : > { %v9221_v50 = vunpack.i.h.bf16 %v9219_v23  ;;  %v9220_v5 = vunpack.i.l.bf16 %v9219_v23  ;;  %v5796_v30 = vmul.f32 %v9501_v24, %v11347_v18 }
0x15da   : > { %v9209_v48 = vpop.permute.xlu0 %9208 }
0x15db   : > { %v9211_v12 = vunpack.i.h.bf16 %v9209_v48  ;;  %v9210_v35 = vunpack.i.l.bf16 %v9209_v48  ;;  %v8817_v56 = vpack.c.bf16 %v9221_v50, %v9220_v5  ;;  %v9503_v42 = vpop.eup %9502 }
0x15dc   : > { %v9505_v58 = vpop.eup %9504  ;;  %v5797_v49 = vmul.f32 %v9503_v42, %v11357_v6 }
0x15dd   : > { %v8809_v51 = vpack.c.bf16 %v9211_v12, %v9210_v35  ;;  %v5798_v25 = vmul.f32 %v9505_v58, %v11355_v57 }
0x15df   : > { %8810 = vmatprep.subr.bf16.mxu1 %v8809_v51 }
0x15e0   : > { %8812 = vmatpush3.bf16.msra.mxu1 %v8809_v51 }
0x15e1   : > { %8814 = vmatprep.subr.bf16.mxu1 %v8813_v40  ;;  %v9507_v38 = vpop.eup %9506 }
0x15e2   : > { %v9509_v62 = vpop.eup %9508  ;;  %v5799_v29 = vmul.f32 %v9507_v38, %v11367_v52 }
0x15e3   : > { %v5800_v8 = vmul.f32 %v9509_v62, %v11363_v55 }
0x15e4   : > { %8816 = vmatpush3.bf16.msra.mxu1 %v8813_v40 }
0x15e5   : > { %8818 = vmatprep.subr.bf16.mxu1 %v8817_v56 }
0x15e8   : > { %8820 = vmatpush3.bf16.msra.mxu1 %v8817_v56 }
0x15e9   : > { %8355 = vmatprep.subr.mxu1 %v9563_v37 }
0x15eb   : > { %8344 = vmatmul.mubr.msk.f32.vlgmr.msra.gmra.mrb[88].mxu1 %vm983_vm3, %v5794_v10 }
0x15ec   : > { %8346 = vmatprep.mubr.msk.f32.mxu1 %vm983_vm3, %v5795_v11  ;;  %8356 = vmatpush3.msra.mxu1 %v9563_v37 }
0x15ed   : > { %8838 = vmatprep.subr.bf16.mxu1 %v10419_v26 }
0x15ef   : > { %8347 = vmatmul.mubr.msk.f32.gmra.mrb[90].mxu1 %vm983_vm3, %v5796_v30 }
0x15f0   : > { %8349 = vmatprep.mubr.msk.f32.mxu1 %vm983_vm3, %v5797_v49 }
0x15f3   : > { %8350 = vmatmul.mubr.msk.f32.gmra.mrb[92].mxu1 %vm983_vm3, %v5798_v25 }
0x15f4   : > { %8352 = vmatprep.mubr.msk.f32.mxu1 %vm983_vm3, %v5799_v29 }
0x15f7   : > { %8353 = vmatmul.mubr.msk.f32.gmra.mrb[94].mxu1 %vm983_vm3, %v5800_v8 }
0x16be   : > { %v8345_v18 = vpop.f32.mrb[88].mxu1 }
0x16bf   : > { %v5915_v28 = vpop.f32.mrb[89].mxu1 }
0x16c0   : > { %8357 = vmatprep.mubr.msk.f32.mxu1 %vm829_vm1, %v5915_v28 }
0x16c1   : > { %8358 = vmatmul.mubr.msk.f32.vlgmr.msra.gmra.mrb[72].mxu1 %vm829_vm1, %v8345_v18 }
0x16c2   : > { %v8348_v31 = vpop.f32.mrb[90].mxu1  ;;  %8840 = vmatpush3.bf16.msra.mxu1 %v10419_v26 }
0x16c3   : > { %v5925_v3 = vpop.f32.mrb[91].mxu1  ;;  %8842 = vmatprep.subr.bf16.mxu1 %v10428_v19 }
0x16c4   : > { %8360 = vmatprep.mubr.msk.f32.mxu1 %vm829_vm1, %v5925_v3 }
0x16c5   : > { %8361 = vmatmul.mubr.msk.f32.gmra.mrb[74].mxu1 %vm829_vm1, %v8348_v31 }
0x16c6   : > { %v8351_v60 = vpop.f32.mrb[92].mxu1  ;;  %8844 = vmatpush3.bf16.msra.mxu1 %v10428_v19 }
0x16c7   : > { %v5935_v57 = vpop.f32.mrb[93].mxu1  ;;  %8846 = vmatprep.subr.bf16.mxu1 %v10440_v34 }
0x16c8   : > { %8363 = vmatprep.mubr.msk.f32.mxu1 %vm829_vm1, %v5935_v57 }
0x16c9   : > { %8364 = vmatmul.mubr.msk.f32.gmra.mrb[76].mxu1 %vm829_vm1, %v8351_v60 }
0x16ca   : > { %v8354_v6 = vpop.f32.mrb[94].mxu1  ;;  %8848 = vmatpush3.bf16.msra.mxu1 %v10440_v34 }
0x16cb   : > { %v5945_v26 = vpop.f32.mrb[95].mxu1  ;;  %8850 = vmatprep.subr.bf16.mxu1 %v10452_v43 }
0x16cc   : > { %8366 = vmatprep.mubr.msk.f32.mxu1 %vm829_vm1, %v5945_v26 }
0x16cd   : > { %8367 = vmatmul.mubr.msk.f32.gmra.mrb[78].mxu1 %vm829_vm1, %v8354_v6 }
0x16ce   : > { %8852 = vmatpush3.bf16.msra.mxu1 %v10452_v43 }
0x1794   : > { %v8359_v19 = vpop.f32.mrb[72].mxu1 }
0x1795   : > { %v6044_v0 = vpop.f32.mrb[73].mxu1  ;;  %v6094_v2 = vsel %vm548_vm0, %v8359_v19, 0.0 }
0x1796   : > { %6095 = vadd.xlane.f32.xlu0 %v6094_v2  ;;  %v6091_v55 = vsel %vm548_vm0, %v6044_v0, 0.0 }
0x1797   : > { %6092 = vadd.xlane.f32.xlu1 %v6091_v55 }
0x1798   : > { %v8362_v27 = vpop.f32.mrb[74].mxu1 }
0x1799   : > { %v6054_v52 = vpop.f32.mrb[75].mxu1  ;;  %v6100_v34 = vsel %vm548_vm0, %v8362_v27, 0.0 }
0x179a   : > { %6101 = vadd.xlane.f32.xlu0 %v6100_v34  ;;  %v6097_v33 = vsel %vm548_vm0, %v6054_v52, 0.0 }
0x179b   : > { %6098 = vadd.xlane.f32.xlu1 %v6097_v33 }
0x179c   : > { %v8365_v39 = vpop.f32.mrb[76].mxu1 }
0x179d   : > { %v6064_v63 = vpop.f32.mrb[77].mxu1  ;;  %v6106_v43 = vsel %vm548_vm0, %v8365_v39, 0.0 }
0x179e   : > { %6107 = vadd.xlane.f32.xlu0 %v6106_v43  ;;  %v6103_v7 = vsel %vm548_vm0, %v6064_v63, 0.0 }
0x179f   : > { %6104 = vadd.xlane.f32.xlu1 %v6103_v7 }
0x17a0   : > { %v8368_v14 = vpop.f32.mrb[78].mxu1 }
0x17a1   : > { %v6074_v20 = vpop.f32.mrb[79].mxu1  ;;  %v6112_v15 = vsel %vm548_vm0, %v8368_v14, 0.0 }
0x17a2   : > { %6113 = vadd.xlane.f32.xlu0 %v6112_v15  ;;  %v6109_v1 = vsel %vm548_vm0, %v6074_v20, 0.0 }
0x17a3   : > { %6110 = vadd.xlane.f32.xlu1 %v6109_v1 }
0x1823   : > { %v6096_v59 = vpop.xlane.xlu0 %6095 }
0x1824   : > { %v6116_v45 = vmul.f32 0.03125, %v6096_v59  ;;  %v6093_v54 = vpop.xlane.xlu1 %6092 }
0x1825   : > { %v6115_v46 = vmul.f32 0.03125, %v6093_v54 }
0x1826   : > { %v11427_v4 = vsub.f32 %v8359_v19, %v6116_v45 }
0x1827   : > { %v11429_v53 = vsub.f32 %v6044_v0, %v6115_v46  ;;  %v6102_v36 = vpop.xlane.xlu0 %6101 }
0x1828   : > { %v6118_v13 = vmul.f32 0.03125, %v6102_v36  ;;  %v6099_v32 = vpop.xlane.xlu1 %6098  ;;  %v6132_v16 = vmul.f32 %v11427_v4, %v11427_v4 }
0x1829   : > { %v6117_v21 = vmul.f32 0.03125, %v6099_v32  ;;  %v6131_v22 = vmul.f32 %v11429_v53, %v11429_v53  ;;  %v9564_v32 = vld [vmem:[%s11643_s8] ss:$0 sm:$0xff] }
0x182a   : > { %v11435_v48 = vsub.f32 %v8362_v27, %v6118_v13  ;;  %v6142_v61 = vsel %vm548_vm0, %v6132_v16, 0.0 }
0x182b   : > { %v11438_v41 = vsub.f32 %v6054_v52, %v6117_v21  ;;  %v6108_v12 = vpop.xlane.xlu0 %6107  ;;  %6143 = vadd.xlane.f32.xlu0 %v6142_v61  ;;  %v6139_v35 = vsel %vm548_vm0, %v6131_v22, 0.0 }
0x182c   : > { %v6120_v23 = vmul.f32 0.03125, %v6108_v12  ;;  %v6105_v51 = vpop.xlane.xlu1 %6104  ;;  %6140 = vadd.xlane.f32.xlu1 %v6139_v35  ;;  %v6134_v40 = vmul.f32 %v11435_v48, %v11435_v48  ;;  %v9565_v35 = vld [vmem:[%s11644_s9] ss:$0 sm:$0xff] }
0x182d   : > { %v6119_v50 = vmul.f32 0.03125, %v6105_v51  ;;  %v6133_v5 = vmul.f32 %v11438_v41, %v11438_v41 }
0x182e   : > { %v11445_v56 = vsub.f32 %v8365_v39, %v6120_v23  ;;  %v6148_v9 = vsel %vm548_vm0, %v6134_v40, 0.0 }
0x182f   : > { %v11448_v44 = vsub.f32 %v6064_v63, %v6119_v50  ;;  %6149 = vadd.xlane.f32.xlu0 %v6148_v9  ;;  %v6114_v10 = vpop.xlane.xlu0 %6113  ;;  %v6145_v37 = vsel %vm548_vm0, %v6133_v5, 0.0 }
0x1830   : > { %v6122_v24 = vmul.f32 0.03125, %v6114_v10  ;;  %6146 = vadd.xlane.f32.xlu1 %v6145_v37  ;;  %v6111_v11 = vpop.xlane.xlu1 %6110  ;;  %v6136_v42 = vmul.f32 %v11445_v56, %v11445_v56 }
0x1831   : > { %v6121_v30 = vmul.f32 0.03125, %v6111_v11  ;;  %v6135_v58 = vmul.f32 %v11448_v44, %v11448_v44 }
0x1832   : > { %v11455_v49 = vsub.f32 %v8368_v14, %v6122_v24  ;;  %v6154_v38 = vsel %vm548_vm0, %v6136_v42, 0.0 }
0x1833   : > { %v11458_v25 = vsub.f32 %v6074_v20, %v6121_v30  ;;  %6155 = vadd.xlane.f32.xlu0 %v6154_v38  ;;  %v6151_v62 = vsel %vm548_vm0, %v6135_v58, 0.0 }
0x1834   : > { %6152 = vadd.xlane.f32.xlu1 %v6151_v62  ;;  %v6138_v29 = vmul.f32 %v11455_v49, %v11455_v49 }
0x1835   : > { %v6137_v8 = vmul.f32 %v11458_v25, %v11458_v25 }
0x1836   : > { %v6160_v18 = vsel %vm548_vm0, %v6138_v29, 0.0 }
0x1837   : > { %6161 = vadd.xlane.f32.xlu0 %v6160_v18  ;;  %v6157_v28 = vsel %vm548_vm0, %v6137_v8, 0.0  ;;  %v11508_v8 = vld [vmem:[%s9697_s22 + $0x18] sm:$0xff]  ;;  %v11513_v18 = vld [vmem:[%s9697_s22 + $0x20] sm:$0xff] }
0x1838   : > { %6158 = vadd.xlane.f32.xlu1 %v6157_v28  ;;  %v11518_v28 = vld [vmem:[%s9697_s22 + $0x28] sm:$0xff] }
0x18b8   : > { %v6144_v31 = vpop.xlane.xlu0 %6143 }
0x18b9   : > { %v6164_v3 = vmul.f32 0.03125, %v6144_v31  ;;  %v6141_v60 = vpop.xlane.xlu1 %6140  ;;  %v11523_v31 = vld [vmem:[%s9697_s22 + $0x30] sm:$0xff] }
0x18ba   : > { %v6163_v57 = vmul.f32 0.03125, %v6141_v60 }
0x18bb   : > { %v6172_v6 = vadd.f32 1e-05, %v6164_v3  ;;  %v11528_v3 = vld [vmem:[%s9697_s22 + $0x38] sm:$0xff] }
0x18bc   : > { %v6171_v26 = vadd.f32 1e-05, %v6163_v57  ;;  %v6150_v19 = vpop.xlane.xlu0 %6149 }
0x18bd   : > { %9510 = vrsqrt.f32 %v6172_v6  ;;  %v6166_v0 = vmul.f32 0.03125, %v6150_v19  ;;  %v6147_v2 = vpop.xlane.xlu1 %6146 }
0x18be   : > { %9512 = vrsqrt.f32 %v6171_v26  ;;  %v6165_v55 = vmul.f32 0.03125, %v6147_v2 }
0x18bf   : > { %v6174_v27 = vadd.f32 1e-05, %v6166_v0 }
0x18c0   : > { %v6173_v52 = vadd.f32 1e-05, %v6165_v55  ;;  %v6156_v34 = vpop.xlane.xlu0 %6155 }
0x18c1   : > { %9514 = vrsqrt.f32 %v6174_v27  ;;  %v6168_v33 = vmul.f32 0.03125, %v6156_v34  ;;  %v6153_v39 = vpop.xlane.xlu1 %6152 }
0x18c2   : > { %9516 = vrsqrt.f32 %v6173_v52  ;;  %v6167_v63 = vmul.f32 0.03125, %v6153_v39 }
0x18c3   : > { %v6176_v43 = vadd.f32 1e-05, %v6168_v33 }
0x18c4   : > { %v6175_v7 = vadd.f32 1e-05, %v6167_v63  ;;  %v6162_v14 = vpop.xlane.xlu0 %6161 }
0x18c5   : > { %9518 = vrsqrt.f32 %v6176_v43  ;;  %v6170_v20 = vmul.f32 0.03125, %v6162_v14  ;;  %v6159_v15 = vpop.xlane.xlu1 %6158 }
0x18c6   : > { %9520 = vrsqrt.f32 %v6175_v7  ;;  %v6169_v1 = vmul.f32 0.03125, %v6159_v15 }
0x18c7   : > { %v9511_v59 = vpop.eup %9510  ;;  %v6178_v45 = vadd.f32 1e-05, %v6170_v20 }
0x18c8   : > { %v9513_v54 = vpop.eup %9512  ;;  %v6188_v46 = vmul.f32 %v9511_v59, %v11427_v4  ;;  %v6177_v36 = vadd.f32 1e-05, %v6169_v1 }
0x18c9   : > { %9522 = vrsqrt.f32 %v6178_v45  ;;  %v6187_v13 = vmul.f32 %v9513_v54, %v11429_v53 }
0x18ca   : > { %v6196_v16 = vmul.f32 %v9564_v32, %v6188_v46  ;;  %9524 = vrsqrt.f32 %v6177_v36 }
0x18cb   : > { %v9515_v21 = vpop.eup %9514  ;;  %v6195_v22 = vmul.f32 %v9564_v32, %v6187_v13 }
0x18cc   : > { %v9517_v61 = vpop.eup %9516  ;;  %v6190_v12 = vmul.f32 %v9515_v21, %v11435_v48  ;;  %v6204_v51 = vadd.f32 %v9565_v35, %v6196_v16 }
0x18cd   : > { %v6203_v4 = vadd.f32 %v9565_v35, %v6195_v22  ;;  %v6189_v23 = vmul.f32 %v9517_v61, %v11438_v41 }
0x18ce   : > { %v6198_v53 = vmul.f32 %v9564_v32, %v6190_v12 }
0x18cf   : > { %v9519_v40 = vpop.eup %9518  ;;  %8377 = vmatprep.mubr.msk.f32.mxu0 %vm548_vm0, %v6203_v4  ;;  %v6197_v50 = vmul.f32 %v9564_v32, %v6189_v23 }
0x18d0   : > { %v9521_v5 = vpop.eup %9520  ;;  %8378 = vmatmul.mubr.msk.f32.vlgmr.msra.gmra.mrb[96].mxu0 %vm548_vm0, %v6204_v51  ;;  %v6192_v9 = vmul.f32 %v9519_v40, %v11445_v56  ;;  %v6206_v37 = vadd.f32 %v9565_v35, %v6198_v53 }
0x18d1   : > { %8832 = vmatpush3.bf16.msra.mxu0 %v10536_v17  ;;  %v6205_v48 = vadd.f32 %v9565_v35, %v6197_v50  ;;  %v6191_v10 = vmul.f32 %v9521_v5, %v11448_v44 }
0x18d2   : > { %v6200_v24 = vmul.f32 %v9564_v32, %v6192_v9  ;;  %8834 = vmatprep.subr.bf16.mxu0 %v10555_v47 }
0x18d3   : > { %v9523_v41 = vpop.eup %9522  ;;  %8380 = vmatprep.mubr.msk.f32.mxu0 %vm548_vm0, %v6205_v48  ;;  %v6199_v11 = vmul.f32 %v9564_v32, %v6191_v10 }
0x18d4   : > { %v9525_v42 = vpop.eup %9524  ;;  %8381 = vmatmul.mubr.msk.f32.gmra.mrb[98].mxu0 %vm548_vm0, %v6206_v37  ;;  %v6194_v56 = vmul.f32 %v9523_v41, %v11455_v49  ;;  %v6208_v44 = vadd.f32 %v9565_v35, %v6200_v24  ;;  %v11498_v49 = vld [vmem:[%s9697_s22 + $0x8] sm:$0xff] }
0x18d5   : > { %v6207_v30 = vadd.f32 %v9565_v35, %v6199_v11  ;;  %8836 = vmatpush3.bf16.msra.mxu0 %v10555_v47  ;;  %v6193_v17 = vmul.f32 %v9525_v42, %v11458_v25  ;;  %v11493_v47 = vld [vmem:[%s9697_s22] sm:$0xff]  ;;  %v11503_v25 = vld [vmem:[%s9697_s22 + $0x10] sm:$0xff] }
0x18d6   : > { %v6202_v58 = vmul.f32 %v9564_v32, %v6194_v56 }
0x18d7   : > { %8383 = vmatprep.mubr.msk.f32.mxu0 %vm548_vm0, %v6207_v30  ;;  %v6201_v38 = vmul.f32 %v9564_v32, %v6193_v17 }
0x18d8   : > { %8384 = vmatmul.mubr.msk.f32.gmra.mrb[100].mxu0 %vm548_vm0, %v6208_v44  ;;  %v6210_v29 = vadd.f32 %v9565_v35, %v6202_v58 }
0x18d9   : > { %v6209_v62 = vadd.f32 %v9565_v35, %v6201_v38 }
0x18db   : > { %8386 = vmatprep.mubr.msk.f32.mxu0 %vm548_vm0, %v6209_v62 }
0x18dc   : > { %8387 = vmatmul.mubr.msk.f32.gmra.mrb[102].mxu0 %vm548_vm0, %v6210_v29 }
0x18dd   : > { %8397 = vmatprep.mubr.msk.f32.mxu0 %vm548_vm0, %v11493_v47 }
0x18e0   : > { %8398 = vmatmul.mubr.msk.f32.vlgmr.msra.gmra.mrb[96].mxu0 %vm548_vm0, %v11498_v49 }
0x18e1   : > { %8400 = vmatprep.mubr.msk.f32.mxu0 %vm548_vm0, %v11503_v25 }
0x18e4   : > { %8401 = vmatmul.mubr.msk.f32.gmra.mrb[98].mxu0 %vm548_vm0, %v11508_v8 }
0x18e5   : > { %8403 = vmatprep.mubr.msk.f32.mxu0 %vm548_vm0, %v11513_v18 }
0x18e8   : > { %8404 = vmatmul.mubr.msk.f32.gmra.mrb[100].mxu0 %vm548_vm0, %v11518_v28 }
0x18e9   : > { %8406 = vmatprep.mubr.msk.f32.mxu0 %vm548_vm0, %v11523_v31 }
0x18ec   : > { %8407 = vmatmul.mubr.msk.f32.gmra.mrb[102].mxu0 %vm548_vm0, %v11528_v3 }
0x19b3   : > { %v8399_v60 = vpop.f32.mrb[96].mxu0 }
0x19b4   : > { %v6406_v57 = vpop.f32.mrb[97].mxu0  ;;  %v6446_v26 = vmax.f32 %v8399_v60, 0.0 }
0x19b5   : > { %v6445_v6 = vmax.f32 %v6406_v57, 0.0 }
0x19b7   : > { %v8402_v19 = vpop.f32.mrb[98].mxu0  ;;  %8425 = vmatprep.mubr.msk.f32.mxu1 %vm983_vm3, %v6445_v6 }
0x19b8   : > { %v6416_v0 = vpop.f32.mrb[99].mxu0  ;;  %8426 = vmatmul.mubr.msk.f32.vlgmr.msra.gmra.mrb[96].mxu1 %vm983_vm3, %v6446_v26  ;;  %v6448_v55 = vmax.f32 %v8402_v19, 0.0 }
0x19b9   : > { %v6447_v2 = vmax.f32 %v6416_v0, 0.0 }
0x19bb   : > { %v8405_v27 = vpop.f32.mrb[100].mxu0  ;;  %8428 = vmatprep.mubr.msk.f32.mxu1 %vm983_vm3, %v6447_v2 }
0x19bc   : > { %v6426_v52 = vpop.f32.mrb[101].mxu0  ;;  %8429 = vmatmul.mubr.msk.f32.gmra.mrb[98].mxu1 %vm983_vm3, %v6448_v55  ;;  %v6450_v33 = vmax.f32 %v8405_v27, 0.0 }
0x19bd   : > { %v6449_v34 = vmax.f32 %v6426_v52, 0.0 }
0x19bf   : > { %v8408_v39 = vpop.f32.mrb[102].mxu0  ;;  %8431 = vmatprep.mubr.msk.f32.mxu1 %vm983_vm3, %v6449_v34 }
0x19c0   : > { %v6436_v63 = vpop.f32.mrb[103].mxu0  ;;  %8432 = vmatmul.mubr.msk.f32.gmra.mrb[100].mxu1 %vm983_vm3, %v6450_v33  ;;  %v6452_v7 = vmax.f32 %v8408_v39, 0.0 }
0x19c1   : > { %v6451_v43 = vmax.f32 %v6436_v63, 0.0 }
0x19c3   : > { %8434 = vmatprep.mubr.msk.f32.mxu1 %vm983_vm3, %v6451_v43 }
0x19c4   : > { %8435 = vmatmul.mubr.msk.f32.gmra.mrb[102].mxu1 %vm983_vm3, %v6452_v7 }
0x1a8b   : > { %v8427_v14 = vpop.f32.mrb[96].mxu1 }
0x1a8c   : > { %v6543_v20 = vpop.f32.mrb[97].mxu1  ;;  %v6585_v15 = vsel %vm548_vm0, %v8427_v14, 0.0 }
0x1a8d   : > { %6586 = vadd.xlane.f32.xlu0 %v6585_v15  ;;  %v6582_v1 = vsel %vm548_vm0, %v6543_v20, 0.0 }
0x1a8e   : > { %6583 = vadd.xlane.f32.xlu1 %v6582_v1 }
0x1a8f   : > { %v8430_v59 = vpop.f32.mrb[98].mxu1 }
0x1a90   : > { %v6553_v45 = vpop.f32.mrb[99].mxu1  ;;  %v6591_v54 = vsel %vm548_vm0, %v8430_v59, 0.0 }
0x1a91   : > { %6592 = vadd.xlane.f32.xlu0 %v6591_v54  ;;  %v6588_v46 = vsel %vm548_vm0, %v6553_v45, 0.0 }
0x1a92   : > { %6589 = vadd.xlane.f32.xlu1 %v6588_v46 }
0x1a93   : > { %v8433_v36 = vpop.f32.mrb[100].mxu1 }
0x1a94   : > { %v6563_v13 = vpop.f32.mrb[101].mxu1  ;;  %v6597_v32 = vsel %vm548_vm0, %v8433_v36, 0.0 }
0x1a95   : > { %6598 = vadd.xlane.f32.xlu0 %v6597_v32  ;;  %v6594_v16 = vsel %vm548_vm0, %v6563_v13, 0.0 }
0x1a96   : > { %6595 = vadd.xlane.f32.xlu1 %v6594_v16 }
0x1a97   : > { %v8436_v21 = vpop.f32.mrb[102].mxu1 }
0x1a98   : > { %v6573_v22 = vpop.f32.mrb[103].mxu1  ;;  %v6603_v61 = vsel %vm548_vm0, %v8436_v21, 0.0 }
0x1a99   : > { %v6600_v12 = vsel %vm548_vm0, %v6573_v22, 0.0  ;;  %6604 = vadd.xlane.f32.xlu0 %v6603_v61 }
0x1a9a   : > { %6601 = vadd.xlane.f32.xlu1 %v6600_v12 }
0x1b1a   : > { %v6587_v35 = vpop.xlane.xlu0 %6586 }
0x1b1b   : > { %v6607_v4 = vmul.f32 0.03125, %v6587_v35  ;;  %v6584_v23 = vpop.xlane.xlu1 %6583 }
0x1b1c   : > { %v6606_v51 = vmul.f32 0.03125, %v6584_v23 }
0x1b1d   : > { %v11548_v53 = vsub.f32 %v8427_v14, %v6607_v4 }
0x1b1e   : > { %v11550_v40 = vsub.f32 %v6543_v20, %v6606_v51  ;;  %v6593_v50 = vpop.xlane.xlu0 %6592 }
0x1b1f   : > { %v6609_v5 = vmul.f32 0.03125, %v6593_v50  ;;  %v6590_v9 = vpop.xlane.xlu1 %6589  ;;  %v6623_v48 = vmul.f32 %v11548_v53, %v11548_v53 }
0x1b20   : > { %v6608_v10 = vmul.f32 0.03125, %v6590_v9  ;;  %v6622_v37 = vmul.f32 %v11550_v40, %v11550_v40 }
0x1b21   : > { %v11556_v24 = vsub.f32 %v8430_v59, %v6609_v5  ;;  %v6633_v41 = vsel %vm548_vm0, %v6623_v48, 0.0 }
0x1b22   : > { %v11559_v11 = vsub.f32 %v6553_v45, %v6608_v10  ;;  %v6599_v42 = vpop.xlane.xlu0 %6598  ;;  %6634 = vadd.xlane.f32.xlu0 %v6633_v41  ;;  %v6630_v56 = vsel %vm548_vm0, %v6622_v37, 0.0 }
0x1b23   : > { %v6611_v30 = vmul.f32 0.03125, %v6599_v42  ;;  %v6596_v17 = vpop.xlane.xlu1 %6595  ;;  %6631 = vadd.xlane.f32.xlu1 %v6630_v56  ;;  %v6625_v44 = vmul.f32 %v11556_v24, %v11556_v24  ;;  %v9574_v56 = vld [vmem:[%s11645_s10] ss:$0 sm:$0xff] }
0x1b24   : > { %v6610_v58 = vmul.f32 0.03125, %v6596_v17  ;;  %v6624_v38 = vmul.f32 %v11559_v11, %v11559_v11 }
0x1b25   : > { %v11566_v62 = vsub.f32 %v8433_v36, %v6611_v30  ;;  %v6639_v29 = vsel %vm548_vm0, %v6625_v44, 0.0 }
0x1b26   : > { %v11569_v60 = vsub.f32 %v6563_v13, %v6610_v58  ;;  %6640 = vadd.xlane.f32.xlu0 %v6639_v29  ;;  %v6605_v57 = vpop.xlane.xlu0 %6604  ;;  %v6636_v6 = vsel %vm548_vm0, %v6624_v38, 0.0  ;;  %v9575_v38 = vld [vmem:[%s11646_s11] ss:$0 sm:$0xff] }
0x1b27   : > { %v6613_v26 = vmul.f32 0.03125, %v6605_v57  ;;  %6637 = vadd.xlane.f32.xlu1 %v6636_v6  ;;  %v6602_v19 = vpop.xlane.xlu1 %6601  ;;  %v6627_v0 = vmul.f32 %v11566_v62, %v11566_v62 }
0x1b28   : > { %v6612_v2 = vmul.f32 0.03125, %v6602_v19  ;;  %v6626_v55 = vmul.f32 %v11569_v60, %v11569_v60 }
0x1b29   : > { %v11576_v27 = vsub.f32 %v8436_v21, %v6613_v26  ;;  %v6645_v52 = vsel %vm548_vm0, %v6627_v0, 0.0 }
0x1b2a   : > { %v11579_v34 = vsub.f32 %v6573_v22, %v6612_v2  ;;  %6646 = vadd.xlane.f32.xlu0 %v6645_v52  ;;  %v6642_v33 = vsel %vm548_vm0, %v6626_v55, 0.0 }
0x1b2b   : > { %6643 = vadd.xlane.f32.xlu1 %v6642_v33  ;;  %v6629_v39 = vmul.f32 %v11576_v27, %v11576_v27 }
0x1b2c   : > { %v6628_v63 = vmul.f32 %v11579_v34, %v11579_v34 }
0x1b2d   : > { %v6651_v43 = vsel %vm548_vm0, %v6629_v39, 0.0 }
0x1b2e   : > { %6652 = vadd.xlane.f32.xlu0 %v6651_v43  ;;  %v6648_v7 = vsel %vm548_vm0, %v6628_v63, 0.0 }
0x1b2f   : > { %6649 = vadd.xlane.f32.xlu1 %v6648_v7 }
0x1baf   : > { %v6635_v14 = vpop.xlane.xlu0 %6634 }
0x1bb0   : > { %v6655_v20 = vmul.f32 0.03125, %v6635_v14  ;;  %v6632_v15 = vpop.xlane.xlu1 %6631 }
0x1bb1   : > { %v6654_v1 = vmul.f32 0.03125, %v6632_v15 }
0x1bb2   : > { %v6663_v59 = vadd.f32 1e-05, %v6655_v20 }
0x1bb3   : > { %v6662_v45 = vadd.f32 1e-05, %v6654_v1  ;;  %v6641_v54 = vpop.xlane.xlu0 %6640 }
0x1bb4   : > { %9526 = vrsqrt.f32 %v6663_v59  ;;  %v6657_v46 = vmul.f32 0.03125, %v6641_v54  ;;  %v6638_v36 = vpop.xlane.xlu1 %6637 }
0x1bb5   : > { %9528 = vrsqrt.f32 %v6662_v45  ;;  %v6656_v13 = vmul.f32 0.03125, %v6638_v36 }
0x1bb6   : > { %v6665_v32 = vadd.f32 1e-05, %v6657_v46 }
0x1bb7   : > { %v6664_v16 = vadd.f32 1e-05, %v6656_v13  ;;  %v6647_v21 = vpop.xlane.xlu0 %6646 }
0x1bb8   : > { %9530 = vrsqrt.f32 %v6665_v32  ;;  %v6659_v22 = vmul.f32 0.03125, %v6647_v21  ;;  %v6644_v61 = vpop.xlane.xlu1 %6643 }
0x1bb9   : > { %9532 = vrsqrt.f32 %v6664_v16  ;;  %v6658_v12 = vmul.f32 0.03125, %v6644_v61 }
0x1bba   : > { %v6667_v35 = vadd.f32 1e-05, %v6659_v22 }
0x1bbb   : > { %v6666_v4 = vadd.f32 1e-05, %v6658_v12  ;;  %v6653_v23 = vpop.xlane.xlu0 %6652 }
0x1bbc   : > { %9534 = vrsqrt.f32 %v6667_v35  ;;  %v6661_v51 = vmul.f32 0.03125, %v6653_v23  ;;  %v6650_v50 = vpop.xlane.xlu1 %6649 }
0x1bbd   : > { %9536 = vrsqrt.f32 %v6666_v4  ;;  %v6660_v5 = vmul.f32 0.03125, %v6650_v50 }
0x1bbe   : > { %v9527_v9 = vpop.eup %9526  ;;  %v6669_v48 = vadd.f32 1e-05, %v6661_v51 }
0x1bbf   : > { %v9529_v10 = vpop.eup %9528  ;;  %v6679_v37 = vmul.f32 %v9527_v9, %v11548_v53  ;;  %v6668_v41 = vadd.f32 1e-05, %v6660_v5 }
0x1bc0   : > { %v6678_v42 = vmul.f32 %v9529_v10, %v11550_v40  ;;  %9538 = vrsqrt.f32 %v6669_v48 }
0x1bc1   : > { %v6687_v30 = vmul.f32 %v9574_v56, %v6679_v37  ;;  %9540 = vrsqrt.f32 %v6668_v41 }
0x1bc2   : > { %v9531_v17 = vpop.eup %9530  ;;  %v6686_v44 = vmul.f32 %v9574_v56, %v6678_v42 }
0x1bc3   : > { %v9533_v58 = vpop.eup %9532  ;;  %v6695_v29 = vadd.f32 %v9575_v38, %v6687_v30  ;;  %v6681_v53 = vmul.f32 %v9531_v17, %v11556_v24 }
0x1bc4   : > { %v6694_v40 = vadd.f32 %v9575_v38, %v6686_v44  ;;  %v6680_v57 = vmul.f32 %v9533_v58, %v11559_v11 }
0x1bc5   : > { %v6703_v6 = vadd.f32 %v11498_v49, %v6695_v29  ;;  %v6689_v26 = vmul.f32 %v9574_v56, %v6681_v53 }
0x1bc6   : > { %v9535_v19 = vpop.eup %9534  ;;  %v6702_v0 = vadd.f32 %v11493_v47, %v6694_v40  ;;  %v6688_v2 = vmul.f32 %v9574_v56, %v6680_v57 }
0x1bc7   : > { %v9537_v55 = vpop.eup %9536  ;;  %6719 = vst.msk [vmem:[%s11601_s20 + $0x8] sm:$0xff] %vm548_vm0, %v6703_v6  ;;  %v6697_v24 = vadd.f32 %v9575_v38, %v6689_v26  ;;  %v6683_v52 = vmul.f32 %v9535_v19, %v11566_v62 }
0x1bc8   : > { %6718 = vst.msk [vmem:[%s11601_s20] sm:$0xff] %vm548_vm0, %v6702_v0  ;;  %v6696_v33 = vadd.f32 %v9575_v38, %v6688_v2  ;;  %v6682_v11 = vmul.f32 %v9537_v55, %v11569_v60 }
0x1bc9   : > { %v6705_v49 = vadd.f32 %v11508_v8, %v6697_v24  ;;  %v6691_v39 = vmul.f32 %v9574_v56, %v6683_v52 }
0x1bca   : > { %v9539_v63 = vpop.eup %9538  ;;  %v6704_v47 = vadd.f32 %v11503_v25, %v6696_v33  ;;  %v6690_v43 = vmul.f32 %v9574_v56, %v6682_v11 }
0x1bcb   : > { %v9541_v7 = vpop.eup %9540  ;;  %6721 = vst.msk [vmem:[%s11601_s20 + $0x18] sm:$0xff] %vm548_vm0, %v6705_v49  ;;  %v6699_v14 = vadd.f32 %v9575_v38, %v6691_v39  ;;  %v6685_v62 = vmul.f32 %v9539_v63, %v11576_v27 }
0x1bcc   : > { %6720 = vst.msk [vmem:[%s11601_s20 + $0x10] sm:$0xff] %vm548_vm0, %v6704_v47  ;;  %v6698_v60 = vadd.f32 %v9575_v38, %v6690_v43  ;;  %v6684_v8 = vmul.f32 %v9541_v7, %v11579_v34 }
0x1bcd   : > { %v6707_v20 = vadd.f32 %v11518_v28, %v6699_v14  ;;  %v6693_v15 = vmul.f32 %v9574_v56, %v6685_v62 }
0x1bce   : > { %v6706_v1 = vadd.f32 %v11513_v18, %v6698_v60  ;;  %v6692_v25 = vmul.f32 %v9574_v56, %v6684_v8 }
0x1bcf   : > { %6723 = vst.msk [vmem:[%s11601_s20 + $0x28] sm:$0xff] %vm548_vm0, %v6707_v20  ;;  %v6701_v59 = vadd.f32 %v9575_v38, %v6693_v15 }
0x1bd0   : > { %6722 = vst.msk [vmem:[%s11601_s20 + $0x20] sm:$0xff] %vm548_vm0, %v6706_v1  ;;  %v6700_v45 = vadd.f32 %v9575_v38, %v6692_v25 }
0x1bd1   : > { %v6709_v54 = vadd.f32 %v11528_v3, %v6701_v59 }
0x1bd2   : > { %v6708_v27 = vadd.f32 %v11523_v31, %v6700_v45 }
0x1bd3   : > { %6725 = vst.msk [vmem:[%s11601_s20 + $0x38] sm:$0xff] %vm548_vm0, %v6709_v54 }
0x1bd4   : > { %6724 = vst.msk [vmem:[%s11601_s20 + $0x30] sm:$0xff] %vm548_vm0, %v6708_v27 }
0x1bd5 PF: > { %s24_s25 = sadd.s32 1, %s9582_s25  }
0x1bd6   : > { %p21_p4 = scmp.ge.s32.totalorder %s24_s25, 4  }
0x1bd8   :  { %23 = sbr.rel (!%p21_p4) target bundleno = 1 (0x1), region = 119 }

</bundles_post_ra>
